<compile_context>
chip_gen: v7x
topology: tpu7x:2x2x1
jax: 0.10.0
libtpu: 0.0.40
codegen_flags: <defaults>
</compile_context>

<pallas_src>
import math
from functools import partial

import numpy as np
import jax
import jax.numpy as jnp
from jax import lax
from jax.experimental import pallas as pl
from jax.experimental.pallas import tpu as pltpu


# ----------------------------- fixed (non-learnable) filter weights ----------

def _gaussian_kernel1d(ksize: int = 3, sigma: float = 1.0) -> np.ndarray:
    # matches kornia.filters.get_gaussian_kernel1d (normalized, odd ksize)
    x = np.arange(ksize, dtype=np.float64) - ksize // 2
    g = np.exp(-(x ** 2) / (2.0 * sigma ** 2))
    return g / g.sum()


def _pascal_kernel1d(ksize: int = 3) -> np.ndarray:
    # matches kornia.filters.get_pascal_kernel_1d(norm=True): [1,2,1]/4
    row = np.array([math.comb(ksize - 1, i) for i in range(ksize)], dtype=np.float64)
    return row / row.sum()


def _pool_matrices(h: int, w: int):
    """kornia.blur_pool2d(kernel_size=3, stride=2) = separable pascal blur + zero pad 1
    + stride-2 decimation, folded into constant matrices:  out = dv @ y @ dw  per ch."""
    kv = _pascal_kernel1d(3)
    ho, wo = (h - 1) // 2 + 1, (w - 1) // 2 + 1
    dv = np.zeros((ho, h), dtype=np.float64)
    for i in range(ho):
        for a in range(3):
            r = 2 * i + a - 1
            if 0 <= r < h:
                dv[i, r] += kv[a]
    dw = np.zeros((w, wo), dtype=np.float64)
    for j in range(wo):
        for b in range(3):
            c = 2 * j + b - 1
            if 0 <= c < w:
                dw[c, j] += kv[b]
    return dv.astype(np.float32), dw.astype(np.float32)


def _block_diag(mat: np.ndarray, n: int) -> np.ndarray:
    """Block-diagonal replication of the column-pool matrix so a single matmul pools
    every packed channel segment at once."""
    r, c = mat.shape
    out = np.zeros((n * r, n * c), dtype=mat.dtype)
    for i in range(n):
        out[i * r:(i + 1) * r, i * c:(i + 1) * c] = mat
    return out


# ----------------------------- fused Pallas kernel ---------------------------

def _make_pyramid_kernel(level_shapes, num_blur, cnc, ga, gb):
    """level_shapes: tuple of (h, w, ho, wo) per level; ga/gb: gaussian 1d taps.
    The working tile is lane-packed: (h, cnc*w), packed column q = c*w + j."""
    n_lvl = len(level_shapes)

    def kernel(x_ref, *refs):
        dv_refs = [refs[2 * l] for l in range(n_lvl)]
        dwb_refs = [refs[2 * l + 1] for l in range(n_lvl)]
        out_refs = refs[2 * n_lvl:]

        cur = x_ref[...].astype(jnp.float32)           # (H, cnc*W)

        for l, (h, w, ho, wo) in enumerate(level_shapes):
            pw = cnc * w
            # Per-channel-segment column masks (hoisted out of the blur loop).
            col = lax.broadcasted_iota(jnp.int32, (h, pw), 1) % w
            is_first = col == 0            # column 0 of each channel segment
            is_last = col == (w - 1)       # column w-1 of each channel segment

            def blur_pass(_, y):
                # vertical reflect pad + 3-tap blur (sublane axis, all channels at once)
                xp = jnp.concatenate([y[1:2], y, y[h - 2:h - 1]], axis=0)   # (h+2, pw)
                v = ga * (xp[0:h] + xp[2:h + 2]) + gb * xp[1:h + 1]          # (h, pw)
                # horizontal reflect + 3-tap blur inside each channel segment.  lo/hi
                # are the q-1 / q+1 neighbours; at segment edges the reflect halo is
                # realised by swapping to the in-segment neighbour via the lane masks,
                # so the packed layout never mixes adjacent channels.
                lo = jnp.concatenate([v[:, :1], v[:, :-1]], axis=1)   # value at q-1
                hi = jnp.concatenate([v[:, 1:], v[:, -1:]], axis=1)   # value at q+1
                left = jnp.where(is_first, hi, lo)    # col 0 mirrors col 1
                right = jnp.where(is_last, lo, hi)    # col w-1 mirrors col w-2
                return ga * (left + right) + gb * v

            # register-resident blur; unroll keeps LLO scheduling visibility.
            cur = lax.fori_loop(0, num_blur, blur_pass, cur, unroll=True)

            # blur_pool2d: pascal blur + zero pad + stride-2 decimation folded into two
            # collapsed MXU matmuls (channels ride along the free dim — one push each).
            rp = jnp.dot(dv_refs[l][...], cur,
                         preferred_element_type=jnp.float32,
                         precision=lax.Precision.HIGHEST)                 # (ho, cnc*w)
            cur = jnp.dot(rp, dwb_refs[l][...],
                          preferred_element_type=jnp.float32,
                          precision=lax.Precision.HIGHEST)                # (ho, cnc*wo)

            out_refs[l][...] = cur.astype(out_refs[l].dtype)

    return kernel


# ----------------------------- VMEM budgeting --------------------------------

def _round_up(x: int, m: int) -> int:
    return (x + m - 1) // m * m


def _f32_tile_bytes(rows: int, cols: int) -> int:
    """f32 bytes of a (rows, cols) buffer after (8,128) vreg-tile rounding."""
    return 4 * _round_up(max(rows, 1), 8) * _round_up(max(cols, 1), 128)


def _chunk_vmem_bytes(cnc: int, H: int, W: int, level_shapes) -> int:
    """Per-grid-step VMEM: double-buffered pipeline blocks + live-value headroom."""
    total = 2 * _f32_tile_bytes(H, cnc * W)                      # input block
    for (h, w, ho, wo) in level_shapes:
        total += 2 * _f32_tile_bytes(ho, h)                      # dv
        total += 2 * _f32_tile_bytes(cnc * w, cnc * wo)          # blockdiag(dw)
        total += 2 * _f32_tile_bytes(ho, cnc * wo)               # output block
    total += 4 * _f32_tile_bytes(H + 2, cnc * W)                 # spill/temp headroom
    return total


def _vmem_budget_bytes() -> int:
    cap = 64 * 1024 * 1024                 # conservative fallback: v7x per-TC VMEM
    try:
        cap = int(pltpu.get_tpu_info().vmem_capacity_bytes)
    except Exception:
        pass
    return cap // 4                        # headroom for Mosaic internals


def _pick_channel_chunk(nc: int, H: int, W: int, level_shapes) -> int:
    budget = _vmem_budget_bytes()
    fits = [d for d in range(1, nc + 1)
            if nc % d == 0 and _chunk_vmem_bytes(d, H, W, level_shapes) <= budget]
    if not fits:
        return 1
    # Prefer >=2 grid steps (shards the "parallel" axis across v7x's two TensorCores)
    # as long as each chunk still keeps the packed lane axis reasonably dense.
    min_lane_dense = max(1, -(-128 // W))
    multi = [d for d in fits if nc // d >= 2 and d >= min_lane_dense]
    return max(multi) if multi else max(fits)


# ----------------------------- wrapper ---------------------------------------

@partial(jax.jit, static_argnames=("num_high", "num_blur"))
def gauss_pyramid_conv(img, *, num_high=3, num_blur=4):
    """Forward of Gauss_Pyramid_Conv: returns [img, level1, ..., level_num_high]."""
    N, C, H, W = img.shape
    nc = N * C

    # static per-level geometry (matches conv2d floor formula)
    level_shapes = []
    h, w = H, W
    for _ in range(num_high):
        assert h >= 2 and w >= 2, "reflect padding needs spatial dims >= 2"
        ho, wo = (h - 1) // 2 + 1, (w - 1) // 2 + 1
        level_shapes.append((h, w, ho, wo))
        h, w = ho, wo

    cnc = _pick_channel_chunk(nc, H, W, level_shapes)
    nchunks = nc // cnc

    # lane-packed layout: (chunk, H, cnc*W) — a whole channel chunk shares vregs.
    x = img.reshape(nchunks, cnc, H, W).transpose(0, 2, 1, 3).reshape(nchunks, H, cnc * W)

    g1 = _gaussian_kernel1d(3, 1.0)
    ga, gb = float(g1[0]), float(g1[1])

    in_specs = [pl.BlockSpec((None, H, cnc * W), lambda i: (i, 0, 0))]
    mat_inputs = []
    for (h, w, ho, wo) in level_shapes:
        dv, dw = _pool_matrices(h, w)
        dwb = _block_diag(dw, cnc)
        in_specs.append(pl.BlockSpec((ho, h), lambda i: (0, 0)))
        in_specs.append(pl.BlockSpec((cnc * w, cnc * wo), lambda i: (0, 0)))
        mat_inputs += [jnp.asarray(dv), jnp.asarray(dwb)]

    out_shapes, out_specs = [], []
    for (h, w, ho, wo) in level_shapes:
        out_shapes.append(jax.ShapeDtypeStruct((nchunks, ho, cnc * wo), img.dtype))
        out_specs.append(pl.BlockSpec((None, ho, cnc * wo), lambda i: (i, 0, 0)))

    kernel = _make_pyramid_kernel(tuple(level_shapes), num_blur, cnc, ga, gb)

    need = _chunk_vmem_bytes(cnc, H, W, level_shapes)
    vmem_limit = int(min(need * 2, 96 * 1024 * 1024)) if need > 12 * 1024 * 1024 else None

    outs = pl.pallas_call(
        kernel,
        out_shape=tuple(out_shapes),
        grid_spec=pltpu.PrefetchScalarGridSpec(
            num_scalar_prefetch=0,
            grid=(nchunks,),
            in_specs=in_specs,
            out_specs=tuple(out_specs)),
        compiler_params=pltpu.CompilerParams(
            dimension_semantics=("parallel",),
            vmem_limit_bytes=vmem_limit),
    )(x, *mat_inputs)

    pyr = [img]
    for o, (h, w, ho, wo) in zip(outs, level_shapes):
        o = o.reshape(nchunks, ho, cnc, wo).transpose(0, 2, 1, 3).reshape(N, C, ho, wo)
        pyr.append(o)
    return pyr


# ----------------------------- pure-JAX reference (spec ground truth) --------

_GAUSS_2D = np.outer(_gaussian_kernel1d(3, 1.0), _gaussian_kernel1d(3, 1.0)).astype(np.float32)
_PASCAL_2D = np.outer(_pascal_kernel1d(3), _pascal_kernel1d(3)).astype(np.float32)


def _ref_depthwise3x3(x, w, stride, pad_mode):
    N, C, H, W = x.shape
    if pad_mode == "reflect":
        xp = jnp.pad(x, ((0, 0), (0, 0), (1, 1), (1, 1)), mode="reflect")
    else:
        xp = jnp.pad(x, ((0, 0), (0, 0), (1, 1), (1, 1)))
    k = jnp.broadcast_to(jnp.asarray(w, dtype=x.dtype)[None, None, :, :], (C, 1, 3, 3))
    return lax.conv_general_dilated(
        xp, k, window_strides=(stride, stride), padding="VALID",
        dimension_numbers=("NCHW", "OIHW", "NCHW"), feature_group_count=C,
        precision=lax.Precision.HIGHEST)


def _reference_pyramid(img, *, num_high=3, num_blur=4):
    current = img
    pyr = [current]
    for _ in range(num_high):
        for _ in range(num_blur):
            current = _ref_depthwise3x3(current, _GAUSS_2D, 1, "reflect")
        current = _ref_depthwise3x3(current, _PASCAL_2D, 2, "zero")
        pyr.append(current)
    return pyr


# ----------------------------- main -------------------------------------------

if __name__ == "__main__":
    key = jax.random.PRNGKey(0)
    N, C, H, W = 2, 11, 16, 16          # module default channels=11
    img = jax.random.normal(key, (N, C, H, W), dtype=jnp.float32)

    pyr = jax.block_until_ready(gauss_pyramid_conv(img, num_high=3, num_blur=4))

    ref = _reference_pyramid(img, num_high=3, num_blur=4)
    expected_shapes = [(N, C, H, W), (N, C, H // 2, W // 2),
                       (N, C, H // 4, W // 4), (N, C, H // 8, W // 8)]
    assert len(pyr) == len(ref) == 4
    for p, r, s in zip(pyr, ref, expected_shapes):
        assert tuple(p.shape) == s, (p.shape, s)
        # tightened vs. the previous 2e-3: f32 taps + HIGHEST pool matmuls leave only
        # accumulation-order noise (~1e-5); structural bugs would be O(0.1).
        np.testing.assert_allclose(np.asarray(p), np.asarray(r), rtol=5e-4, atol=5e-4)

    print("KERNEL_OK")
</pallas_src>

<mosaic_0001>
module attributes {stable_mosaic.version = 11 : i64} {
  func.func @kernel(%arg0: i32, %arg1: memref<1x16x176xf32, #tpu.memory_space<vmem>>, %arg2: memref<8x16xf32, #tpu.memory_space<vmem>>, %arg3: memref<176x88xf32, #tpu.memory_space<vmem>>, %arg4: memref<4x8xf32, #tpu.memory_space<vmem>>, %arg5: memref<88x44xf32, #tpu.memory_space<vmem>>, %arg6: memref<2x4xf32, #tpu.memory_space<vmem>>, %arg7: memref<44x22xf32, #tpu.memory_space<vmem>>, %arg8: memref<1x8x88xf32, #tpu.memory_space<vmem>>, %arg9: memref<1x4x44xf32, #tpu.memory_space<vmem>>, %arg10: memref<1x2x22xf32, #tpu.memory_space<vmem>>) attributes {dimension_semantics = [#tpu.dimension_semantics<parallel>], iteration_bounds = array<i64: 2>, scalar_prefetch = 0 : i64, scratch_operands = 0 : i64, tpu.core_type = #tpu.core_type<tc>, window_params = [{transform_indices = @transform_0, window_bounds = array<i64: 1, 16, 176>}, {pipeline_mode = #tpu.pipeline_mode<synchronous>, transform_indices = @transform_1, window_bounds = array<i64: 8, 16>}, {pipeline_mode = #tpu.pipeline_mode<synchronous>, transform_indices = @transform_2, window_bounds = array<i64: 176, 88>}, {pipeline_mode = #tpu.pipeline_mode<synchronous>, transform_indices = @transform_3, window_bounds = array<i64: 4, 8>}, {pipeline_mode = #tpu.pipeline_mode<synchronous>, transform_indices = @transform_4, window_bounds = array<i64: 88, 44>}, {pipeline_mode = #tpu.pipeline_mode<synchronous>, transform_indices = @transform_5, window_bounds = array<i64: 2, 4>}, {pipeline_mode = #tpu.pipeline_mode<synchronous>, transform_indices = @transform_6, window_bounds = array<i64: 44, 22>}, {transform_indices = @transform_7, window_bounds = array<i64: 1, 8, 88>}, {transform_indices = @transform_8, window_bounds = array<i64: 1, 4, 44>}, {transform_indices = @transform_9, window_bounds = array<i64: 1, 2, 22>}]} {
    %c0 = arith.constant 0 : index
    %c0_0 = arith.constant 0 : index
    %c0_1 = arith.constant 0 : index
    %0 = vector.load %arg1[%c0, %c0_0, %c0_1] : memref<1x16x176xf32, #tpu.memory_space<vmem>>, vector<1x16x176xf32>
    %1 = vector.shape_cast %0 : vector<1x16x176xf32> to vector<16x176xf32>
    %2 = tpu.iota {dimensions = array<i32: 1>} : vector<16x176xi32>
    %c16_i32 = arith.constant 16 : i32
    %c0_i32 = arith.constant 0 : i32
    %3 = arith.cmpi eq, %c16_i32, %c0_i32 : i32
    %c1_i32 = arith.constant 1 : i32
    %4 = arith.select %3, %c1_i32, %c16_i32 : i32
    %5 = vector.broadcast %4 : i32 to vector<16x176xi32>
    %6 = arith.remsi %2, %5 : vector<16x176xi32>
    %c0_i32_2 = arith.constant 0 : i32
    %7 = vector.broadcast %c0_i32_2 : i32 to vector<16x176xi32>
    %8 = arith.cmpi ne, %6, %7 : vector<16x176xi32>
    %c0_i32_3 = arith.constant 0 : i32
    %9 = vector.broadcast %c0_i32_3 : i32 to vector<16x176xi32>
    %10 = arith.cmpi slt, %6, %9 : vector<16x176xi32>
    %c0_i32_4 = arith.constant 0 : i32
    %11 = arith.cmpi slt, %4, %c0_i32_4 : i32
    %12 = vector.broadcast %11 : i1 to vector<16x176xi1>
    %13 = vector.broadcast %12 : vector<16x176xi1> to vector<16x176xi1>
    %14 = arith.xori %10, %13 : vector<16x176xi1>
    %15 = arith.andi %14, %8 : vector<16x176xi1>
    %16 = vector.broadcast %4 : i32 to vector<16x176xi32>
    %17 = arith.addi %6, %16 : vector<16x176xi32>
    %18 = arith.select %15, %17, %6 : vector<16x176xi1>, vector<16x176xi32>
    %c0_i32_5 = arith.constant 0 : i32
    %19 = vector.broadcast %c0_i32_5 : i32 to vector<16x176xi32>
    %20 = arith.cmpi eq, %18, %19 : vector<16x176xi32>
    %c15_i32 = arith.constant 15 : i32
    %21 = vector.broadcast %c15_i32 : i32 to vector<16x176xi32>
    %22 = arith.cmpi eq, %18, %21 : vector<16x176xi32>
    %c0_i32_6 = arith.constant 0 : i32
    %23 = vector.extract_strided_slice %1 {offsets = [1, 0], sizes = [1, 176], strides = [1, 1]} : vector<16x176xf32> to vector<1x176xf32>
    %24 = vector.extract_strided_slice %1 {offsets = [14, 0], sizes = [1, 176], strides = [1, 1]} : vector<16x176xf32> to vector<1x176xf32>
    %25 = tpu.concatenate %23, %1, %24 in 0 : vector<1x176xf32>, vector<16x176xf32>, vector<1x176xf32> -> vector<18x176xf32>
    %26 = vector.extract_strided_slice %25 {offsets = [0, 0], sizes = [16, 176], strides = [1, 1]} : vector<18x176xf32> to vector<16x176xf32>
    %27 = vector.extract_strided_slice %25 {offsets = [2, 0], sizes = [16, 176], strides = [1, 1]} : vector<18x176xf32> to vector<16x176xf32>
    %28 = arith.addf %26, %27 : vector<16x176xf32>
    %cst = arith.constant 0.274068624 : f32
    %29 = vector.broadcast %cst : f32 to vector<16x176xf32>
    %30 = arith.mulf %29, %28 : vector<16x176xf32>
    %31 = vector.extract_strided_slice %25 {offsets = [1, 0], sizes = [16, 176], strides = [1, 1]} : vector<18x176xf32> to vector<16x176xf32>
    %cst_7 = arith.constant 0.451862752 : f32
    %32 = vector.broadcast %cst_7 : f32 to vector<16x176xf32>
    %33 = arith.mulf %32, %31 : vector<16x176xf32>
    %34 = arith.addf %30, %33 : vector<16x176xf32>
    %35 = vector.extract_strided_slice %34 {offsets = [0, 0], sizes = [16, 1], strides = [1, 1]} : vector<16x176xf32> to vector<16x1xf32>
    %36 = vector.extract_strided_slice %34 {offsets = [0, 0], sizes = [16, 175], strides = [1, 1]} : vector<16x176xf32> to vector<16x175xf32>
    %37 = tpu.concatenate %35, %36 in 1 : vector<16x1xf32>, vector<16x175xf32> -> vector<16x176xf32>
    %38 = vector.extract_strided_slice %34 {offsets = [0, 1], sizes = [16, 175], strides = [1, 1]} : vector<16x176xf32> to vector<16x175xf32>
    %39 = vector.extract_strided_slice %34 {offsets = [0, 175], sizes = [16, 1], strides = [1, 1]} : vector<16x176xf32> to vector<16x1xf32>
    %40 = tpu.concatenate %38, %39 in 1 : vector<16x175xf32>, vector<16x1xf32> -> vector<16x176xf32>
    %41 = arith.select %20, %40, %37 : vector<16x176xi1>, vector<16x176xf32>
    %42 = arith.select %22, %37, %40 : vector<16x176xi1>, vector<16x176xf32>
    %43 = arith.addf %41, %42 : vector<16x176xf32>
    %cst_8 = arith.constant 0.274068624 : f32
    %44 = vector.broadcast %cst_8 : f32 to vector<16x176xf32>
    %45 = arith.mulf %44, %43 : vector<16x176xf32>
    %cst_9 = arith.constant 0.451862752 : f32
    %46 = vector.broadcast %cst_9 : f32 to vector<16x176xf32>
    %47 = arith.mulf %46, %34 : vector<16x176xf32>
    %48 = arith.addf %45, %47 : vector<16x176xf32>
    %c1_i32_10 = arith.constant 1 : i32
    %49 = vector.extract_strided_slice %48 {offsets = [1, 0], sizes = [1, 176], strides = [1, 1]} : vector<16x176xf32> to vector<1x176xf32>
    %50 = vector.extract_strided_slice %48 {offsets = [14, 0], sizes = [1, 176], strides = [1, 1]} : vector<16x176xf32> to vector<1x176xf32>
    %51 = tpu.concatenate %49, %48, %50 in 0 : vector<1x176xf32>, vector<16x176xf32>, vector<1x176xf32> -> vector<18x176xf32>
    %52 = vector.extract_strided_slice %51 {offsets = [0, 0], sizes = [16, 176], strides = [1, 1]} : vector<18x176xf32> to vector<16x176xf32>
    %53 = vector.extract_strided_slice %51 {offsets = [2, 0], sizes = [16, 176], strides = [1, 1]} : vector<18x176xf32> to vector<16x176xf32>
    %54 = arith.addf %52, %53 : vector<16x176xf32>
    %cst_11 = arith.constant 0.274068624 : f32
    %55 = vector.broadcast %cst_11 : f32 to vector<16x176xf32>
    %56 = arith.mulf %55, %54 : vector<16x176xf32>
    %57 = vector.extract_strided_slice %51 {offsets = [1, 0], sizes = [16, 176], strides = [1, 1]} : vector<18x176xf32> to vector<16x176xf32>
    %cst_12 = arith.constant 0.451862752 : f32
    %58 = vector.broadcast %cst_12 : f32 to vector<16x176xf32>
    %59 = arith.mulf %58, %57 : vector<16x176xf32>
    %60 = arith.addf %56, %59 : vector<16x176xf32>
    %61 = vector.extract_strided_slice %60 {offsets = [0, 0], sizes = [16, 1], strides = [1, 1]} : vector<16x176xf32> to vector<16x1xf32>
    %62 = vector.extract_strided_slice %60 {offsets = [0, 0], sizes = [16, 175], strides = [1, 1]} : vector<16x176xf32> to vector<16x175xf32>
    %63 = tpu.concatenate %61, %62 in 1 : vector<16x1xf32>, vector<16x175xf32> -> vector<16x176xf32>
    %64 = vector.extract_strided_slice %60 {offsets = [0, 1], sizes = [16, 175], strides = [1, 1]} : vector<16x176xf32> to vector<16x175xf32>
    %65 = vector.extract_strided_slice %60 {offsets = [0, 175], sizes = [16, 1], strides = [1, 1]} : vector<16x176xf32> to vector<16x1xf32>
    %66 = tpu.concatenate %64, %65 in 1 : vector<16x175xf32>, vector<16x1xf32> -> vector<16x176xf32>
    %67 = arith.select %20, %66, %63 : vector<16x176xi1>, vector<16x176xf32>
    %68 = arith.select %22, %63, %66 : vector<16x176xi1>, vector<16x176xf32>
    %69 = arith.addf %67, %68 : vector<16x176xf32>
    %cst_13 = arith.constant 0.274068624 : f32
    %70 = vector.broadcast %cst_13 : f32 to vector<16x176xf32>
    %71 = arith.mulf %70, %69 : vector<16x176xf32>
    %cst_14 = arith.constant 0.451862752 : f32
    %72 = vector.broadcast %cst_14 : f32 to vector<16x176xf32>
    %73 = arith.mulf %72, %60 : vector<16x176xf32>
    %74 = arith.addf %71, %73 : vector<16x176xf32>
    %c2_i32 = arith.constant 2 : i32
    %75 = vector.extract_strided_slice %74 {offsets = [1, 0], sizes = [1, 176], strides = [1, 1]} : vector<16x176xf32> to vector<1x176xf32>
    %76 = vector.extract_strided_slice %74 {offsets = [14, 0], sizes = [1, 176], strides = [1, 1]} : vector<16x176xf32> to vector<1x176xf32>
    %77 = tpu.concatenate %75, %74, %76 in 0 : vector<1x176xf32>, vector<16x176xf32>, vector<1x176xf32> -> vector<18x176xf32>
    %78 = vector.extract_strided_slice %77 {offsets = [0, 0], sizes = [16, 176], strides = [1, 1]} : vector<18x176xf32> to vector<16x176xf32>
    %79 = vector.extract_strided_slice %77 {offsets = [2, 0], sizes = [16, 176], strides = [1, 1]} : vector<18x176xf32> to vector<16x176xf32>
    %80 = arith.addf %78, %79 : vector<16x176xf32>
    %cst_15 = arith.constant 0.274068624 : f32
    %81 = vector.broadcast %cst_15 : f32 to vector<16x176xf32>
    %82 = arith.mulf %81, %80 : vector<16x176xf32>
    %83 = vector.extract_strided_slice %77 {offsets = [1, 0], sizes = [16, 176], strides = [1, 1]} : vector<18x176xf32> to vector<16x176xf32>
    %cst_16 = arith.constant 0.451862752 : f32
    %84 = vector.broadcast %cst_16 : f32 to vector<16x176xf32>
    %85 = arith.mulf %84, %83 : vector<16x176xf32>
    %86 = arith.addf %82, %85 : vector<16x176xf32>
    %87 = vector.extract_strided_slice %86 {offsets = [0, 0], sizes = [16, 1], strides = [1, 1]} : vector<16x176xf32> to vector<16x1xf32>
    %88 = vector.extract_strided_slice %86 {offsets = [0, 0], sizes = [16, 175], strides = [1, 1]} : vector<16x176xf32> to vector<16x175xf32>
    %89 = tpu.concatenate %87, %88 in 1 : vector<16x1xf32>, vector<16x175xf32> -> vector<16x176xf32>
    %90 = vector.extract_strided_slice %86 {offsets = [0, 1], sizes = [16, 175], strides = [1, 1]} : vector<16x176xf32> to vector<16x175xf32>
    %91 = vector.extract_strided_slice %86 {offsets = [0, 175], sizes = [16, 1], strides = [1, 1]} : vector<16x176xf32> to vector<16x1xf32>
    %92 = tpu.concatenate %90, %91 in 1 : vector<16x175xf32>, vector<16x1xf32> -> vector<16x176xf32>
    %93 = arith.select %20, %92, %89 : vector<16x176xi1>, vector<16x176xf32>
    %94 = arith.select %22, %89, %92 : vector<16x176xi1>, vector<16x176xf32>
    %95 = arith.addf %93, %94 : vector<16x176xf32>
    %cst_17 = arith.constant 0.274068624 : f32
    %96 = vector.broadcast %cst_17 : f32 to vector<16x176xf32>
    %97 = arith.mulf %96, %95 : vector<16x176xf32>
    %cst_18 = arith.constant 0.451862752 : f32
    %98 = vector.broadcast %cst_18 : f32 to vector<16x176xf32>
    %99 = arith.mulf %98, %86 : vector<16x176xf32>
    %100 = arith.addf %97, %99 : vector<16x176xf32>
    %c3_i32 = arith.constant 3 : i32
    %101 = vector.extract_strided_slice %100 {offsets = [1, 0], sizes = [1, 176], strides = [1, 1]} : vector<16x176xf32> to vector<1x176xf32>
    %102 = vector.extract_strided_slice %100 {offsets = [14, 0], sizes = [1, 176], strides = [1, 1]} : vector<16x176xf32> to vector<1x176xf32>
    %103 = tpu.concatenate %101, %100, %102 in 0 : vector<1x176xf32>, vector<16x176xf32>, vector<1x176xf32> -> vector<18x176xf32>
    %104 = vector.extract_strided_slice %103 {offsets = [0, 0], sizes = [16, 176], strides = [1, 1]} : vector<18x176xf32> to vector<16x176xf32>
    %105 = vector.extract_strided_slice %103 {offsets = [2, 0], sizes = [16, 176], strides = [1, 1]} : vector<18x176xf32> to vector<16x176xf32>
    %106 = arith.addf %104, %105 : vector<16x176xf32>
    %cst_19 = arith.constant 0.274068624 : f32
    %107 = vector.broadcast %cst_19 : f32 to vector<16x176xf32>
    %108 = arith.mulf %107, %106 : vector<16x176xf32>
    %109 = vector.extract_strided_slice %103 {offsets = [1, 0], sizes = [16, 176], strides = [1, 1]} : vector<18x176xf32> to vector<16x176xf32>
    %cst_20 = arith.constant 0.451862752 : f32
    %110 = vector.broadcast %cst_20 : f32 to vector<16x176xf32>
    %111 = arith.mulf %110, %109 : vector<16x176xf32>
    %112 = arith.addf %108, %111 : vector<16x176xf32>
    %113 = vector.extract_strided_slice %112 {offsets = [0, 0], sizes = [16, 1], strides = [1, 1]} : vector<16x176xf32> to vector<16x1xf32>
    %114 = vector.extract_strided_slice %112 {offsets = [0, 0], sizes = [16, 175], strides = [1, 1]} : vector<16x176xf32> to vector<16x175xf32>
    %115 = tpu.concatenate %113, %114 in 1 : vector<16x1xf32>, vector<16x175xf32> -> vector<16x176xf32>
    %116 = vector.extract_strided_slice %112 {offsets = [0, 1], sizes = [16, 175], strides = [1, 1]} : vector<16x176xf32> to vector<16x175xf32>
    %117 = vector.extract_strided_slice %112 {offsets = [0, 175], sizes = [16, 1], strides = [1, 1]} : vector<16x176xf32> to vector<16x1xf32>
    %118 = tpu.concatenate %116, %117 in 1 : vector<16x175xf32>, vector<16x1xf32> -> vector<16x176xf32>
    %119 = arith.select %20, %118, %115 : vector<16x176xi1>, vector<16x176xf32>
    %120 = arith.select %22, %115, %118 : vector<16x176xi1>, vector<16x176xf32>
    %121 = arith.addf %119, %120 : vector<16x176xf32>
    %cst_21 = arith.constant 0.274068624 : f32
    %122 = vector.broadcast %cst_21 : f32 to vector<16x176xf32>
    %123 = arith.mulf %122, %121 : vector<16x176xf32>
    %cst_22 = arith.constant 0.451862752 : f32
    %124 = vector.broadcast %cst_22 : f32 to vector<16x176xf32>
    %125 = arith.mulf %124, %112 : vector<16x176xf32>
    %126 = arith.addf %123, %125 : vector<16x176xf32>
    %c0_23 = arith.constant 0 : index
    %c0_24 = arith.constant 0 : index
    %127 = vector.load %arg2[%c0_23, %c0_24] : memref<8x16xf32, #tpu.memory_space<vmem>>, vector<8x16xf32>
    %cst_25 = arith.constant dense<0.000000e+00> : vector<8x176xf32>
    %128 = tpu.matmul %127, %126, %cst_25 {dimension_numbers = #tpu.dot_dimension_numbers<[1], [0], [0], [1], [0, 0, 1, 1], [], []>, precision = #tpu.contract_precision<fp32>} : vector<8x16xf32>, vector<16x176xf32>, vector<8x176xf32> -> vector<8x176xf32>
    %c0_26 = arith.constant 0 : index
    %c0_27 = arith.constant 0 : index
    %129 = vector.load %arg3[%c0_26, %c0_27] : memref<176x88xf32, #tpu.memory_space<vmem>>, vector<176x88xf32>
    %cst_28 = arith.constant dense<0.000000e+00> : vector<8x88xf32>
    %130 = tpu.matmul %128, %129, %cst_28 {dimension_numbers = #tpu.dot_dimension_numbers<[1], [0], [0], [1], [0, 0, 1, 1], [], []>, precision = #tpu.contract_precision<fp32>} : vector<8x176xf32>, vector<176x88xf32>, vector<8x88xf32> -> vector<8x88xf32>
    %c0_29 = arith.constant 0 : index
    %c0_30 = arith.constant 0 : index
    %c0_31 = arith.constant 0 : index
    %131 = vector.load %arg8[%c0_29, %c0_30, %c0_31] : memref<1x8x88xf32, #tpu.memory_space<vmem>>, vector<1x8x88xf32>
    %132 = vector.shape_cast %131 : vector<1x8x88xf32> to vector<8x88xf32>
    %133 = vector.shape_cast %130 : vector<8x88xf32> to vector<1x8x88xf32>
    tpu.vector_store %arg8[%c0_29, %c0_30, %c0_31], %133 {strides = array<i32>} : memref<1x8x88xf32, #tpu.memory_space<vmem>>, vector<1x8x88xf32>,
    %134 = tpu.iota {dimensions = array<i32: 1>} : vector<8x88xi32>
    %c8_i32 = arith.constant 8 : i32
    %c0_i32_32 = arith.constant 0 : i32
    %135 = arith.cmpi eq, %c8_i32, %c0_i32_32 : i32
    %c1_i32_33 = arith.constant 1 : i32
    %136 = arith.select %135, %c1_i32_33, %c8_i32 : i32
    %137 = vector.broadcast %136 : i32 to vector<8x88xi32>
    %138 = arith.remsi %134, %137 : vector<8x88xi32>
    %c0_i32_34 = arith.constant 0 : i32
    %139 = vector.broadcast %c0_i32_34 : i32 to vector<8x88xi32>
    %140 = arith.cmpi ne, %138, %139 : vector<8x88xi32>
    %c0_i32_35 = arith.constant 0 : i32
    %141 = vector.broadcast %c0_i32_35 : i32 to vector<8x88xi32>
    %142 = arith.cmpi slt, %138, %141 : vector<8x88xi32>
    %c0_i32_36 = arith.constant 0 : i32
    %143 = arith.cmpi slt, %136, %c0_i32_36 : i32
    %144 = vector.broadcast %143 : i1 to vector<8x88xi1>
    %145 = vector.broadcast %144 : vector<8x88xi1> to vector<8x88xi1>
    %146 = arith.xori %142, %145 : vector<8x88xi1>
    %147 = arith.andi %146, %140 : vector<8x88xi1>
    %148 = vector.broadcast %136 : i32 to vector<8x88xi32>
    %149 = arith.addi %138, %148 : vector<8x88xi32>
    %150 = arith.select %147, %149, %138 : vector<8x88xi1>, vector<8x88xi32>
    %c0_i32_37 = arith.constant 0 : i32
    %151 = vector.broadcast %c0_i32_37 : i32 to vector<8x88xi32>
    %152 = arith.cmpi eq, %150, %151 : vector<8x88xi32>
    %c7_i32 = arith.constant 7 : i32
    %153 = vector.broadcast %c7_i32 : i32 to vector<8x88xi32>
    %154 = arith.cmpi eq, %150, %153 : vector<8x88xi32>
    %c0_i32_38 = arith.constant 0 : i32
    %155 = vector.extract_strided_slice %130 {offsets = [1, 0], sizes = [1, 88], strides = [1, 1]} : vector<8x88xf32> to vector<1x88xf32>
    %156 = vector.extract_strided_slice %130 {offsets = [6, 0], sizes = [1, 88], strides = [1, 1]} : vector<8x88xf32> to vector<1x88xf32>
    %157 = tpu.concatenate %155, %130, %156 in 0 : vector<1x88xf32>, vector<8x88xf32>, vector<1x88xf32> -> vector<10x88xf32>
    %158 = vector.extract_strided_slice %157 {offsets = [0, 0], sizes = [8, 88], strides = [1, 1]} : vector<10x88xf32> to vector<8x88xf32>
    %159 = vector.extract_strided_slice %157 {offsets = [2, 0], sizes = [8, 88], strides = [1, 1]} : vector<10x88xf32> to vector<8x88xf32>
    %160 = arith.addf %158, %159 : vector<8x88xf32>
    %cst_39 = arith.constant 0.274068624 : f32
    %161 = vector.broadcast %cst_39 : f32 to vector<8x88xf32>
    %162 = arith.mulf %161, %160 : vector<8x88xf32>
    %163 = vector.extract_strided_slice %157 {offsets = [1, 0], sizes = [8, 88], strides = [1, 1]} : vector<10x88xf32> to vector<8x88xf32>
    %cst_40 = arith.constant 0.451862752 : f32
    %164 = vector.broadcast %cst_40 : f32 to vector<8x88xf32>
    %165 = arith.mulf %164, %163 : vector<8x88xf32>
    %166 = arith.addf %162, %165 : vector<8x88xf32>
    %167 = vector.extract_strided_slice %166 {offsets = [0, 0], sizes = [8, 1], strides = [1, 1]} : vector<8x88xf32> to vector<8x1xf32>
    %168 = vector.extract_strided_slice %166 {offsets = [0, 0], sizes = [8, 87], strides = [1, 1]} : vector<8x88xf32> to vector<8x87xf32>
    %169 = tpu.concatenate %167, %168 in 1 : vector<8x1xf32>, vector<8x87xf32> -> vector<8x88xf32>
    %170 = vector.extract_strided_slice %166 {offsets = [0, 1], sizes = [8, 87], strides = [1, 1]} : vector<8x88xf32> to vector<8x87xf32>
    %171 = vector.extract_strided_slice %166 {offsets = [0, 87], sizes = [8, 1], strides = [1, 1]} : vector<8x88xf32> to vector<8x1xf32>
    %172 = tpu.concatenate %170, %171 in 1 : vector<8x87xf32>, vector<8x1xf32> -> vector<8x88xf32>
    %173 = arith.select %152, %172, %169 : vector<8x88xi1>, vector<8x88xf32>
    %174 = arith.select %154, %169, %172 : vector<8x88xi1>, vector<8x88xf32>
    %175 = arith.addf %173, %174 : vector<8x88xf32>
    %cst_41 = arith.constant 0.274068624 : f32
    %176 = vector.broadcast %cst_41 : f32 to vector<8x88xf32>
    %177 = arith.mulf %176, %175 : vector<8x88xf32>
    %cst_42 = arith.constant 0.451862752 : f32
    %178 = vector.broadcast %cst_42 : f32 to vector<8x88xf32>
    %179 = arith.mulf %178, %166 : vector<8x88xf32>
    %180 = arith.addf %177, %179 : vector<8x88xf32>
    %c1_i32_43 = arith.constant 1 : i32
    %181 = vector.extract_strided_slice %180 {offsets = [1, 0], sizes = [1, 88], strides = [1, 1]} : vector<8x88xf32> to vector<1x88xf32>
    %182 = vector.extract_strided_slice %180 {offsets = [6, 0], sizes = [1, 88], strides = [1, 1]} : vector<8x88xf32> to vector<1x88xf32>
    %183 = tpu.concatenate %181, %180, %182 in 0 : vector<1x88xf32>, vector<8x88xf32>, vector<1x88xf32> -> vector<10x88xf32>
    %184 = vector.extract_strided_slice %183 {offsets = [0, 0], sizes = [8, 88], strides = [1, 1]} : vector<10x88xf32> to vector<8x88xf32>
    %185 = vector.extract_strided_slice %183 {offsets = [2, 0], sizes = [8, 88], strides = [1, 1]} : vector<10x88xf32> to vector<8x88xf32>
    %186 = arith.addf %184, %185 : vector<8x88xf32>
    %cst_44 = arith.constant 0.274068624 : f32
    %187 = vector.broadcast %cst_44 : f32 to vector<8x88xf32>
    %188 = arith.mulf %187, %186 : vector<8x88xf32>
    %189 = vector.extract_strided_slice %183 {offsets = [1, 0], sizes = [8, 88], strides = [1, 1]} : vector<10x88xf32> to vector<8x88xf32>
    %cst_45 = arith.constant 0.451862752 : f32
    %190 = vector.broadcast %cst_45 : f32 to vector<8x88xf32>
    %191 = arith.mulf %190, %189 : vector<8x88xf32>
    %192 = arith.addf %188, %191 : vector<8x88xf32>
    %193 = vector.extract_strided_slice %192 {offsets = [0, 0], sizes = [8, 1], strides = [1, 1]} : vector<8x88xf32> to vector<8x1xf32>
    %194 = vector.extract_strided_slice %192 {offsets = [0, 0], sizes = [8, 87], strides = [1, 1]} : vector<8x88xf32> to vector<8x87xf32>
    %195 = tpu.concatenate %193, %194 in 1 : vector<8x1xf32>, vector<8x87xf32> -> vector<8x88xf32>
    %196 = vector.extract_strided_slice %192 {offsets = [0, 1], sizes = [8, 87], strides = [1, 1]} : vector<8x88xf32> to vector<8x87xf32>
    %197 = vector.extract_strided_slice %192 {offsets = [0, 87], sizes = [8, 1], strides = [1, 1]} : vector<8x88xf32> to vector<8x1xf32>
    %198 = tpu.concatenate %196, %197 in 1 : vector<8x87xf32>, vector<8x1xf32> -> vector<8x88xf32>
    %199 = arith.select %152, %198, %195 : vector<8x88xi1>, vector<8x88xf32>
    %200 = arith.select %154, %195, %198 : vector<8x88xi1>, vector<8x88xf32>
    %201 = arith.addf %199, %200 : vector<8x88xf32>
    %cst_46 = arith.constant 0.274068624 : f32
    %202 = vector.broadcast %cst_46 : f32 to vector<8x88xf32>
    %203 = arith.mulf %202, %201 : vector<8x88xf32>
    %cst_47 = arith.constant 0.451862752 : f32
    %204 = vector.broadcast %cst_47 : f32 to vector<8x88xf32>
    %205 = arith.mulf %204, %192 : vector<8x88xf32>
    %206 = arith.addf %203, %205 : vector<8x88xf32>
    %c2_i32_48 = arith.constant 2 : i32
    %207 = vector.extract_strided_slice %206 {offsets = [1, 0], sizes = [1, 88], strides = [1, 1]} : vector<8x88xf32> to vector<1x88xf32>
    %208 = vector.extract_strided_slice %206 {offsets = [6, 0], sizes = [1, 88], strides = [1, 1]} : vector<8x88xf32> to vector<1x88xf32>
    %209 = tpu.concatenate %207, %206, %208 in 0 : vector<1x88xf32>, vector<8x88xf32>, vector<1x88xf32> -> vector<10x88xf32>
    %210 = vector.extract_strided_slice %209 {offsets = [0, 0], sizes = [8, 88], strides = [1, 1]} : vector<10x88xf32> to vector<8x88xf32>
    %211 = vector.extract_strided_slice %209 {offsets = [2, 0], sizes = [8, 88], strides = [1, 1]} : vector<10x88xf32> to vector<8x88xf32>
    %212 = arith.addf %210, %211 : vector<8x88xf32>
    %cst_49 = arith.constant 0.274068624 : f32
    %213 = vector.broadcast %cst_49 : f32 to vector<8x88xf32>
    %214 = arith.mulf %213, %212 : vector<8x88xf32>
    %215 = vector.extract_strided_slice %209 {offsets = [1, 0], sizes = [8, 88], strides = [1, 1]} : vector<10x88xf32> to vector<8x88xf32>
    %cst_50 = arith.constant 0.451862752 : f32
    %216 = vector.broadcast %cst_50 : f32 to vector<8x88xf32>
    %217 = arith.mulf %216, %215 : vector<8x88xf32>
    %218 = arith.addf %214, %217 : vector<8x88xf32>
    %219 = vector.extract_strided_slice %218 {offsets = [0, 0], sizes = [8, 1], strides = [1, 1]} : vector<8x88xf32> to vector<8x1xf32>
    %220 = vector.extract_strided_slice %218 {offsets = [0, 0], sizes = [8, 87], strides = [1, 1]} : vector<8x88xf32> to vector<8x87xf32>
    %221 = tpu.concatenate %219, %220 in 1 : vector<8x1xf32>, vector<8x87xf32> -> vector<8x88xf32>
    %222 = vector.extract_strided_slice %218 {offsets = [0, 1], sizes = [8, 87], strides = [1, 1]} : vector<8x88xf32> to vector<8x87xf32>
    %223 = vector.extract_strided_slice %218 {offsets = [0, 87], sizes = [8, 1], strides = [1, 1]} : vector<8x88xf32> to vector<8x1xf32>
    %224 = tpu.concatenate %222, %223 in 1 : vector<8x87xf32>, vector<8x1xf32> -> vector<8x88xf32>
    %225 = arith.select %152, %224, %221 : vector<8x88xi1>, vector<8x88xf32>
    %226 = arith.select %154, %221, %224 : vector<8x88xi1>, vector<8x88xf32>
    %227 = arith.addf %225, %226 : vector<8x88xf32>
    %cst_51 = arith.constant 0.274068624 : f32
    %228 = vector.broadcast %cst_51 : f32 to vector<8x88xf32>
    %229 = arith.mulf %228, %227 : vector<8x88xf32>
    %cst_52 = arith.constant 0.451862752 : f32
    %230 = vector.broadcast %cst_52 : f32 to vector<8x88xf32>
    %231 = arith.mulf %230, %218 : vector<8x88xf32>
    %232 = arith.addf %229, %231 : vector<8x88xf32>
    %c3_i32_53 = arith.constant 3 : i32
    %233 = vector.extract_strided_slice %232 {offsets = [1, 0], sizes = [1, 88], strides = [1, 1]} : vector<8x88xf32> to vector<1x88xf32>
    %234 = vector.extract_strided_slice %232 {offsets = [6, 0], sizes = [1, 88], strides = [1, 1]} : vector<8x88xf32> to vector<1x88xf32>
    %235 = tpu.concatenate %233, %232, %234 in 0 : vector<1x88xf32>, vector<8x88xf32>, vector<1x88xf32> -> vector<10x88xf32>
    %236 = vector.extract_strided_slice %235 {offsets = [0, 0], sizes = [8, 88], strides = [1, 1]} : vector<10x88xf32> to vector<8x88xf32>
    %237 = vector.extract_strided_slice %235 {offsets = [2, 0], sizes = [8, 88], strides = [1, 1]} : vector<10x88xf32> to vector<8x88xf32>
    %238 = arith.addf %236, %237 : vector<8x88xf32>
    %cst_54 = arith.constant 0.274068624 : f32
    %239 = vector.broadcast %cst_54 : f32 to vector<8x88xf32>
    %240 = arith.mulf %239, %238 : vector<8x88xf32>
    %241 = vector.extract_strided_slice %235 {offsets = [1, 0], sizes = [8, 88], strides = [1, 1]} : vector<10x88xf32> to vector<8x88xf32>
    %cst_55 = arith.constant 0.451862752 : f32
    %242 = vector.broadcast %cst_55 : f32 to vector<8x88xf32>
    %243 = arith.mulf %242, %241 : vector<8x88xf32>
    %244 = arith.addf %240, %243 : vector<8x88xf32>
    %245 = vector.extract_strided_slice %244 {offsets = [0, 0], sizes = [8, 1], strides = [1, 1]} : vector<8x88xf32> to vector<8x1xf32>
    %246 = vector.extract_strided_slice %244 {offsets = [0, 0], sizes = [8, 87], strides = [1, 1]} : vector<8x88xf32> to vector<8x87xf32>
    %247 = tpu.concatenate %245, %246 in 1 : vector<8x1xf32>, vector<8x87xf32> -> vector<8x88xf32>
    %248 = vector.extract_strided_slice %244 {offsets = [0, 1], sizes = [8, 87], strides = [1, 1]} : vector<8x88xf32> to vector<8x87xf32>
    %249 = vector.extract_strided_slice %244 {offsets = [0, 87], sizes = [8, 1], strides = [1, 1]} : vector<8x88xf32> to vector<8x1xf32>
    %250 = tpu.concatenate %248, %249 in 1 : vector<8x87xf32>, vector<8x1xf32> -> vector<8x88xf32>
    %251 = arith.select %152, %250, %247 : vector<8x88xi1>, vector<8x88xf32>
    %252 = arith.select %154, %247, %250 : vector<8x88xi1>, vector<8x88xf32>
    %253 = arith.addf %251, %252 : vector<8x88xf32>
    %cst_56 = arith.constant 0.274068624 : f32
    %254 = vector.broadcast %cst_56 : f32 to vector<8x88xf32>
    %255 = arith.mulf %254, %253 : vector<8x88xf32>
    %cst_57 = arith.constant 0.451862752 : f32
    %256 = vector.broadcast %cst_57 : f32 to vector<8x88xf32>
    %257 = arith.mulf %256, %244 : vector<8x88xf32>
    %258 = arith.addf %255, %257 : vector<8x88xf32>
    %c0_58 = arith.constant 0 : index
    %c0_59 = arith.constant 0 : index
    %259 = vector.load %arg4[%c0_58, %c0_59] : memref<4x8xf32, #tpu.memory_space<vmem>>, vector<4x8xf32>
    %cst_60 = arith.constant dense<0.000000e+00> : vector<4x88xf32>
    %260 = tpu.matmul %259, %258, %cst_60 {dimension_numbers = #tpu.dot_dimension_numbers<[1], [0], [0], [1], [0, 0, 1, 1], [], []>, precision = #tpu.contract_precision<fp32>} : vector<4x8xf32>, vector<8x88xf32>, vector<4x88xf32> -> vector<4x88xf32>
    %c0_61 = arith.constant 0 : index
    %c0_62 = arith.constant 0 : index
    %261 = vector.load %arg5[%c0_61, %c0_62] : memref<88x44xf32, #tpu.memory_space<vmem>>, vector<88x44xf32>
    %cst_63 = arith.constant dense<0.000000e+00> : vector<4x44xf32>
    %262 = tpu.matmul %260, %261, %cst_63 {dimension_numbers = #tpu.dot_dimension_numbers<[1], [0], [0], [1], [0, 0, 1, 1], [], []>, precision = #tpu.contract_precision<fp32>} : vector<4x88xf32>, vector<88x44xf32>, vector<4x44xf32> -> vector<4x44xf32>
    %c0_64 = arith.constant 0 : index
    %c0_65 = arith.constant 0 : index
    %c0_66 = arith.constant 0 : index
    %263 = vector.load %arg9[%c0_64, %c0_65, %c0_66] : memref<1x4x44xf32, #tpu.memory_space<vmem>>, vector<1x4x44xf32>
    %264 = vector.shape_cast %263 : vector<1x4x44xf32> to vector<4x44xf32>
    %265 = vector.shape_cast %262 : vector<4x44xf32> to vector<1x4x44xf32>
    tpu.vector_store %arg9[%c0_64, %c0_65, %c0_66], %265 {strides = array<i32>} : memref<1x4x44xf32, #tpu.memory_space<vmem>>, vector<1x4x44xf32>,
    %266 = tpu.iota {dimensions = array<i32: 1>} : vector<4x44xi32>
    %c4_i32 = arith.constant 4 : i32
    %c0_i32_67 = arith.constant 0 : i32
    %267 = arith.cmpi eq, %c4_i32, %c0_i32_67 : i32
    %c1_i32_68 = arith.constant 1 : i32
    %268 = arith.select %267, %c1_i32_68, %c4_i32 : i32
    %269 = vector.broadcast %268 : i32 to vector<4x44xi32>
    %270 = arith.remsi %266, %269 : vector<4x44xi32>
    %c0_i32_69 = arith.constant 0 : i32
    %271 = vector.broadcast %c0_i32_69 : i32 to vector<4x44xi32>
    %272 = arith.cmpi ne, %270, %271 : vector<4x44xi32>
    %c0_i32_70 = arith.constant 0 : i32
    %273 = vector.broadcast %c0_i32_70 : i32 to vector<4x44xi32>
    %274 = arith.cmpi slt, %270, %273 : vector<4x44xi32>
    %c0_i32_71 = arith.constant 0 : i32
    %275 = arith.cmpi slt, %268, %c0_i32_71 : i32
    %276 = vector.broadcast %275 : i1 to vector<4x44xi1>
    %277 = vector.broadcast %276 : vector<4x44xi1> to vector<4x44xi1>
    %278 = arith.xori %274, %277 : vector<4x44xi1>
    %279 = arith.andi %278, %272 : vector<4x44xi1>
    %280 = vector.broadcast %268 : i32 to vector<4x44xi32>
    %281 = arith.addi %270, %280 : vector<4x44xi32>
    %282 = arith.select %279, %281, %270 : vector<4x44xi1>, vector<4x44xi32>
    %c0_i32_72 = arith.constant 0 : i32
    %283 = vector.broadcast %c0_i32_72 : i32 to vector<4x44xi32>
    %284 = arith.cmpi eq, %282, %283 : vector<4x44xi32>
    %c3_i32_73 = arith.constant 3 : i32
    %285 = vector.broadcast %c3_i32_73 : i32 to vector<4x44xi32>
    %286 = arith.cmpi eq, %282, %285 : vector<4x44xi32>
    %c0_i32_74 = arith.constant 0 : i32
    %287 = vector.extract_strided_slice %262 {offsets = [1, 0], sizes = [1, 44], strides = [1, 1]} : vector<4x44xf32> to vector<1x44xf32>
    %288 = vector.extract_strided_slice %262 {offsets = [2, 0], sizes = [1, 44], strides = [1, 1]} : vector<4x44xf32> to vector<1x44xf32>
    %289 = tpu.concatenate %287, %262, %288 in 0 : vector<1x44xf32>, vector<4x44xf32>, vector<1x44xf32> -> vector<6x44xf32>
    %290 = vector.extract_strided_slice %289 {offsets = [0, 0], sizes = [4, 44], strides = [1, 1]} : vector<6x44xf32> to vector<4x44xf32>
    %291 = vector.extract_strided_slice %289 {offsets = [2, 0], sizes = [4, 44], strides = [1, 1]} : vector<6x44xf32> to vector<4x44xf32>
    %292 = arith.addf %290, %291 : vector<4x44xf32>
    %cst_75 = arith.constant 0.274068624 : f32
    %293 = vector.broadcast %cst_75 : f32 to vector<4x44xf32>
    %294 = arith.mulf %293, %292 : vector<4x44xf32>
    %295 = vector.extract_strided_slice %289 {offsets = [1, 0], sizes = [4, 44], strides = [1, 1]} : vector<6x44xf32> to vector<4x44xf32>
    %cst_76 = arith.constant 0.451862752 : f32
    %296 = vector.broadcast %cst_76 : f32 to vector<4x44xf32>
    %297 = arith.mulf %296, %295 : vector<4x44xf32>
    %298 = arith.addf %294, %297 : vector<4x44xf32>
    %299 = vector.extract_strided_slice %298 {offsets = [0, 0], sizes = [4, 1], strides = [1, 1]} : vector<4x44xf32> to vector<4x1xf32>
    %300 = vector.extract_strided_slice %298 {offsets = [0, 0], sizes = [4, 43], strides = [1, 1]} : vector<4x44xf32> to vector<4x43xf32>
    %301 = tpu.concatenate %299, %300 in 1 : vector<4x1xf32>, vector<4x43xf32> -> vector<4x44xf32>
    %302 = vector.extract_strided_slice %298 {offsets = [0, 1], sizes = [4, 43], strides = [1, 1]} : vector<4x44xf32> to vector<4x43xf32>
    %303 = vector.extract_strided_slice %298 {offsets = [0, 43], sizes = [4, 1], strides = [1, 1]} : vector<4x44xf32> to vector<4x1xf32>
    %304 = tpu.concatenate %302, %303 in 1 : vector<4x43xf32>, vector<4x1xf32> -> vector<4x44xf32>
    %305 = arith.select %284, %304, %301 : vector<4x44xi1>, vector<4x44xf32>
    %306 = arith.select %286, %301, %304 : vector<4x44xi1>, vector<4x44xf32>
    %307 = arith.addf %305, %306 : vector<4x44xf32>
    %cst_77 = arith.constant 0.274068624 : f32
    %308 = vector.broadcast %cst_77 : f32 to vector<4x44xf32>
    %309 = arith.mulf %308, %307 : vector<4x44xf32>
    %cst_78 = arith.constant 0.451862752 : f32
    %310 = vector.broadcast %cst_78 : f32 to vector<4x44xf32>
    %311 = arith.mulf %310, %298 : vector<4x44xf32>
    %312 = arith.addf %309, %311 : vector<4x44xf32>
    %c1_i32_79 = arith.constant 1 : i32
    %313 = vector.extract_strided_slice %312 {offsets = [1, 0], sizes = [1, 44], strides = [1, 1]} : vector<4x44xf32> to vector<1x44xf32>
    %314 = vector.extract_strided_slice %312 {offsets = [2, 0], sizes = [1, 44], strides = [1, 1]} : vector<4x44xf32> to vector<1x44xf32>
    %315 = tpu.concatenate %313, %312, %314 in 0 : vector<1x44xf32>, vector<4x44xf32>, vector<1x44xf32> -> vector<6x44xf32>
    %316 = vector.extract_strided_slice %315 {offsets = [0, 0], sizes = [4, 44], strides = [1, 1]} : vector<6x44xf32> to vector<4x44xf32>
    %317 = vector.extract_strided_slice %315 {offsets = [2, 0], sizes = [4, 44], strides = [1, 1]} : vector<6x44xf32> to vector<4x44xf32>
    %318 = arith.addf %316, %317 : vector<4x44xf32>
    %cst_80 = arith.constant 0.274068624 : f32
    %319 = vector.broadcast %cst_80 : f32 to vector<4x44xf32>
    %320 = arith.mulf %319, %318 : vector<4x44xf32>
    %321 = vector.extract_strided_slice %315 {offsets = [1, 0], sizes = [4, 44], strides = [1, 1]} : vector<6x44xf32> to vector<4x44xf32>
    %cst_81 = arith.constant 0.451862752 : f32
    %322 = vector.broadcast %cst_81 : f32 to vector<4x44xf32>
    %323 = arith.mulf %322, %321 : vector<4x44xf32>
    %324 = arith.addf %320, %323 : vector<4x44xf32>
    %325 = vector.extract_strided_slice %324 {offsets = [0, 0], sizes = [4, 1], strides = [1, 1]} : vector<4x44xf32> to vector<4x1xf32>
    %326 = vector.extract_strided_slice %324 {offsets = [0, 0], sizes = [4, 43], strides = [1, 1]} : vector<4x44xf32> to vector<4x43xf32>
    %327 = tpu.concatenate %325, %326 in 1 : vector<4x1xf32>, vector<4x43xf32> -> vector<4x44xf32>
    %328 = vector.extract_strided_slice %324 {offsets = [0, 1], sizes = [4, 43], strides = [1, 1]} : vector<4x44xf32> to vector<4x43xf32>
    %329 = vector.extract_strided_slice %324 {offsets = [0, 43], sizes = [4, 1], strides = [1, 1]} : vector<4x44xf32> to vector<4x1xf32>
    %330 = tpu.concatenate %328, %329 in 1 : vector<4x43xf32>, vector<4x1xf32> -> vector<4x44xf32>
    %331 = arith.select %284, %330, %327 : vector<4x44xi1>, vector<4x44xf32>
    %332 = arith.select %286, %327, %330 : vector<4x44xi1>, vector<4x44xf32>
    %333 = arith.addf %331, %332 : vector<4x44xf32>
    %cst_82 = arith.constant 0.274068624 : f32
    %334 = vector.broadcast %cst_82 : f32 to vector<4x44xf32>
    %335 = arith.mulf %334, %333 : vector<4x44xf32>
    %cst_83 = arith.constant 0.451862752 : f32
    %336 = vector.broadcast %cst_83 : f32 to vector<4x44xf32>
    %337 = arith.mulf %336, %324 : vector<4x44xf32>
    %338 = arith.addf %335, %337 : vector<4x44xf32>
    %c2_i32_84 = arith.constant 2 : i32
    %339 = vector.extract_strided_slice %338 {offsets = [1, 0], sizes = [1, 44], strides = [1, 1]} : vector<4x44xf32> to vector<1x44xf32>
    %340 = vector.extract_strided_slice %338 {offsets = [2, 0], sizes = [1, 44], strides = [1, 1]} : vector<4x44xf32> to vector<1x44xf32>
    %341 = tpu.concatenate %339, %338, %340 in 0 : vector<1x44xf32>, vector<4x44xf32>, vector<1x44xf32> -> vector<6x44xf32>
    %342 = vector.extract_strided_slice %341 {offsets = [0, 0], sizes = [4, 44], strides = [1, 1]} : vector<6x44xf32> to vector<4x44xf32>
    %343 = vector.extract_strided_slice %341 {offsets = [2, 0], sizes = [4, 44], strides = [1, 1]} : vector<6x44xf32> to vector<4x44xf32>
    %344 = arith.addf %342, %343 : vector<4x44xf32>
    %cst_85 = arith.constant 0.274068624 : f32
    %345 = vector.broadcast %cst_85 : f32 to vector<4x44xf32>
    %346 = arith.mulf %345, %344 : vector<4x44xf32>
    %347 = vector.extract_strided_slice %341 {offsets = [1, 0], sizes = [4, 44], strides = [1, 1]} : vector<6x44xf32> to vector<4x44xf32>
    %cst_86 = arith.constant 0.451862752 : f32
    %348 = vector.broadcast %cst_86 : f32 to vector<4x44xf32>
    %349 = arith.mulf %348, %347 : vector<4x44xf32>
    %350 = arith.addf %346, %349 : vector<4x44xf32>
    %351 = vector.extract_strided_slice %350 {offsets = [0, 0], sizes = [4, 1], strides = [1, 1]} : vector<4x44xf32> to vector<4x1xf32>
    %352 = vector.extract_strided_slice %350 {offsets = [0, 0], sizes = [4, 43], strides = [1, 1]} : vector<4x44xf32> to vector<4x43xf32>
    %353 = tpu.concatenate %351, %352 in 1 : vector<4x1xf32>, vector<4x43xf32> -> vector<4x44xf32>
    %354 = vector.extract_strided_slice %350 {offsets = [0, 1], sizes = [4, 43], strides = [1, 1]} : vector<4x44xf32> to vector<4x43xf32>
    %355 = vector.extract_strided_slice %350 {offsets = [0, 43], sizes = [4, 1], strides = [1, 1]} : vector<4x44xf32> to vector<4x1xf32>
    %356 = tpu.concatenate %354, %355 in 1 : vector<4x43xf32>, vector<4x1xf32> -> vector<4x44xf32>
    %357 = arith.select %284, %356, %353 : vector<4x44xi1>, vector<4x44xf32>
    %358 = arith.select %286, %353, %356 : vector<4x44xi1>, vector<4x44xf32>
    %359 = arith.addf %357, %358 : vector<4x44xf32>
    %cst_87 = arith.constant 0.274068624 : f32
    %360 = vector.broadcast %cst_87 : f32 to vector<4x44xf32>
    %361 = arith.mulf %360, %359 : vector<4x44xf32>
    %cst_88 = arith.constant 0.451862752 : f32
    %362 = vector.broadcast %cst_88 : f32 to vector<4x44xf32>
    %363 = arith.mulf %362, %350 : vector<4x44xf32>
    %364 = arith.addf %361, %363 : vector<4x44xf32>
    %c3_i32_89 = arith.constant 3 : i32
    %365 = vector.extract_strided_slice %364 {offsets = [1, 0], sizes = [1, 44], strides = [1, 1]} : vector<4x44xf32> to vector<1x44xf32>
    %366 = vector.extract_strided_slice %364 {offsets = [2, 0], sizes = [1, 44], strides = [1, 1]} : vector<4x44xf32> to vector<1x44xf32>
    %367 = tpu.concatenate %365, %364, %366 in 0 : vector<1x44xf32>, vector<4x44xf32>, vector<1x44xf32> -> vector<6x44xf32>
    %368 = vector.extract_strided_slice %367 {offsets = [0, 0], sizes = [4, 44], strides = [1, 1]} : vector<6x44xf32> to vector<4x44xf32>
    %369 = vector.extract_strided_slice %367 {offsets = [2, 0], sizes = [4, 44], strides = [1, 1]} : vector<6x44xf32> to vector<4x44xf32>
    %370 = arith.addf %368, %369 : vector<4x44xf32>
    %cst_90 = arith.constant 0.274068624 : f32
    %371 = vector.broadcast %cst_90 : f32 to vector<4x44xf32>
    %372 = arith.mulf %371, %370 : vector<4x44xf32>
    %373 = vector.extract_strided_slice %367 {offsets = [1, 0], sizes = [4, 44], strides = [1, 1]} : vector<6x44xf32> to vector<4x44xf32>
    %cst_91 = arith.constant 0.451862752 : f32
    %374 = vector.broadcast %cst_91 : f32 to vector<4x44xf32>
    %375 = arith.mulf %374, %373 : vector<4x44xf32>
    %376 = arith.addf %372, %375 : vector<4x44xf32>
    %377 = vector.extract_strided_slice %376 {offsets = [0, 0], sizes = [4, 1], strides = [1, 1]} : vector<4x44xf32> to vector<4x1xf32>
    %378 = vector.extract_strided_slice %376 {offsets = [0, 0], sizes = [4, 43], strides = [1, 1]} : vector<4x44xf32> to vector<4x43xf32>
    %379 = tpu.concatenate %377, %378 in 1 : vector<4x1xf32>, vector<4x43xf32> -> vector<4x44xf32>
    %380 = vector.extract_strided_slice %376 {offsets = [0, 1], sizes = [4, 43], strides = [1, 1]} : vector<4x44xf32> to vector<4x43xf32>
    %381 = vector.extract_strided_slice %376 {offsets = [0, 43], sizes = [4, 1], strides = [1, 1]} : vector<4x44xf32> to vector<4x1xf32>
    %382 = tpu.concatenate %380, %381 in 1 : vector<4x43xf32>, vector<4x1xf32> -> vector<4x44xf32>
    %383 = arith.select %284, %382, %379 : vector<4x44xi1>, vector<4x44xf32>
    %384 = arith.select %286, %379, %382 : vector<4x44xi1>, vector<4x44xf32>
    %385 = arith.addf %383, %384 : vector<4x44xf32>
    %cst_92 = arith.constant 0.274068624 : f32
    %386 = vector.broadcast %cst_92 : f32 to vector<4x44xf32>
    %387 = arith.mulf %386, %385 : vector<4x44xf32>
    %cst_93 = arith.constant 0.451862752 : f32
    %388 = vector.broadcast %cst_93 : f32 to vector<4x44xf32>
    %389 = arith.mulf %388, %376 : vector<4x44xf32>
    %390 = arith.addf %387, %389 : vector<4x44xf32>
    %c0_94 = arith.constant 0 : index
    %c0_95 = arith.constant 0 : index
    %391 = vector.load %arg6[%c0_94, %c0_95] : memref<2x4xf32, #tpu.memory_space<vmem>>, vector<2x4xf32>
    %cst_96 = arith.constant dense<0.000000e+00> : vector<2x44xf32>
    %392 = tpu.matmul %391, %390, %cst_96 {dimension_numbers = #tpu.dot_dimension_numbers<[1], [0], [0], [1], [0, 0, 1, 1], [], []>, precision = #tpu.contract_precision<fp32>} : vector<2x4xf32>, vector<4x44xf32>, vector<2x44xf32> -> vector<2x44xf32>
    %c0_97 = arith.constant 0 : index
    %c0_98 = arith.constant 0 : index
    %393 = vector.load %arg7[%c0_97, %c0_98] : memref<44x22xf32, #tpu.memory_space<vmem>>, vector<44x22xf32>
    %cst_99 = arith.constant dense<0.000000e+00> : vector<2x22xf32>
    %394 = tpu.matmul %392, %393, %cst_99 {dimension_numbers = #tpu.dot_dimension_numbers<[1], [0], [0], [1], [0, 0, 1, 1], [], []>, precision = #tpu.contract_precision<fp32>} : vector<2x44xf32>, vector<44x22xf32>, vector<2x22xf32> -> vector<2x22xf32>
    %c0_100 = arith.constant 0 : index
    %c0_101 = arith.constant 0 : index
    %c0_102 = arith.constant 0 : index
    %395 = vector.load %arg10[%c0_100, %c0_101, %c0_102] : memref<1x2x22xf32, #tpu.memory_space<vmem>>, vector<1x2x22xf32>
    %396 = vector.shape_cast %395 : vector<1x2x22xf32> to vector<2x22xf32>
    %397 = vector.shape_cast %394 : vector<2x22xf32> to vector<1x2x22xf32>
    tpu.vector_store %arg10[%c0_100, %c0_101, %c0_102], %397 {strides = array<i32>} : memref<1x2x22xf32, #tpu.memory_space<vmem>>, vector<1x2x22xf32>,
    return
  }
  func.func @transform_0(%arg0: i32) -> (i32, i32, i32) {
    %c0_i32 = arith.constant 0 : i32
    %c0_i32_0 = arith.constant 0 : i32
    %c0_i32_1 = arith.constant 0 : i32
    return %arg0, %c0_i32, %c0_i32_0 : i32, i32, i32
  }
  func.func @transform_1(%arg0: i32) -> (i32, i32) {
    %c0_i32 = arith.constant 0 : i32
    %c0_i32_0 = arith.constant 0 : i32
    %c0_i32_1 = arith.constant 0 : i32
    return %c0_i32, %c0_i32_0 : i32, i32
  }
  func.func @transform_2(%arg0: i32) -> (i32, i32) {
    %c0_i32 = arith.constant 0 : i32
    %c0_i32_0 = arith.constant 0 : i32
    %c0_i32_1 = arith.constant 0 : i32
    return %c0_i32, %c0_i32_0 : i32, i32
  }
  func.func @transform_3(%arg0: i32) -> (i32, i32) {
    %c0_i32 = arith.constant 0 : i32
    %c0_i32_0 = arith.constant 0 : i32
    %c0_i32_1 = arith.constant 0 : i32
    return %c0_i32, %c0_i32_0 : i32, i32
  }
  func.func @transform_4(%arg0: i32) -> (i32, i32) {
    %c0_i32 = arith.constant 0 : i32
    %c0_i32_0 = arith.constant 0 : i32
    %c0_i32_1 = arith.constant 0 : i32
    return %c0_i32, %c0_i32_0 : i32, i32
  }
  func.func @transform_5(%arg0: i32) -> (i32, i32) {
    %c0_i32 = arith.constant 0 : i32
    %c0_i32_0 = arith.constant 0 : i32
    %c0_i32_1 = arith.constant 0 : i32
    return %c0_i32, %c0_i32_0 : i32, i32
  }
  func.func @transform_6(%arg0: i32) -> (i32, i32) {
    %c0_i32 = arith.constant 0 : i32
    %c0_i32_0 = arith.constant 0 : i32
    %c0_i32_1 = arith.constant 0 : i32
    return %c0_i32, %c0_i32_0 : i32, i32
  }
  func.func @transform_7(%arg0: i32) -> (i32, i32, i32) {
    %c0_i32 = arith.constant 0 : i32
    %c0_i32_0 = arith.constant 0 : i32
    %c0_i32_1 = arith.constant 0 : i32
    return %arg0, %c0_i32, %c0_i32_0 : i32, i32, i32
  }
  func.func @transform_8(%arg0: i32) -> (i32, i32, i32) {
    %c0_i32 = arith.constant 0 : i32
    %c0_i32_0 = arith.constant 0 : i32
    %c0_i32_1 = arith.constant 0 : i32
    return %arg0, %c0_i32, %c0_i32_0 : i32, i32, i32
  }
  func.func @transform_9(%arg0: i32) -> (i32, i32, i32) {
    %c0_i32 = arith.constant 0 : i32
    %c0_i32_0 = arith.constant 0 : i32
    %c0_i32_1 = arith.constant 0 : i32
    return %arg0, %c0_i32, %c0_i32_0 : i32, i32, i32
  }
}

</mosaic_0001>

<bundles_post_ra>
// kernel: gauss_pyramid_conv.1
= control target key start
LH: loop header
LB: loop body
LE: loop exit
PB: predicated region body
PF: predicated region fallthrough
CT: control target
= control target key end

     0   :  { %s5648_s30 = smov 0   ;;  %s6911_s0 = inlined_call_operand.vmem [shape: f32[2,16,176], index: 0, kind: input, shape index: {}]   ;;  %s6912_s1 = inlined_call_operand.vmem [shape: f32[8,16], index: 1, kind: input, shape index: {}]   ;;  %s6913_s2 = inlined_call_operand.vmem [shape: f32[176,88], index: 2, kind: input, shape index: {}]   ;;  %s6914_s3 = inlined_call_operand.vmem [shape: f32[4,8], index: 3, kind: input, shape index: {}]   ;;  %s6915_s4 = inlined_call_operand.vmem [shape: f32[88,44], index: 4, kind: input, shape index: {}]   ;;  %s6916_s5 = inlined_call_operand.vmem [shape: f32[2,4], index: 5, kind: input, shape index: {}]   ;;  %s6917_s6 = inlined_call_operand.vmem [shape: f32[44,22], index: 6, kind: input, shape index: {}]   ;;  %s6918_s7 = inlined_call_operand.vmem [shape: f32[2,8,88], index: 7, kind: output, shape index: {0}]   ;;  %s6919_s8 = inlined_call_operand.vmem [shape: f32[2,4,44], index: 8, kind: output, shape index: {1}]   ;;  %s6920_s9 = inlined_call_operand.vmem [shape: f32[2,2,22], index: 9, kind: output, shape index: {2}]  }
   0x1 LB: > { %s4695_s10 = sadd.s32 4294967295, %s5591_s30   ;;  %p4699_p0 = scmp.ge.s32.totalorder %s5591_s30, 1  ;;  %s5591_s30 = sphi %s5648_s30, %s20_s30  }
   0x2   : > { %p292_p1 = scmp.lt.s32.totalorder %s5591_s30, 3 }
   0x4   : > { %p293_p2 = pnand %p4699_p0, %p292_p1 }
   0x6   : > { %296 = sbr.rel (%p293_p2) target bundleno = 3526 (0xdc6), region = 48 }
   0xd   : > { %p335_p3 = scmp.lt.s32.totalorder %s4695_s10, 1  ;;  %vm395_vm0 = vcmask 1040384   ;;  %vm420_vm1 = vcmask 1045504   ;;  %vm455_vm2 = vcmask 1046528   ;;  %s5593_s15 = smov 1   ;;  %v356_v56 = vlaneseq }
   0xe   : > { %s5594_s16 = smov 127   ;;  %vm510_vm3 = vcmask 384000   ;;  %vm486_vm6 = vcmask 7168   ;;  %vm503_vm7 = vcmask 1039360   ;;  %vm970_vm10 = vcmask 130048  }
   0xf   : > { %s7025_s10 = smov (!%p335_p3, %s4695_s10), 1  ;;  %v5688_v57 = vand.u32 127, %v356_v56  ;;  %vm1487_vm11 = vcmask 392192   ;;  %vm2223_vm12 = vcmask 719872   ;;  %vm2273_vm13 = vcmask 711680  }
  0x10   : > { %s4707_s11 = sshll.u32 %s7025_s10, 5  ;;  %s4702_s29 = sshll.u32 %s7025_s10, 3 }
  0x11   : > { %s339_s14 = scalar_lea.vmem %s6911_s0, %s4707_s11  ;;  %6963 = vst [vmem:[#allocation2_spill] sm:$0xff] %v5688_v57  ;;  %v358_v58 = vadd.s32 128, %v5688_v57  ;;  %v363_v63 = vand.u32 15, %v5688_v57  ;;  %s343_s13 = scalar_lea.vmem %s6918_s7, %s4702_s29 }
  0x12   : > { %v352_v0 = vld [vmem:[%s339_s14] sm:$0xff]  ;;  %v354_v1 = vld [vmem:[%s339_s14 + $0x10] sm:$0xff]  ;;  %v353_v2 = vld [vmem:[%s339_s14 + $0x8] sm:$0xff]  ;;  %s4703_s23 = sshll.u32 %s7025_s10, 2  ;;  %s4704_s22 = sshll.u32 %s7025_s10, 1 }
  0x13   : > { %v396_v3 = vrot.slane %v352_v0, 7  ;;  %v398_v4 = vrot.slane %v354_v1, 7  ;;  %v408_v5 = vrot.slane %v354_v1, 5  ;;  %v389_v6 = vrot.slane %v352_v0, 1  ;;  %v355_v7 = vld [vmem:[%s339_s14 + $0x18] sm:$0xff]  ;;  %s347_s26 = scalar_lea.vmem %s6919_s8, %s4703_s23  ;;  %s351_s25 = scalar_lea.vmem %s6920_s9, %s4704_s22 }
  0x14   : > { %v397_v8 = vrot.slane %v353_v2, 7  ;;  %v400_v9 = vrot.slane %v355_v7, 7  ;;  %v409_v10 = vrot.slane %v355_v7, 5  ;;  %v390_v14 = vrot.slane %v353_v2, 1 }
  0x15   : > { %v399_v11 = vsel %vm395_vm0, %v396_v3, %v398_v4  ;;  %v414_v12 = vsel %vm395_vm0, %v398_v4, %v408_v5  ;;  %v412_v13 = vsel %vm395_vm0, %v389_v6, %v396_v3  ;;  %v370_v61 = vand.u32 15, %v358_v58 }
  0x16   : > { %v422_v15 = vrot.slane %v399_v11, 2  ;;  %v427_v16 = vrot.slane %v414_v12, 2  ;;  %v445_v17 = vmul.f32 0.45186275, %v399_v11  ;;  %v447_v18 = vmul.f32 0.45186275, %v414_v12 }
  0x17   : > { %v421_v19 = vrot.slane %v412_v13, 2  ;;  %v443_v20 = vmul.f32 0.45186275, %v412_v13  ;;  %v401_v21 = vsel %vm395_vm0, %v397_v8, %v400_v9  ;;  %v415_v22 = vsel %vm395_vm0, %v400_v9, %v409_v10 }
  0x18   : > { %v428_v23 = vsel %vm420_vm1, %v422_v15, %v427_v16  ;;  %v457_v24 = vrot.slane %v445_v17, 1  ;;  %v462_v25 = vrot.slane %v447_v18, 1  ;;  %v425_v26 = vrot.slane %v401_v21, 2 }
  0x19   : > { %v437_v27 = vadd.f32 %v428_v23, %v399_v11  ;;  %v423_v28 = vsel %vm420_vm1, %v421_v19, %v422_v15  ;;  %v456_v29 = vrot.slane %v443_v20, 1  ;;  %v429_v30 = vrot.slane %v415_v22, 2 }
  0x1a   : > { %v463_v31 = vsel %vm455_vm2, %v457_v24, %v462_v25  ;;  %v435_v32 = vadd.f32 %v423_v28, %v412_v13  ;;  %v446_v33 = vmul.f32 0.45186275, %v401_v21  ;;  %v448_v34 = vmul.f32 0.45186275, %v415_v22 }
  0x1b   : > { %v441_v35 = vmul.f32 0.27406862, %v437_v27  ;;  %v458_v36 = vsel %vm455_vm2, %v456_v29, %v457_v24  ;;  %v430_v37 = vsel %vm420_vm1, %v425_v26, %v429_v30  ;;  %v413_v38 = vsel %vm395_vm0, %v390_v14, %v397_v8 }
  0x1c   : > { %v439_v39 = vmul.f32 0.27406862, %v435_v32  ;;  %v438_v40 = vadd.f32 %v430_v37, %v401_v21  ;;  %v460_v41 = vrot.slane %v446_v33, 1  ;;  %v464_v42 = vrot.slane %v448_v34, 1 }
  0x1d   : > { %v5673_v43 = vadd.f32 %v463_v31, %v441_v35  ;;  %v424_v44 = vrot.slane %v413_v38, 2  ;;  %v444_v45 = vmul.f32 0.45186275, %v413_v38  ;;  %vm5692_vm4 = vcmp.eq.s32.totalorder %v370_v61, 0 }
  0x1e   : > { %v470_v46 = vadd.f32 %v458_v36, %v439_v39  ;;  %v442_v47 = vmul.f32 0.27406862, %v438_v40  ;;  %v465_v48 = vsel %vm455_vm2, %v460_v41, %v464_v42  ;;  %vm5696_vm5 = vcmp.eq.s32.totalorder %v370_v61, 15 }
  0x1f   : > { %482 = vrot.lane.b32.xlu1 %v5673_v43, %s5593_s15  ;;  %v426_v49 = vsel %vm420_vm1, %v424_v44, %v425_v26  ;;  %v459_v50 = vrot.slane %v444_v45, 1  ;;  %vm5706_vm8 = vcmp.eq.s32.totalorder %v363_v63, 0  ;;  %vm5710_vm9 = vcmp.eq.s32.totalorder %v363_v63, 15 }
  0x20   : > { %478 = vrot.lane.b32.xlu0 %v470_v46, %s5593_s15  ;;  %v473_v51 = vadd.f32 %v465_v48, %v442_v47  ;;  %v436_v52 = vadd.f32 %v426_v49, %v413_v38  ;;  %v529_v22 = vmul.f32 0.45186275, %v470_v46  ;;  %v531_v39 = vmul.f32 0.45186275, %v5673_v43 }
  0x21   : > { %v461_v53 = vsel %vm455_vm2, %v459_v50, %v460_v41 }
  0x22   : > { %v440_v54 = vmul.f32 0.27406862, %v436_v52  ;;  %v532_v26 = vmul.f32 0.45186275, %v473_v51 }
  0x23   : > { %484 = vrot.lane.b32.xlu1 %v473_v51, %s5593_s15 }
  0x24   : > { %v471_v55 = vadd.f32 %v461_v53, %v440_v54 }
  0x26   : > { %480 = vrot.lane.b32.xlu0 %v471_v55, %s5593_s15  ;;  %v530_v10 = vmul.f32 0.45186275, %v471_v55 }
  0x27   : > { %497 = vrot.lane.b32.xlu1 %v471_v55, %s5594_s16 }
  0x2a   : > { %495 = vrot.lane.b32.xlu0 %v470_v46, %s5594_s16 }
  0x2b   : > { %501 = vrot.lane.b32.xlu1 %v473_v51, %s5594_s16 }
  0x2e   : > { %499 = vrot.lane.b32.xlu0 %v5673_v43, %s5594_s16 }
  0x91   : > { %v483_v59 = vpop.permute.xlu1 %482 }
  0x92   : > { %v479_v60 = vpop.permute.xlu0 %478  ;;  %v494_v29 = vsel %vm486_vm6, %v5673_v43, %v483_v59 }
  0x93   : > { %v493_v13 = vsel %vm486_vm6, %v470_v46, %v479_v60 }
  0x95   : > { %v485_v62 = vpop.permute.xlu1 %484 }
  0x96   : > { %v488_v14 = vsel %vm486_vm6, %v483_v59, %v485_v62 }
  0x98   : > { %v481_v0 = vpop.permute.xlu0 %480 }
  0x99   : > { %v498_v3 = vpop.permute.xlu1 %497  ;;  %v487_v4 = vsel %vm486_vm6, %v479_v60, %v481_v0 }
  0x9a   : > { %v511_v5 = vsel %vm510_vm3, %v498_v3, %v471_v55 }
  0x9b   : > { %v514_v6 = vsel %vm5692_vm4, %v511_v5, %v487_v4  ;;  %v518_v7 = vsel %vm5696_vm5, %v487_v4, %v511_v5 }
  0x9c   : > { %v522_v11 = vadd.f32 %v518_v7, %v514_v6  ;;  %v496_v12 = vpop.permute.xlu0 %495 }
  0x9d   : > { %v504_v15 = vsel %vm503_vm7, %v496_v12, %v498_v3  ;;  %v502_v16 = vpop.permute.xlu1 %501 }
  0x9e   : > { %v526_v17 = vmul.f32 0.27406862, %v522_v11  ;;  %v513_v18 = vsel %vm5706_vm8, %v504_v15, %v493_v13  ;;  %v517_v19 = vsel %vm5710_vm9, %v493_v13, %v504_v15  ;;  %v512_v20 = vsel %vm510_vm3, %v502_v16, %v473_v51 }
  0x9f   : > { %v521_v21 = vadd.f32 %v517_v19, %v513_v18  ;;  %v516_v23 = vsel %vm5692_vm4, %v512_v20, %v488_v14  ;;  %v520_v24 = vsel %vm5696_vm5, %v488_v14, %v512_v20 }
  0xa0   : > { %v534_v25 = vadd.f32 %v530_v10, %v526_v17  ;;  %v524_v27 = vadd.f32 %v520_v24, %v516_v23  ;;  %v500_v28 = vpop.permute.xlu0 %499 }
  0xa1   : > { %v525_v30 = vmul.f32 0.27406862, %v521_v21  ;;  %v505_v31 = vsel %vm503_vm7, %v500_v28, %v502_v16 }
  0xa2   : > { %v540_v32 = vrot.slane %v534_v25, 1  ;;  %v546_v33 = vrot.slane %v534_v25, 7  ;;  %v528_v34 = vmul.f32 0.27406862, %v524_v27  ;;  %v515_v35 = vsel %vm5706_vm8, %v505_v31, %v494_v29 }
  0xa3   : > { %v533_v36 = vadd.f32 %v529_v22, %v525_v30  ;;  %v519_v37 = vsel %vm5710_vm9, %v494_v29, %v505_v31 }
  0xa4   : > { %v536_v38 = vadd.f32 %v532_v26, %v528_v34  ;;  %v523_v40 = vadd.f32 %v519_v37, %v515_v35  ;;  %v562_v41 = vsel %vm395_vm0, %v540_v32, %v546_v33 }
  0xa5   : > { %v539_v42 = vrot.slane %v533_v36, 1  ;;  %v545_v44 = vrot.slane %v533_v36, 7  ;;  %v592_v48 = vmul.f32 0.45186275, %v562_v41  ;;  %v572_v54 = vrot.slane %v562_v41, 2 }
  0xa6   : > { %v549_v45 = vrot.slane %v536_v38, 7  ;;  %v558_v46 = vrot.slane %v536_v38, 5  ;;  %v527_v47 = vmul.f32 0.27406862, %v523_v40 }
  0xa7   : > { %v561_v52 = vsel %vm395_vm0, %v539_v42, %v545_v44  ;;  %v606_v59 = vrot.slane %v592_v48, 1 }
  0xa8   : > { %v550_v49 = vsel %vm395_vm0, %v546_v33, %v549_v45  ;;  %v564_v50 = vsel %vm395_vm0, %v549_v45, %v558_v46  ;;  %v535_v51 = vadd.f32 %v531_v39, %v527_v47  ;;  %v569_v63 = vrot.slane %v561_v52, 2 }
  0xa9   : > { %v577_v53 = vrot.slane %v564_v50, 2  ;;  %v573_v55 = vrot.slane %v550_v49, 2  ;;  %v594_v43 = vmul.f32 0.45186275, %v550_v49  ;;  %v596_v60 = vmul.f32 0.45186275, %v564_v50 }
  0xaa   : > { %v547_v56 = vrot.slane %v535_v51, 7  ;;  %v557_v58 = vrot.slane %v535_v51, 5  ;;  %v591_v11 = vmul.f32 0.45186275, %v561_v52 }
  0xab   : > { %v574_v61 = vsel %vm420_vm1, %v572_v54, %v573_v55  ;;  %v607_v62 = vrot.slane %v594_v43, 1  ;;  %v578_v0 = vsel %vm420_vm1, %v573_v55, %v577_v53  ;;  %v611_v15 = vrot.slane %v596_v60, 1 }
  0xac   : > { %v548_v3 = vsel %vm395_vm0, %v545_v44, %v547_v56  ;;  %v563_v4 = vsel %vm395_vm0, %v547_v56, %v557_v58  ;;  %v584_v5 = vadd.f32 %v574_v61, %v562_v41  ;;  %v586_v6 = vadd.f32 %v578_v0, %v550_v49 }
  0xad   : > { %v575_v7 = vrot.slane %v563_v4, 2  ;;  %v570_v10 = vrot.slane %v548_v3, 2  ;;  %v593_v12 = vmul.f32 0.45186275, %v548_v3  ;;  %v608_v14 = vsel %vm455_vm2, %v606_v59, %v607_v62 }
  0xae   : > { %v588_v13 = vmul.f32 0.27406862, %v584_v5  ;;  %v595_v19 = vmul.f32 0.45186275, %v563_v4  ;;  %v590_v22 = vmul.f32 0.27406862, %v586_v6  ;;  %v612_v27 = vsel %vm455_vm2, %v607_v62, %v611_v15 }
  0xaf   : > { %v571_v16 = vsel %vm420_vm1, %v569_v63, %v570_v10  ;;  %v604_v17 = vrot.slane %v593_v12, 1  ;;  %v576_v18 = vsel %vm420_vm1, %v570_v10, %v575_v7  ;;  %v603_v24 = vrot.slane %v591_v11, 1 }
  0xb0   : > { %v618_v20 = vadd.f32 %v608_v14, %v588_v13  ;;  %v583_v21 = vadd.f32 %v571_v16, %v561_v52  ;;  %v585_v23 = vadd.f32 %v576_v18, %v548_v3  ;;  %v609_v28 = vrot.slane %v595_v19, 1 }
  0xb1   : > { %v605_v26 = vsel %vm455_vm2, %v603_v24, %v604_v17  ;;  %v620_v30 = vadd.f32 %v612_v27, %v590_v22 }
  0xb2   : > { %627 = vrot.lane.b32.xlu1 %v618_v20, %s5593_s15  ;;  %v587_v25 = vmul.f32 0.27406862, %v583_v21  ;;  %v589_v31 = vmul.f32 0.27406862, %v585_v23  ;;  %v610_v32 = vsel %vm455_vm2, %v604_v17, %v609_v28  ;;  %v674_v46 = vmul.f32 0.45186275, %v618_v20 }
  0xb3   : > { %v676_v61 = vmul.f32 0.45186275, %v620_v30 }
  0xb4   : > { %v617_v29 = vadd.f32 %v605_v26, %v587_v25  ;;  %v619_v33 = vadd.f32 %v610_v32, %v589_v31 }
  0xb6   : > { %625 = vrot.lane.b32.xlu0 %v617_v29, %s5593_s15  ;;  %631 = vrot.lane.b32.xlu1 %v620_v30, %s5593_s15  ;;  %v673_v60 = vmul.f32 0.45186275, %v617_v29  ;;  %v675_v19 = vmul.f32 0.45186275, %v619_v33 }
  0xba   : > { %629 = vrot.lane.b32.xlu0 %v619_v33, %s5593_s15  ;;  %643 = vrot.lane.b32.xlu1 %v618_v20, %s5594_s16 }
  0xbe   : > { %641 = vrot.lane.b32.xlu0 %v617_v29, %s5594_s16  ;;  %647 = vrot.lane.b32.xlu1 %v620_v30, %s5594_s16 }
  0xc2   : > { %645 = vrot.lane.b32.xlu0 %v619_v33, %s5594_s16 }
 0x124   : > { %v628_v34 = vpop.permute.xlu1 %627 }
 0x128   : > { %v626_v35 = vpop.permute.xlu0 %625  ;;  %v632_v36 = vpop.permute.xlu1 %631 }
 0x129   : > { %v633_v39 = vsel %vm486_vm6, %v626_v35, %v628_v34  ;;  %v639_v45 = vsel %vm486_vm6, %v617_v29, %v626_v35 }
 0x12c   : > { %v630_v37 = vpop.permute.xlu0 %629  ;;  %v644_v38 = vpop.permute.xlu1 %643 }
 0x12d   : > { %v655_v40 = vsel %vm510_vm3, %v644_v38, %v618_v20  ;;  %v634_v49 = vsel %vm486_vm6, %v630_v37, %v632_v36  ;;  %v640_v5 = vsel %vm486_vm6, %v619_v33, %v630_v37 }
 0x12e   : > { %v658_v41 = vsel %vm5692_vm4, %v655_v40, %v633_v39  ;;  %v662_v42 = vsel %vm5696_vm5, %v633_v39, %v655_v40 }
 0x12f   : > { %v666_v44 = vadd.f32 %v662_v42, %v658_v41 }
 0x130   : > { %v642_v47 = vpop.permute.xlu0 %641  ;;  %v648_v48 = vpop.permute.xlu1 %647 }
 0x131   : > { %v670_v50 = vmul.f32 0.27406862, %v666_v44  ;;  %v649_v51 = vsel %vm503_vm7, %v642_v47, %v644_v38  ;;  %v656_v52 = vsel %vm510_vm3, %v648_v48, %v620_v30 }
 0x132   : > { %v657_v53 = vsel %vm5706_vm8, %v649_v51, %v639_v45  ;;  %v661_v54 = vsel %vm5710_vm9, %v639_v45, %v649_v51  ;;  %v660_v55 = vsel %vm5692_vm4, %v656_v52, %v634_v49  ;;  %v664_v43 = vsel %vm5696_vm5, %v634_v49, %v656_v52 }
 0x133   : > { %v678_v56 = vadd.f32 %v674_v46, %v670_v50  ;;  %v665_v58 = vadd.f32 %v661_v54, %v657_v53  ;;  %v668_v59 = vadd.f32 %v664_v43, %v660_v55 }
 0x134   : > { %v646_v62 = vpop.permute.xlu0 %645 }
 0x135   : > { %v684_v63 = vrot.slane %v678_v56, 1  ;;  %v690_v0 = vrot.slane %v678_v56, 7  ;;  %v669_v3 = vmul.f32 0.27406862, %v665_v58  ;;  %v672_v4 = vmul.f32 0.27406862, %v668_v59 }
 0x136   : > { %v650_v6 = vsel %vm503_vm7, %v646_v62, %v648_v48 }
 0x137   : > { %v677_v7 = vadd.f32 %v673_v60, %v669_v3  ;;  %v680_v10 = vadd.f32 %v676_v61, %v672_v4  ;;  %v659_v11 = vsel %vm5706_vm8, %v650_v6, %v640_v5  ;;  %v663_v12 = vsel %vm5710_vm9, %v640_v5, %v650_v6 }
 0x138   : > { %v667_v13 = vadd.f32 %v663_v12, %v659_v11  ;;  %v706_v14 = vsel %vm395_vm0, %v684_v63, %v690_v0 }
 0x139   : > { %v683_v15 = vrot.slane %v677_v7, 1  ;;  %v689_v16 = vrot.slane %v677_v7, 7  ;;  %v693_v17 = vrot.slane %v680_v10, 7  ;;  %v702_v18 = vrot.slane %v680_v10, 5 }
 0x13a   : > { %v671_v20 = vmul.f32 0.27406862, %v667_v13  ;;  %v716_v21 = vrot.slane %v706_v14, 2  ;;  %v736_v24 = vmul.f32 0.45186275, %v706_v14 }
 0x13b   : > { %v694_v22 = vsel %vm395_vm0, %v690_v0, %v693_v17  ;;  %v708_v23 = vsel %vm395_vm0, %v693_v17, %v702_v18  ;;  %v705_v25 = vsel %vm395_vm0, %v683_v15, %v689_v16 }
 0x13c   : > { %v721_v26 = vrot.slane %v708_v23, 2  ;;  %v679_v27 = vadd.f32 %v675_v19, %v671_v20  ;;  %v717_v28 = vrot.slane %v694_v22, 2  ;;  %v738_v29 = vmul.f32 0.45186275, %v694_v22 }
 0x13d   : > { %v740_v30 = vmul.f32 0.45186275, %v708_v23  ;;  %v750_v36 = vrot.slane %v736_v24, 1  ;;  %v713_v37 = vrot.slane %v705_v25, 2  ;;  %v735_v41 = vmul.f32 0.45186275, %v705_v25 }
 0x13e   : > { %v691_v31 = vrot.slane %v679_v27, 7  ;;  %v701_v32 = vrot.slane %v679_v27, 5  ;;  %v718_v34 = vsel %vm420_vm1, %v716_v21, %v717_v28  ;;  %v751_v35 = vrot.slane %v738_v29, 1 }
 0x13f   : > { %v728_v33 = vadd.f32 %v718_v34, %v706_v14  ;;  %v722_v38 = vsel %vm420_vm1, %v717_v28, %v721_v26  ;;  %v755_v50 = vrot.slane %v740_v30, 1  ;;  %v747_v58 = vrot.slane %v735_v41, 1 }
 0x140   : > { %v692_v39 = vsel %vm395_vm0, %v689_v16, %v691_v31  ;;  %v707_v40 = vsel %vm395_vm0, %v691_v31, %v701_v32  ;;  %v730_v42 = vadd.f32 %v722_v38, %v694_v22  ;;  %v752_v48 = vsel %vm455_vm2, %v750_v36, %v751_v35 }
 0x141   : > { %v719_v44 = vrot.slane %v707_v40, 2  ;;  %v732_v45 = vmul.f32 0.27406862, %v728_v33  ;;  %v714_v46 = vrot.slane %v692_v39, 2  ;;  %v737_v47 = vmul.f32 0.45186275, %v692_v39 }
 0x142   : > { %v734_v49 = vmul.f32 0.27406862, %v730_v42  ;;  %v739_v51 = vmul.f32 0.45186275, %v707_v40  ;;  %v756_v60 = vsel %vm455_vm2, %v751_v35, %v755_v50 }
 0x143   : > { %v762_v52 = vadd.f32 %v752_v48, %v732_v45  ;;  %v715_v53 = vsel %vm420_vm1, %v713_v37, %v714_v46  ;;  %v748_v54 = vrot.slane %v737_v47, 1  ;;  %v720_v55 = vsel %vm420_vm1, %v714_v46, %v719_v44 }
 0x144   : > { %v727_v43 = vadd.f32 %v715_v53, %v705_v25  ;;  %v729_v56 = vadd.f32 %v720_v55, %v692_v39  ;;  %v764_v62 = vadd.f32 %v756_v60, %v734_v49  ;;  %v753_v63 = vrot.slane %v739_v51, 1 }
 0x145   : > { %771 = vrot.lane.b32.xlu1 %v762_v52, %s5593_s15  ;;  %v749_v61 = vsel %vm455_vm2, %v747_v58, %v748_v54  ;;  %v818_v21 = vmul.f32 0.45186275, %v762_v52 }
 0x146   : > { %v731_v59 = vmul.f32 0.27406862, %v727_v43  ;;  %v733_v3 = vmul.f32 0.27406862, %v729_v56  ;;  %v754_v4 = vsel %vm455_vm2, %v748_v54, %v753_v63  ;;  %v820_v33 = vmul.f32 0.45186275, %v764_v62 }
 0x148   : > { %v761_v0 = vadd.f32 %v749_v61, %v731_v59  ;;  %v763_v5 = vadd.f32 %v754_v4, %v733_v3 }
 0x149   : > { %775 = vrot.lane.b32.xlu1 %v764_v62, %s5593_s15 }
 0x14a   : > { %769 = vrot.lane.b32.xlu0 %v761_v0, %s5593_s15  ;;  %v817_v40 = vmul.f32 0.45186275, %v761_v0  ;;  %v819_v53 = vmul.f32 0.45186275, %v763_v5 }
 0x14d   : > { %787 = vrot.lane.b32.xlu1 %v762_v52, %s5594_s16 }
 0x14e   : > { %773 = vrot.lane.b32.xlu0 %v763_v5, %s5593_s15 }
 0x151   : > { %791 = vrot.lane.b32.xlu1 %v764_v62, %s5594_s16 }
 0x152   : > { %785 = vrot.lane.b32.xlu0 %v761_v0, %s5594_s16 }
 0x156   : > { %789 = vrot.lane.b32.xlu0 %v763_v5, %s5594_s16 }
 0x1b7   : > { %v772_v6 = vpop.permute.xlu1 %771 }
 0x1bb   : > { %v776_v7 = vpop.permute.xlu1 %775 }
 0x1bc   : > { %v770_v10 = vpop.permute.xlu0 %769 }
 0x1bd   : > { %v777_v12 = vsel %vm486_vm6, %v770_v10, %v772_v6  ;;  %v783_v24 = vsel %vm486_vm6, %v761_v0, %v770_v10 }
 0x1bf   : > { %v788_v11 = vpop.permute.xlu1 %787 }
 0x1c0   : > { %v774_v13 = vpop.permute.xlu0 %773  ;;  %v799_v14 = vsel %vm510_vm3, %v788_v11, %v762_v52 }
 0x1c1   : > { %v802_v15 = vsel %vm5692_vm4, %v799_v14, %v777_v12  ;;  %v806_v16 = vsel %vm5696_vm5, %v777_v12, %v799_v14  ;;  %v778_v19 = vsel %vm486_vm6, %v774_v13, %v776_v7  ;;  %v784_v38 = vsel %vm486_vm6, %v763_v5, %v774_v13 }
 0x1c2   : > { %v810_v17 = vadd.f32 %v806_v16, %v802_v15 }
 0x1c3   : > { %v792_v18 = vpop.permute.xlu1 %791 }
 0x1c4   : > { %v814_v20 = vmul.f32 0.27406862, %v810_v17  ;;  %v786_v22 = vpop.permute.xlu0 %785  ;;  %v800_v23 = vsel %vm510_vm3, %v792_v18, %v764_v62 }
 0x1c5   : > { %v793_v25 = vsel %vm503_vm7, %v786_v22, %v788_v11  ;;  %v804_v26 = vsel %vm5692_vm4, %v800_v23, %v778_v19  ;;  %v808_v27 = vsel %vm5696_vm5, %v778_v19, %v800_v23 }
 0x1c6   : > { %v822_v28 = vadd.f32 %v818_v21, %v814_v20  ;;  %v801_v29 = vsel %vm5706_vm8, %v793_v25, %v783_v24  ;;  %v805_v30 = vsel %vm5710_vm9, %v783_v24, %v793_v25  ;;  %v812_v31 = vadd.f32 %v808_v27, %v804_v26 }
 0x1c7   : > { %v809_v32 = vadd.f32 %v805_v30, %v801_v29 }
 0x1c8   : > { %v828_v34 = vrot.slane %v822_v28, 1  ;;  %v834_v35 = vrot.slane %v822_v28, 7  ;;  %v816_v36 = vmul.f32 0.27406862, %v812_v31  ;;  %v790_v37 = vpop.permute.xlu0 %789 }
 0x1c9   : > { %v813_v39 = vmul.f32 0.27406862, %v809_v32  ;;  %v794_v41 = vsel %vm503_vm7, %v790_v37, %v792_v18 }
 0x1ca   : > { %v824_v42 = vadd.f32 %v820_v33, %v816_v36  ;;  %v803_v44 = vsel %vm5706_vm8, %v794_v41, %v784_v38  ;;  %v807_v45 = vsel %vm5710_vm9, %v784_v38, %v794_v41  ;;  %v850_v48 = vsel %vm395_vm0, %v828_v34, %v834_v35 }
 0x1cb   : > { %v821_v46 = vadd.f32 %v817_v40, %v813_v39  ;;  %v811_v47 = vadd.f32 %v807_v45, %v803_v44  ;;  %v860_v56 = vrot.slane %v850_v48, 2  ;;  %v880_v58 = vmul.f32 0.45186275, %v850_v48  ;;  %v5874_v44 = vld [vmem:[%s6913_s2 + $0x8] sm:$0xff]  ;;  %v5879_v45 = vld [vmem:[%s6913_s2 + $0x10] sm:$0xff] }
 0x1cc   : > { %v837_v49 = vrot.slane %v824_v42, 7  ;;  %v846_v50 = vrot.slane %v824_v42, 5  ;;  %v6929_v41 = vmov 0.0   ;;  %v5869_v42 = vld [vmem:[%s6913_s2] sm:$0xff] }
 0x1cd   : > { %v827_v51 = vrot.slane %v821_v46, 1  ;;  %v833_v52 = vrot.slane %v821_v46, 7  ;;  %v815_v54 = vmul.f32 0.27406862, %v811_v47  ;;  %v894_v10 = vrot.slane %v880_v58, 1  ;;  %1138 = vmatprep.mubr.f32.mxu0 %v6929_v41  ;;  %1042 = vmatprep.mubr.f32.mxu1 %v6929_v41 }
 0x1ce   : > { %v838_v55 = vsel %vm395_vm0, %v834_v35, %v837_v49  ;;  %v852_v43 = vsel %vm395_vm0, %v837_v49, %v846_v50  ;;  %v1492_v46 = vand.u32 4294901760, %v5869_v42  ;;  %v1495_v47 = vand.u32 4294901760, %v5874_v44  ;;  %v5892_v50 = vld [vmem:[%s6913_s2 + $0x20] sm:$0xff] }
 0x1cf   : > { %v865_v59 = vrot.slane %v852_v43, 2  ;;  %v823_v60 = vadd.f32 %v819_v53, %v815_v54  ;;  %v861_v61 = vrot.slane %v838_v55, 2  ;;  %v882_v62 = vmul.f32 0.45186275, %v838_v55  ;;  %v5904_v54 = vld [vmem:[%s6913_s2 + $0x30] sm:$0xff] }
 0x1d0   : > { %v849_v63 = vsel %vm395_vm0, %v827_v51, %v833_v52  ;;  %v884_v0 = vmul.f32 0.45186275, %v852_v43  ;;  %v1498_v49 = vand.u32 4294901760, %v5879_v45  ;;  %v5897_v51 = vld [vmem:[%s6913_s2 + $0x28] sm:$0xff]  ;;  %v1504_v53 = vand.u32 4294901760, %v5892_v50  ;;  %v5914_v43 = vld [vmem:[%s6913_s2 + $0x40] sm:$0xff] }
 0x1d1   : > { %v835_v3 = vrot.slane %v823_v60, 7  ;;  %v845_v4 = vrot.slane %v823_v60, 5  ;;  %v862_v6 = vsel %vm420_vm1, %v860_v56, %v861_v61  ;;  %v895_v7 = vrot.slane %v882_v62, 1  ;;  %v5940_v62 = vld [vmem:[%s6913_s2 + $0x50] sm:$0xff] }
 0x1d2   : > { %v872_v5 = vadd.f32 %v862_v6, %v850_v48  ;;  %v857_v11 = vrot.slane %v849_v63, 2  ;;  %v866_v12 = vsel %vm420_vm1, %v861_v61, %v865_v59  ;;  %v879_v15 = vmul.f32 0.45186275, %v849_v63  ;;  %v5886_v48 = vld [vmem:[%s6913_s2 + $0x18] sm:$0xff]  ;;  %v5935_v61 = vld [vmem:[%s6913_s2 + $0x48] sm:$0xff] }
 0x1d3   : > { %v836_v13 = vsel %vm395_vm0, %v833_v52, %v835_v3  ;;  %v851_v14 = vsel %vm395_vm0, %v835_v3, %v845_v4  ;;  %v874_v16 = vadd.f32 %v866_v12, %v838_v55  ;;  %v896_v21 = vsel %vm455_vm2, %v894_v10, %v895_v7  ;;  %v5909_v55 = vld [vmem:[%s6913_s2 + $0x38] sm:$0xff]  ;;  %v5960_v4 = vld [vmem:[%s6913_s2 + $0x60] sm:$0xff] }
 0x1d4   : > { %v863_v17 = vrot.slane %v851_v14, 2  ;;  %v876_v18 = vmul.f32 0.27406862, %v872_v5  ;;  %v858_v19 = vrot.slane %v836_v13, 2  ;;  %v881_v20 = vmul.f32 0.45186275, %v836_v13 }
 0x1d5   : > { %v878_v22 = vmul.f32 0.27406862, %v874_v16  ;;  %v899_v23 = vrot.slane %v884_v0, 1  ;;  %v883_v24 = vmul.f32 0.45186275, %v851_v14  ;;  %v891_v31 = vrot.slane %v879_v15, 1 }
 0x1d6   : > { %v5835_v25 = vadd.f32 %v896_v21, %v876_v18  ;;  %v859_v26 = vsel %vm420_vm1, %v857_v11, %v858_v19  ;;  %v892_v27 = vrot.slane %v881_v20, 1  ;;  %v864_v28 = vsel %vm420_vm1, %v858_v19, %v863_v17  ;;  %v5976_v14 = vld [vmem:[%s6913_s2 + $0x68] sm:$0xff] }
 0x1d7   : > { %v871_v29 = vadd.f32 %v859_v26, %v849_v63  ;;  %v873_v30 = vadd.f32 %v864_v28, %v836_v13  ;;  %v900_v34 = vsel %vm455_vm2, %v895_v7, %v899_v23  ;;  %v897_v36 = vrot.slane %v883_v24, 1  ;;  %v5945_v63 = vld [vmem:[%s6913_s2 + $0x58] sm:$0xff] }
 0x1d8   : > { %915 = vrot.lane.b32.xlu1 %v5835_v25, %s5593_s15  ;;  %v893_v35 = vsel %vm455_vm2, %v891_v31, %v892_v27  ;;  %v5843_v33 = vadd.f32 %v900_v34, %v878_v22  ;;  %v1501_v52 = vand.u32 4294901760, %v5886_v48  ;;  %v5919_v56 = vsub.f32 %v5869_v42, %v1492_v46 }
 0x1d9   : > { %v875_v32 = vmul.f32 0.27406862, %v871_v29  ;;  %v877_v38 = vmul.f32 0.27406862, %v873_v30  ;;  %v898_v39 = vsel %vm455_vm2, %v892_v27, %v897_v36  ;;  %v5924_v58 = vsub.f32 %v5874_v44, %v1495_v47 }
 0x1da   : > { %v5929_v59 = vsub.f32 %v5879_v45, %v1498_v49  ;;  %v6931_v60 = vand.u32 4294901760, %v5897_v51  ;;  %v5950_v0 = vsub.f32 %v5886_v48, %v1501_v52  ;;  %v5955_v3 = vsub.f32 %v5892_v50, %v1504_v53 }
 0x1db   : > { %v5845_v37 = vadd.f32 %v893_v35, %v875_v32  ;;  %v5852_v40 = vadd.f32 %v898_v39, %v877_v38  ;;  %v6928_v7 = vand.u32 4294901760, %v5904_v54  ;;  %v6927_v5 = vand.u32 4294901760, %v5909_v55 }
 0x1dc   : > { %919 = vrot.lane.b32.xlu1 %v5843_v33, %s5593_s15  ;;  %v5965_v6 = vsub.f32 %v5897_v51, %v6931_v60  ;;  %v6926_v10 = vand.u32 4294901760, %v5914_v43  ;;  %v6925_v11 = vand.u32 4294901760, %v5935_v61  ;;  %v6924_v12 = vand.u32 4294901760, %v5940_v62 }
 0x1dd   : > { %913 = vrot.lane.b32.xlu0 %v5845_v37, %s5593_s15  ;;  %v6923_v13 = vand.u32 4294901760, %v5945_v63  ;;  %v5981_v15 = vsub.f32 %v5904_v54, %v6928_v7  ;;  %v5986_v16 = vsub.f32 %v5909_v55, %v6927_v5  ;;  %v6922_v18 = vand.u32 4294901760, %v5960_v4 }
 0x1de   : > { %v5991_v17 = vsub.f32 %v5914_v43, %v6926_v10  ;;  %v5997_v19 = vsub.f32 %v5935_v61, %v6925_v11  ;;  %v6002_v20 = vsub.f32 %v5940_v62, %v6924_v12  ;;  %v6921_v22 = vand.u32 4294901760, %v5976_v14 }
 0x1df   : > { %v6007_v21 = vsub.f32 %v5945_v63, %v6923_v13  ;;  %v6013_v23 = vsub.f32 %v5960_v4, %v6922_v18  ;;  %v964_v36 = vmul.f32 0.45186275, %v5843_v33  ;;  %v963_v5 = vmul.f32 0.45186275, %v5852_v40 }
 0x1e0   : > { %935 = vrot.lane.b32.xlu1 %v5843_v33, %s5594_s16  ;;  %v6018_v24 = vsub.f32 %v5976_v14, %v6921_v22  ;;  %v6074_v42 = vpack.c.bf16 %v1501_v52, %v1498_v49  ;;  %v6973_v48 = vmov 0.0   ;;  %v6974_v49 = vand.u32 4294901760, %v5904_v54 }
 0x1e1   : > { %917 = vrot.lane.b32.xlu0 %v5852_v40, %s5593_s15  ;;  %v6975_v52 = vand.u32 4294901760, %v5909_v55  ;;  %v6976_v50 = vand.u32 4294901760, %v5914_v43  ;;  %v6978_v54 = vand.u32 4294901760, %v5940_v62  ;;  %v6979_v55 = vand.u32 4294901760, %v5945_v63  ;;  %v1479_v62 = vld [vmem:[%s6913_s2 + $0x70] sm:$0xff]  ;;  %v1480_v63 = vld [vmem:[%s6913_s2 + $0x78] sm:$0xff] }
 0x1e3   : > { %v6110_v43 = vpack.c.bf16 %v6979_v55, %v6978_v54  ;;  %v6950_v54 = vand.u32 4294901760, %v5950_v0 }
 0x1e4   : > { %933 = vrot.lane.b32.xlu1 %v5852_v40, %s5594_s16 }
 0x1e5   : > { %931 = vrot.lane.b32.xlu0 %v5835_v25, %s5594_s16 }
 0x1e9   : > { %929 = vrot.lane.b32.xlu0 %v5845_v37, %s5594_s16 }
 0x24a   : > { %v916_v26 = vpop.permute.xlu1 %915 }
 0x24e   : > { %v920_v27 = vpop.permute.xlu1 %919 }
 0x24f   : > { %v914_v28 = vpop.permute.xlu0 %913 }
 0x250   : > { %v921_v22 = vsel %vm486_vm6, %v914_v28, %v916_v26  ;;  %v927_v41 = vsel %vm486_vm6, %v5845_v37, %v914_v28 }
 0x252   : > { %v936_v29 = vpop.permute.xlu1 %935 }
 0x253   : > { %v918_v30 = vpop.permute.xlu0 %917  ;;  %v944_v31 = vsel %vm510_vm3, %v936_v29, %v5843_v33 }
 0x254   : > { %v922_v32 = vsel %vm486_vm6, %v918_v30, %v920_v27  ;;  %v928_v18 = vsel %vm486_vm6, %v5852_v40, %v918_v30  ;;  %v969_v27 = vld [vmem:[%s6912_s1] sm:$0xff] }
 0x255   : > { %v948_v34 = vsel %vm5692_vm4, %v944_v31, %v922_v32  ;;  %v952_v35 = vsel %vm5696_vm5, %v922_v32, %v944_v31 }
 0x256   : > { %v956_v38 = vadd.f32 %v952_v35, %v948_v34  ;;  %v934_v39 = vpop.permute.xlu1 %933 }
 0x257   : > { %v932_v13 = vpop.permute.xlu0 %931  ;;  %v938_v12 = vsel %vm503_vm7, %v934_v39, %v936_v29  ;;  %v972_v39 = vsel %vm970_vm10, %v969_v27, 0  ;;  %vm4578_vm10 = vcmask 173056  }
 0x258   : > { %v960_v11 = vmul.f32 0.27406862, %v956_v38  ;;  %v943_v31 = vsel %vm510_vm3, %v932_v13, %v5835_v25  ;;  %v947_v33 = vsel %vm5706_vm8, %v938_v12, %v928_v18  ;;  %v951_v26 = vsel %vm5710_vm9, %v928_v18, %v938_v12 }
 0x259   : > { %v946_v30 = vsel %vm5692_vm4, %v943_v31, %v921_v22  ;;  %v950_v29 = vsel %vm5696_vm5, %v921_v22, %v943_v31  ;;  %v955_v32 = vadd.f32 %v951_v26, %v947_v33  ;;  %v962_v38 = vmul.f32 0.45186275, %v5835_v25 }
 0x25a   : > { %v968_v34 = vadd.f32 %v964_v36, %v960_v11  ;;  %v954_v35 = vadd.f32 %v950_v29, %v946_v30  ;;  %v6054_v22 = vand.u32 4294901760, %v972_v39  ;;  %vm5597_vm3 = vmmov 0  }
 0x25b   : > { %v959_v10 = vmul.f32 0.27406862, %v955_v32  ;;  %v930_v7 = vpop.permute.xlu0 %929  ;;  %vm3469_vm4 = vcmask 1044480   ;;  %vm3489_vm5 = vcmask 351232  }
 0x25c   : > { %v958_v12 = vmul.f32 0.27406862, %v954_v35  ;;  %v937_v1 = vsel %vm503_vm7, %v930_v7, %v932_v13  ;;  %v978_v18 = vand.u32 4294901760, %v968_v34  ;;  %v6057_v31 = vsub.f32 %v972_v39, %v6054_v22 }
 0x25d   : > { %v967_v60 = vadd.f32 %v963_v5, %v959_v10  ;;  %v945_v2 = vsel %vm5706_vm8, %v937_v1, %v927_v41  ;;  %v949_v11 = vsel %vm5710_vm9, %v927_v41, %v937_v1  ;;  %v961_v7 = vmul.f32 0.45186275, %v5845_v37 }
 0x25e   : > { %v966_v25 = vadd.f32 %v962_v38, %v958_v12  ;;  %v953_v36 = vadd.f32 %v949_v11, %v945_v2  ;;  %v1067_v40 = vsub.f32 %v968_v34, %v978_v18  ;;  %v1045_v8 = vand.u32 4294901760, %v6057_v31 }
 0x25f   : > { %v980_v27 = vand.u32 4294901760, %v967_v60  ;;  %v6954_v11 = vmov 0.0|0.0   ;;  %vm3600_vm9 = vcmask 31744  }
 0x260   : > { %v957_v28 = vmul.f32 0.27406862, %v953_v36  ;;  %v974_v13 = vand.u32 4294901760, %v966_v25  ;;  %v1068_v5 = vand.u32 4294901760, %v1067_v40  ;;  %v1046_v29 = vsub.f32 %v6057_v31, %v1045_v8 }
 0x261   : > { %v1073_v10 = vsub.f32 %v967_v60, %v980_v27 }
 0x262   : > { %v965_v33 = vadd.f32 %v961_v7, %v957_v28  ;;  %v5146_v9 = vpack.c.bf16 %v978_v18, %v974_v13  ;;  %v1055_v41 = vsub.f32 %v966_v25, %v974_v13  ;;  %v1069_v26 = vsub.f32 %v1067_v40, %v1068_v5 }
 0x263   : > { %v1074_v30 = vand.u32 4294901760, %v1073_v10  ;;  %v1047_v1 = vand.u32 4294901760, %v1046_v29  ;;  %v6066_v18 = vpack.c.bf16 %v1495_v47, %v1492_v46  ;;  %v6972_v47 = vand.u32 4294901760, %v5897_v51  ;;  %v1484_v29 = vld [vmem:[%s6913_s2 + $0x98] sm:$0xff] }
 0x264   : > { %5147 = vmatprep.subr.bf16.mxu1 %v5146_v9  ;;  %v976_v32 = vand.u32 4294901760, %v965_v33  ;;  %v1056_v34 = vand.u32 4294901760, %v1055_v41  ;;  %v1070_v35 = vand.u32 4294901760, %v1069_v26  ;;  %v5154_v46 = vpack.c.bf16 %v1067_v40, %v1055_v41 }
 0x265   : > { %v1075_v37 = vsub.f32 %v1073_v10, %v1074_v30  ;;  %v6083_v7 = vpack.c.bf16 %v6972_v47, %v1504_v53  ;;  %v6092_v40 = vpack.c.bf16 %v6975_v52, %v6974_v49  ;;  %v6977_v51 = vand.u32 4294901760, %v5935_v61 }
 0x266   : > { %v5148_v39 = vpack.c.bf16 %v980_v27, %v976_v32  ;;  %v1061_v38 = vsub.f32 %v965_v33, %v976_v32  ;;  %v1057_v12 = vsub.f32 %v1055_v41, %v1056_v34  ;;  %v5162_v13 = vpack.c.bf16 %v1068_v5, %v1056_v34  ;;  %v1481_v33 = vld [vmem:[%s6913_s2 + $0x80] sm:$0xff] }
 0x267   : > { %v1076_v28 = vand.u32 4294901760, %v1075_v37  ;;  %v6100_v53 = vpack.c.bf16 %v6977_v51, %v6976_v50  ;;  %v6980_v61 = vand.u32 4294901760, %v5960_v4  ;;  %v1534_v4 = vand.u32 4294901760, %v1479_v62  ;;  %v1485_v37 = vld [vmem:[%s6913_s2 + $0xa0] sm:$0xff] }
 0x268   : > { %5149 = vmatpush1.bf16.msra.mxu1 %v5148_v39  ;;  %v1058_v60 = vand.u32 4294901760, %v1057_v12  ;;  %v1062_v2 = vand.u32 4294901760, %v1061_v38  ;;  %v5156_v45 = vpack.c.bf16 %v1073_v10, %v1061_v38  ;;  %v1549_v34 = vand.u32 4294901760, %v1484_v29 }
 0x269   : > { %5170 = vmatprep.subr.bf16.mxu1 %v6954_v11 }
 0x26a   : > { %v5150_v25 = vpack.c.bf16 %v1070_v35, %v1058_v60  ;;  %v1063_v36 = vsub.f32 %v1061_v38, %v1062_v2  ;;  %v5164_v10 = vpack.c.bf16 %v1074_v30, %v1062_v2  ;;  %v1483_v30 = vld [vmem:[%s6913_s2 + $0x90] sm:$0xff]  ;;  %v6154_v35 = vsub.f32 %v1479_v62, %v1534_v4 }
 0x26b   : > { %1048 = vmatmul.mubr.f32.vlgmr.msra.gmra.mrb[0].mxu1 %v1047_v1  ;;  %v1546_v32 = vand.u32 4294901760, %v1483_v30  ;;  %v1486_v1 = vld [vmem:[%s6913_s2 + $0xa8] sm:$0xff] }
 0x26c   : > { %5151 = vmatprep.subr.bf16.mxu0 %v5150_v25  ;;  %v1064_v27 = vand.u32 4294901760, %v1063_v36  ;;  %5172 = vmatpush1.bf16.msra.mxu1 %v6066_v18  ;;  %v6172_v25 = vsub.f32 %v1484_v29, %v1549_v34  ;;  %v1552_v36 = vand.u32 4294901760, %v1485_v37  ;;  %v6941_v29 = vand.u32 4294901760, %v5986_v16 }
 0x26d   : > { %5173 = vmatprep.subr.bf16.mxu1 %v6954_v11  ;;  %v6168_v60 = vpack.c.bf16 %v1549_v34, %v1546_v32  ;;  %v6170_v2 = vsub.f32 %v1483_v30, %v1546_v32  ;;  %v6944_v30 = vand.u32 4294901760, %v5981_v15 }
 0x26e   : > { %v5152_v44 = vpack.c.bf16 %v1076_v28, %v1064_v27  ;;  %6985 = vst [vmem:[#allocation6_spill] sm:$0xff] %v6172_v25  ;;  %v1555_v28 = vand.u32 4294901760, %v1486_v1  ;;  %v6953_v27 = vand.u32 4294901760, %v5919_v56 }
 0x26f   : > { %6984 = vst [vmem:[#allocation5_spill] sm:$0xff] %v6170_v2  ;;  %v1639_v34 = vsub.f32 %v5981_v15, %v6944_v30 }
 0x270   : > { %5153 = vmatpush1.bf16.msra.mxu0 %v5152_v44  ;;  %5175 = vmatpush1.bf16.msra.mxu1 %v6074_v42  ;;  %v6952_v44 = vand.u32 4294901760, %v5924_v58  ;;  %v6180_v47 = vpack.c.bf16 %v1555_v28, %v1552_v36  ;;  %v1597_v49 = vsub.f32 %v5919_v56, %v6953_v27 }
 0x271   : > { %5155 = vmatprep.subr.bf16.mxu0 %v5154_v46  ;;  %5176 = vmatprep.subr.bf16.mxu1 %v6954_v11  ;;  %v6177_v46 = vsub.f32 %v1485_v37, %v1552_v36  ;;  %v1646_v37 = vsub.f32 %v5986_v16, %v6941_v29 }
 0x272   : > { %v1604_v52 = vsub.f32 %v5924_v58, %v6952_v44  ;;  %v1598_v50 = vand.u32 4294901760, %v1597_v49  ;;  %v6937_v49 = vand.u32 4294901760, %v5997_v19 }
 0x273   : > { %1140 = vmatmul.mubr.f32.vlgmr.msra.gmra.mrb[0].mxu0 %v6054_v22  ;;  %v1647_v36 = vand.u32 4294901760, %v1646_v37  ;;  %v6933_v37 = vand.u32 4294901760, %v6013_v23  ;;  %v6945_v29 = vand.u32 4294901760, %v6177_v46 }
 0x274   : > { %5157 = vmatpush1.bf16.msra.mxu0 %v5156_v45  ;;  %1218 = vmatprep.mubr.f32.mxu0 %v6973_v48  ;;  %v6182_v45 = vsub.f32 %v1486_v1, %v1555_v28  ;;  %v1605_v51 = vand.u32 4294901760, %v1604_v52  ;;  %v1640_v1 = vand.u32 4294901760, %v1639_v34  ;;  %v6940_v28 = vand.u32 4294901760, %v5991_v17 }
 0x275   : > { %5159 = vmatprep.subr.bf16.mxu0 %v5146_v9  ;;  %5178 = vmatpush1.bf16.msra.mxu1 %v6083_v7 }
 0x276   : > { %5179 = vmatprep.subr.bf16.mxu1 %v6954_v11  ;;  %v6194_v55 = vpack.c.bf16 %v1605_v51, %v1598_v50  ;;  %v6224_v52 = vpack.c.bf16 %v1647_v36, %v1640_v1  ;;  %v1653_v50 = vsub.f32 %v5991_v17, %v6940_v28  ;;  %v1660_v51 = vsub.f32 %v5997_v19, %v6937_v49 }
 0x277   : > { %v6935_v1 = vand.u32 4294901760, %v6018_v24 }
 0x279   : > { %5181 = vmatpush1.bf16.msra.mxu1 %v6092_v40 }
 0x27a   : > { %5182 = vmatprep.subr.bf16.mxu1 %v6954_v11 }
 0x27b   : > { %1221 = vmatmul.mubr.f32.vlgmr.msra.gmra.mrb[0].mxu0 %v6057_v31  ;;  %v6981_v31 = vand.u32 4294901760, %v5976_v14  ;;  %v1537_v14 = vand.u32 4294901760, %v1480_v63 }
 0x27c   : > { %5161 = vmatpush1.bf16.msra.mxu0 %v5148_v39  ;;  %1295 = vmatprep.mubr.f32.mxu0 %v6973_v48 }
 0x27d   : > { %5163 = vmatprep.subr.bf16.mxu0 %v5162_v13  ;;  %5184 = vmatpush1.bf16.msra.mxu1 %v6100_v53  ;;  %v6118_v5 = vpack.c.bf16 %v6981_v31, %v6980_v61  ;;  %v6951_v13 = vand.u32 4294901760, %v5929_v59  ;;  %v1618_v31 = vsub.f32 %v5950_v0, %v6950_v54 }
 0x27e   : > { %5185 = vmatprep.subr.bf16.mxu1 %v6954_v11 }
 0x27f   : > { %v1611_v61 = vsub.f32 %v5929_v59, %v6951_v13  ;;  %v1619_v62 = vand.u32 4294901760, %v1618_v31  ;;  %v1661_v31 = vand.u32 4294901760, %v1660_v51  ;;  %v1688_v51 = vsub.f32 %v6018_v24, %v6935_v1 }
 0x281   : > { %5187 = vmatpush1.bf16.msra.mxu1 %v6110_v43 }
 0x282   : > { %5188 = vmatprep.subr.bf16.mxu1 %v6954_v11 }
 0x283   : > { %1299 = vmatmul.mubr.f32.vlgmr.msra.gmra.mrb[0].mxu0 %v1045_v8  ;;  %v6134_v8 = vpack.c.bf16 %v1537_v14, %v1534_v4  ;;  %v6948_v4 = vand.u32 4294901760, %v5965_v6 }
 0x284   : > { %5165 = vmatpush1.bf16.msra.mxu0 %v5164_v10  ;;  %1381 = vmatprep.mubr.f32.mxu0 %v6973_v48  ;;  %v1612_v10 = vand.u32 4294901760, %v1611_v61  ;;  %v1654_v61 = vand.u32 4294901760, %v1653_v50  ;;  %v1681_v50 = vsub.f32 %v6013_v23, %v6933_v37 }
 0x285   : > { %5167 = vmatprep.subr.bf16.mxu0 %v5146_v9  ;;  %5190 = vmatpush1.bf16.msra.mxu1 %v6118_v5  ;;  %v1540_v9 = vand.u32 4294901760, %v1481_v33 }
 0x286   : > { %5191 = vmatprep.subr.bf16.mxu1 %v6954_v11 }
 0x287   : > { %v6158_v38 = vsub.f32 %v1481_v33, %v1540_v9 }
 0x289   : > { %5193 = vmatpush1.bf16.msra.mxu1 %v6134_v8  ;;  %v6939_v1 = vand.u32 4294901760, %v6158_v38 }
 0x28a   : > { %5194 = vmatprep.subr.bf16.mxu1 %v6954_v11 }
 0x28b   : > { %1383 = vmatmul.mubr.f32.vlgmr.msra.gmra.mrb[0].mxu0 %v6054_v22 }
 0x28c   : > { %5169 = vmatpush1.bf16.msra.mxu0 %v5148_v39  ;;  %1457 = vmatprep.mubr.f32.mxu0 %v6973_v48  ;;  %v6156_v39 = vsub.f32 %v1480_v63, %v1537_v14  ;;  %v6949_v63 = vand.u32 4294901760, %v5955_v3  ;;  %v6204_v14 = vpack.c.bf16 %v1619_v62, %v1612_v10  ;;  %v6934_v10 = vand.u32 4294901760, %v6002_v20 }
 0x28d   : > { %4846 = vmatprep.subr.mxu0 %v6973_v48  ;;  %v6932_v62 = vand.u32 4294901760, %v6007_v21 }
 0x28e   : > { %6982 = vst [vmem:[#allocation3_spill] sm:$0xff] %v6156_v39  ;;  %v1625_v33 = vsub.f32 %v5955_v3, %v6949_v63 }
 0x293   : > { %1459 = vmatmul.mubr.f32.vlgmr.msra.gmra.mrb[0].mxu0 %v6054_v22  ;;  %v1482_v22 = vld [vmem:[%s6913_s2 + $0x88] sm:$0xff] }
 0x294   : > { %v1543_v41 = vand.u32 4294901760, %v1482_v22 }
 0x296   : > { %v6144_v26 = vpack.c.bf16 %v1543_v41, %v1540_v9  ;;  %v6160_v12 = vsub.f32 %v1482_v22, %v1543_v41  ;;  %v1632_v22 = vsub.f32 %v5965_v6, %v6948_v4  ;;  %v1626_v9 = vand.u32 4294901760, %v1625_v33 }
 0x297   : > { %v6234_v33 = vpack.c.bf16 %v1661_v31, %v1654_v61  ;;  %v1682_v61 = vand.u32 4294901760, %v1681_v50  ;;  %v1689_v31 = vand.u32 4294901760, %v1688_v51  ;;  %v5264_v4 = vpack.c.bf16 %v6172_v25, %v6170_v2 }
 0x298   : > { %5196 = vmatpush1.bf16.msra.mxu1 %v6144_v26  ;;  %6983 = vst [vmem:[#allocation4_spill] sm:$0xff] %v6160_v12  ;;  %v1633_v41 = vand.u32 4294901760, %v1632_v22  ;;  %v1667_v22 = vsub.f32 %v6002_v20, %v6934_v10  ;;  %v6942_v50 = vand.u32 4294901760, %v6160_v12 }
 0x299   : > { %5197 = vmatprep.subr.bf16.mxu1 %v6954_v11 }
 0x29a   : > { %v6214_v32 = vpack.c.bf16 %v1633_v41, %v1626_v9  ;;  %v1674_v9 = vsub.f32 %v6007_v21, %v6932_v62  ;;  %v1668_v41 = vand.u32 4294901760, %v1667_v22  ;;  %v6936_v62 = vand.u32 4294901760, %v6154_v35 }
 0x29b   : > { %v6938_v22 = vand.u32 4294901760, %v6156_v39 }
 0x29c   : > { %5199 = vmatpush1.bf16.msra.mxu1 %v6168_v60  ;;  %v1675_v34 = vand.u32 4294901760, %v1674_v9  ;;  %v6254_v9 = vpack.c.bf16 %v1689_v31, %v1682_v61  ;;  %v1709_v61 = vsub.f32 %v6158_v38, %v6939_v1  ;;  %v1716_v31 = vsub.f32 %v6160_v12, %v6942_v50 }
 0x29d   : > { %5200 = vmatprep.subr.bf16.mxu1 %v6954_v11  ;;  %v1737_v50 = vsub.f32 %v6177_v46, %v6945_v29  ;;  %v5249_v29 = vpack.c.bf16 %v5997_v19, %v5991_v17 }
 0x29e   : > { %v6244_v36 = vpack.c.bf16 %v1675_v34, %v1668_v41  ;;  %v1695_v41 = vsub.f32 %v6154_v35, %v6936_v62  ;;  %v1702_v34 = vsub.f32 %v6156_v39, %v6938_v22  ;;  %v1710_v62 = vand.u32 4294901760, %v1709_v61 }
 0x29f   : > { %v1717_v49 = vand.u32 4294901760, %v1716_v31  ;;  %v6943_v22 = vand.u32 4294901760, %v6170_v2  ;;  %v6946_v61 = vand.u32 4294901760, %v6182_v45 }
 0x2a0   : > { %5202 = vmatpush1.bf16.msra.mxu1 %v6180_v47  ;;  %v1696_v37 = vand.u32 4294901760, %v1695_v41  ;;  %v1703_v10 = vand.u32 4294901760, %v1702_v34  ;;  %v6947_v41 = vand.u32 4294901760, %v6172_v25 }
 0x2a1   : > { %5203 = vmatprep.subr.bf16.mxu1 %v6954_v11  ;;  %v5228_v34 = vpack.c.bf16 %v1717_v49, %v1710_v62  ;;  %v1744_v49 = vsub.f32 %v6182_v45, %v6946_v61  ;;  %v1738_v62 = vand.u32 4294901760, %v1737_v50  ;;  %v5252_v50 = vpack.c.bf16 %v6007_v21, %v6002_v20 }
 0x2a2   : > { %v6264_v51 = vpack.c.bf16 %v1703_v10, %v1696_v37  ;;  %v1723_v10 = vsub.f32 %v6170_v2, %v6943_v22  ;;  %v1730_v37 = vsub.f32 %v6172_v25, %v6947_v41  ;;  %v5261_v41 = vpack.c.bf16 %v6160_v12, %v6158_v38 }
 0x2a3   : > { %v1745_v22 = vand.u32 4294901760, %v1744_v49  ;;  %v5258_v49 = vpack.c.bf16 %v6156_v39, %v6154_v35 }
 0x2a4   : > { %v1724_v1 = vand.u32 4294901760, %v1723_v10  ;;  %v1731_v28 = vand.u32 4294901760, %v1730_v37  ;;  %v5237_v10 = vpack.c.bf16 %v5924_v58, %v5919_v56  ;;  %v5240_v37 = vpack.c.bf16 %v5950_v0, %v5929_v59 }
 0x2a5   : > { %v5234_v30 = vpack.c.bf16 %v1745_v22, %v1738_v62  ;;  %v5255_v22 = vpack.c.bf16 %v6018_v24, %v6013_v23 }
 0x2a6   : > { %v5231_v31 = vpack.c.bf16 %v1731_v28, %v1724_v1  ;;  %v5243_v28 = vpack.c.bf16 %v5965_v6, %v5955_v3  ;;  %v5246_v1 = vpack.c.bf16 %v5986_v16, %v5981_v15 }
 0x33e   : > { %v1049_v62 = vpop.f32.mrb[0].mxu1 }
 0x33f   : > { %v1051_v61 = vpop.f32.mrb[1].mxu1 }
 0x366   : > { %v1460_v54 = vpop.f32.mrb[0].mxu0 }
 0x367   : > { %v5512_v13 = vadd.f32 %v1460_v54, %v1049_v62  ;;  %v1462_v44 = vpop.f32.mrb[1].mxu0 }
 0x368   : > { %v5513_v27 = vadd.f32 %v1462_v44, %v1051_v61 }
 0x369   : > { %v6310_v11 = vand.u32 4294901760, %v5512_v13 }
 0x36a   : > { %v1489_v48 = vsel %vm1487_vm11, %v5513_v27, 0  ;;  %v6986_v27 = vmov 0.0|0.0  }
 0x36b   : > { %v6313_v57 = vsub.f32 %v5512_v13, %v6310_v11  ;;  %v6315_v39 = vand.u32 4294901760, %v1489_v48 }
 0x36d   : > { %v1585_v12 = vand.u32 4294901760, %v6313_v57  ;;  %v1578_v25 = vsub.f32 %v1489_v48, %v6315_v39  ;;  %v6987_v48 = vpack.c.bf16 %v6182_v45, %v6177_v46 }
 0x36f   : > { %v1579_v2 = vand.u32 4294901760, %v1578_v25  ;;  %v1586_v54 = vsub.f32 %v6313_v57, %v1585_v12 }
 0x371   : > { %v1580_v62 = vsub.f32 %v1578_v25, %v1579_v2  ;;  %v1587_v44 = vand.u32 4294901760, %v1586_v54 }
 0x373   : > { %v1581_v63 = vand.u32 4294901760, %v1580_v62 }
 0x375   : > { %1582 = vmatprep.mubr.f32.mxu1 %v1581_v63  ;;  %v6991_v63 = vand.u32 4294901760, %v5950_v0  ;;  %v6997_v0 = vand.u32 4294901760, %v5997_v19  ;;  %v7003_v19 = vld [vmem:[#allocation3_spill] sm:$0xff] }
 0x376   : > { %1588 = vmatmul.mubr.f32.vlgmr.msra.gmra.mrb[2].mxu1 %v1587_v44 }
 0x377   : > { %5205 = vmatpush1.bf16.msra.mxu1 %v6194_v55  ;;  %1768 = vmatprep.mubr.f32.mxu1 %v6315_v39  ;;  %v6990_v55 = vand.u32 4294901760, %v5929_v59  ;;  %v6996_v59 = vand.u32 4294901760, %v5991_v17  ;;  %v7002_v17 = vand.u32 4294901760, %v6154_v35  ;;  %v7012_v35 = vand.u32 4294901760, %v6177_v46 }
 0x378   : > { %5206 = vmatprep.subr.bf16.mxu1 %v6986_v27 }
 0x37b   : > { %5208 = vmatpush1.bf16.msra.mxu1 %v6204_v14 }
 0x37c   : > { %5209 = vmatprep.subr.bf16.mxu1 %v6986_v27 }
 0x37f   : > { %5211 = vmatpush1.bf16.msra.mxu1 %v6214_v32 }
 0x380   : > { %5212 = vmatprep.subr.bf16.mxu1 %v6986_v27 }
 0x383   : > { %5214 = vmatpush1.bf16.msra.mxu1 %v6224_v52 }
 0x384   : > { %5215 = vmatprep.subr.bf16.mxu1 %v6986_v27 }
 0x387   : > { %5217 = vmatpush1.bf16.msra.mxu1 %v6234_v33  ;;  %v7004_v33 = vand.u32 4294901760, %v7003_v19 }
 0x388   : > { %5218 = vmatprep.subr.bf16.mxu1 %v6986_v27 }
 0x38b   : > { %5220 = vmatpush1.bf16.msra.mxu1 %v6244_v36  ;;  %v5324_v36 = vpack.c.bf16 %v7004_v33, %v7002_v17 }
 0x38c   : > { %5221 = vmatprep.subr.bf16.mxu1 %v6986_v27 }
 0x38f   : > { %5223 = vmatpush1.bf16.msra.mxu1 %v6254_v9 }
 0x390   : > { %5224 = vmatprep.subr.bf16.mxu1 %v6986_v27 }
 0x393   : > { %5226 = vmatpush1.bf16.msra.mxu1 %v6264_v51 }
 0x394   : > { %5227 = vmatprep.subr.bf16.mxu1 %v6986_v27 }
 0x397   : > { %5229 = vmatpush1.bf16.msra.mxu1 %v5228_v34 }
 0x398   : > { %5230 = vmatprep.subr.bf16.mxu1 %v6986_v27 }
 0x39b   : > { %5232 = vmatpush1.bf16.msra.mxu1 %v5231_v31  ;;  %v7013_v31 = vand.u32 4294901760, %v6182_v45 }
 0x39c   : > { %5233 = vmatprep.subr.bf16.mxu1 %v6986_v27 }
 0x39f   : > { %5235 = vmatpush1.bf16.msra.mxu1 %v5234_v30 }
 0x3a0   : > { %5236 = vmatprep.subr.bf16.mxu1 %v6986_v27 }
 0x3a2   : > { %1770 = vmatmul.mubr.f32.vlgmr.msra.gmra.mrb[2].mxu1 %v6310_v11 }
 0x3a3   : > { %5238 = vmatpush1.bf16.msra.mxu1 %v5237_v10  ;;  %1885 = vmatprep.mubr.f32.mxu1 %v1578_v25  ;;  %v6989_v25 = vand.u32 4294901760, %v5924_v58  ;;  %v6993_v58 = vand.u32 4294901760, %v5965_v6  ;;  %v6999_v6 = vand.u32 4294901760, %v6007_v21  ;;  %v7006_v21 = vld [vmem:[#allocation4_spill] sm:$0xff]  ;;  %v5333_v10 = vpack.c.bf16 %v7013_v31, %v7012_v35 }
 0x3a4   : > { %5239 = vmatprep.subr.bf16.mxu1 %v6986_v27  ;;  %v7007_v9 = vand.u32 4294901760, %v7006_v21 }
 0x3a7   : > { %5241 = vmatpush1.bf16.msra.mxu1 %v5240_v37 }
 0x3a8   : > { %5242 = vmatprep.subr.bf16.mxu1 %v6986_v27 }
 0x3ab   : > { %5244 = vmatpush1.bf16.msra.mxu1 %v5243_v28 }
 0x3ac   : > { %5245 = vmatprep.subr.bf16.mxu1 %v6986_v27 }
 0x3af   : > { %5247 = vmatpush1.bf16.msra.mxu1 %v5246_v1  ;;  %v7014_v1 = vld [vmem:[#allocation2_spill] sm:$0xff] }
 0x3b0   : > { %5248 = vmatprep.subr.bf16.mxu1 %v6986_v27 }
 0x3b3   : > { %5250 = vmatpush1.bf16.msra.mxu1 %v5249_v29  ;;  %v5315_v29 = vpack.c.bf16 %v6997_v0, %v6996_v59 }
 0x3b4   : > { %5251 = vmatprep.subr.bf16.mxu1 %v6986_v27 }
 0x3b7   : > { %5253 = vmatpush1.bf16.msra.mxu1 %v5252_v50  ;;  %v2229_v50 = vand.u32 7, %v7014_v1 }
 0x3b8   : > { %5254 = vmatprep.subr.bf16.mxu1 %v6986_v27 }
 0x3b9   : > { %vm6474_vm14 = vcmp.eq.s32.totalorder %v2229_v50, 0  ;;  %vm6478_vm15 = vcmp.eq.s32.totalorder %v2229_v50, 7 }
 0x3bb   : > { %5256 = vmatpush1.bf16.msra.mxu1 %v5255_v22 }
 0x3bc   : > { %5257 = vmatprep.subr.bf16.mxu1 %v6986_v27 }
 0x3bf   : > { %5259 = vmatpush1.bf16.msra.mxu1 %v5258_v49 }
 0x3c0   : > { %5260 = vmatprep.subr.bf16.mxu1 %v6986_v27 }
 0x3c3   : > { %5262 = vmatpush1.bf16.msra.mxu1 %v5261_v41  ;;  %v7010_v41 = vld [vmem:[#allocation6_spill] sm:$0xff] }
 0x3c4   : > { %5263 = vmatprep.subr.bf16.mxu1 %v6986_v27  ;;  %v7011_v34 = vand.u32 4294901760, %v7010_v41 }
 0x3c7   : > { %5265 = vmatpush1.bf16.msra.mxu1 %v5264_v4  ;;  %v5306_v4 = vpack.c.bf16 %v6991_v63, %v6990_v55 }
 0x3c8   : > { %5266 = vmatprep.subr.bf16.mxu1 %v6986_v27 }
 0x3cb   : > { %5268 = vmatpush1.bf16.msra.mxu1 %v6987_v48 }
 0x3cc   : > { %5269 = vmatprep.subr.bf16.mxu1 %v6986_v27 }
 0x3ce   : > { %1888 = vmatmul.mubr.f32.vlgmr.msra.gmra.mrb[2].mxu1 %v6313_v57  ;;  %v6994_v57 = vand.u32 4294901760, %v5981_v15  ;;  %v7000_v15 = vand.u32 4294901760, %v6013_v23  ;;  %v7008_v23 = vld [vmem:[#allocation5_spill] sm:$0xff] }
 0x3cf   : > { %5271 = vmatpush1.bf16.msra.mxu1 %v6066_v18  ;;  %1982 = vmatprep.mubr.f32.mxu1 %v1579_v2  ;;  %v6988_v2 = vand.u32 4294901760, %v5919_v56  ;;  %v6992_v56 = vand.u32 4294901760, %v5955_v3  ;;  %v6998_v3 = vand.u32 4294901760, %v6002_v20  ;;  %v7005_v20 = vand.u32 4294901760, %v6158_v38 }
 0x3d0   : > { %5272 = vmatprep.subr.bf16.mxu1 %v6986_v27 }
 0x3d1   : > { %v5303_v13 = vpack.c.bf16 %v6989_v25, %v6988_v2  ;;  %v5309_v14 = vpack.c.bf16 %v6993_v58, %v6992_v56  ;;  %v5318_v32 = vpack.c.bf16 %v6999_v6, %v6998_v3  ;;  %v5327_v51 = vpack.c.bf16 %v7007_v9, %v7005_v20 }
 0x3d3   : > { %5274 = vmatpush1.bf16.msra.mxu1 %v6074_v42 }
 0x3d4   : > { %5275 = vmatprep.subr.bf16.mxu1 %v6986_v27 }
 0x3d7   : > { %5277 = vmatpush1.bf16.msra.mxu1 %v6083_v7 }
 0x3d8   : > { %5278 = vmatprep.subr.bf16.mxu1 %v6986_v27 }
 0x3db   : > { %5280 = vmatpush1.bf16.msra.mxu1 %v6092_v40 }
 0x3dc   : > { %5281 = vmatprep.subr.bf16.mxu1 %v6986_v27 }
 0x3df   : > { %5283 = vmatpush1.bf16.msra.mxu1 %v6100_v53 }
 0x3e0   : > { %5284 = vmatprep.subr.bf16.mxu1 %v6986_v27 }
 0x3e3   : > { %5286 = vmatpush1.bf16.msra.mxu1 %v6110_v43 }
 0x3e4   : > { %5287 = vmatprep.subr.bf16.mxu1 %v6986_v27 }
 0x3e7   : > { %5289 = vmatpush1.bf16.msra.mxu1 %v6118_v5 }
 0x3e8   : > { %5290 = vmatprep.subr.bf16.mxu1 %v6986_v27 }
 0x3eb   : > { %5292 = vmatpush1.bf16.msra.mxu1 %v6134_v8 }
 0x3ec   : > { %5293 = vmatprep.subr.bf16.mxu1 %v6986_v27 }
 0x3ef   : > { %5295 = vmatpush1.bf16.msra.mxu1 %v6144_v26 }
 0x3f0   : > { %5296 = vmatprep.subr.bf16.mxu1 %v6986_v27 }
 0x3f3   : > { %5298 = vmatpush1.bf16.msra.mxu1 %v6168_v60 }
 0x3f4   : > { %5299 = vmatprep.subr.bf16.mxu1 %v6986_v27 }
 0x3f7   : > { %5301 = vmatpush1.bf16.msra.mxu1 %v6180_v47 }
 0x3f8   : > { %5302 = vmatprep.subr.bf16.mxu1 %v6986_v27 }
 0x3fa   : > { %1986 = vmatmul.mubr.f32.vlgmr.msra.gmra.mrb[2].mxu1 %v1585_v12  ;;  %v6995_v12 = vand.u32 4294901760, %v5986_v16  ;;  %v7001_v16 = vand.u32 4294901760, %v6018_v24  ;;  %v7009_v24 = vand.u32 4294901760, %v7008_v23 }
 0x3fb   : > { %5304 = vmatpush1.bf16.msra.mxu1 %v5303_v13  ;;  %2122 = vmatprep.mubr.f32.mxu1 %v6315_v39 }
 0x3fc   : > { %5305 = vmatprep.subr.bf16.mxu1 %v6986_v27  ;;  %v5312_v30 = vpack.c.bf16 %v6995_v12, %v6994_v57  ;;  %v5321_v52 = vpack.c.bf16 %v7001_v16, %v7000_v15  ;;  %v5330_v61 = vpack.c.bf16 %v7011_v34, %v7009_v24 }
 0x3ff   : > { %5307 = vmatpush1.bf16.msra.mxu1 %v5306_v4 }
 0x400   : > { %5308 = vmatprep.subr.bf16.mxu1 %v6986_v27 }
 0x403   : > { %5310 = vmatpush1.bf16.msra.mxu1 %v5309_v14 }
 0x404   : > { %5311 = vmatprep.subr.bf16.mxu1 %v6986_v27 }
 0x407   : > { %5313 = vmatpush1.bf16.msra.mxu1 %v5312_v30 }
 0x408   : > { %5314 = vmatprep.subr.bf16.mxu1 %v6986_v27 }
 0x40b   : > { %5316 = vmatpush1.bf16.msra.mxu1 %v5315_v29 }
 0x40c   : > { %5317 = vmatprep.subr.bf16.mxu1 %v6986_v27 }
 0x40f   : > { %5319 = vmatpush1.bf16.msra.mxu1 %v5318_v32 }
 0x410   : > { %5320 = vmatprep.subr.bf16.mxu1 %v6986_v27 }
 0x413   : > { %5322 = vmatpush1.bf16.msra.mxu1 %v5321_v52 }
 0x414   : > { %5323 = vmatprep.subr.bf16.mxu1 %v6986_v27 }
 0x417   : > { %5325 = vmatpush1.bf16.msra.mxu1 %v5324_v36 }
 0x418   : > { %5326 = vmatprep.subr.bf16.mxu1 %v6986_v27 }
 0x41b   : > { %5328 = vmatpush1.bf16.msra.mxu1 %v5327_v51 }
 0x41c   : > { %5329 = vmatprep.subr.bf16.mxu1 %v6986_v27 }
 0x41f   : > { %5331 = vmatpush1.bf16.msra.mxu1 %v5330_v61 }
 0x420   : > { %5332 = vmatprep.subr.bf16.mxu1 %v6986_v27 }
 0x423   : > { %5334 = vmatpush1.bf16.msra.mxu1 %v5333_v10 }
 0x424   : > { %5335 = vmatprep.subr.bf16.mxu1 %v6986_v27 }
 0x426   : > { %2124 = vmatmul.mubr.f32.vlgmr.msra.gmra.mrb[2].mxu1 %v6310_v11 }
 0x427   : > { %5337 = vmatpush1.bf16.msra.mxu1 %v6066_v18  ;;  %2216 = vmatprep.mubr.f32.mxu1 %v6315_v39 }
 0x428   : > { %5338 = vmatprep.subr.bf16.mxu1 %v6986_v27 }
 0x42b   : > { %5340 = vmatpush1.bf16.msra.mxu1 %v6074_v42 }
 0x42c   : > { %5341 = vmatprep.subr.bf16.mxu1 %v6986_v27 }
 0x42f   : > { %5343 = vmatpush1.bf16.msra.mxu1 %v6083_v7 }
 0x430   : > { %5344 = vmatprep.subr.bf16.mxu1 %v6986_v27 }
 0x433   : > { %5346 = vmatpush1.bf16.msra.mxu1 %v6092_v40 }
 0x434   : > { %5347 = vmatprep.subr.bf16.mxu1 %v6986_v27 }
 0x437   : > { %5349 = vmatpush1.bf16.msra.mxu1 %v6100_v53 }
 0x438   : > { %5350 = vmatprep.subr.bf16.mxu1 %v6986_v27 }
 0x43b   : > { %5352 = vmatpush1.bf16.msra.mxu1 %v6110_v43 }
 0x43c   : > { %5353 = vmatprep.subr.bf16.mxu1 %v6986_v27 }
 0x43f   : > { %5355 = vmatpush1.bf16.msra.mxu1 %v6118_v5 }
 0x440   : > { %5356 = vmatprep.subr.bf16.mxu1 %v6986_v27 }
 0x443   : > { %5358 = vmatpush1.bf16.msra.mxu1 %v6134_v8 }
 0x444   : > { %5359 = vmatprep.subr.bf16.mxu1 %v6986_v27 }
 0x447   : > { %5361 = vmatpush1.bf16.msra.mxu1 %v6144_v26 }
 0x448   : > { %5362 = vmatprep.subr.bf16.mxu1 %v6986_v27 }
 0x44b   : > { %5364 = vmatpush1.bf16.msra.mxu1 %v6168_v60 }
 0x44c   : > { %5365 = vmatprep.subr.bf16.mxu1 %v6986_v27 }
 0x44f   : > { %5367 = vmatpush1.bf16.msra.mxu1 %v6180_v47 }
 0x452   : > { %2218 = vmatmul.mubr.f32.vlgmr.msra.gmra.mrb[2].mxu1 %v6310_v11 }
 0x525   : > { %v2219_v18 = vpop.f32.mrb[2].mxu1 }
 0x526   : > { %v2240_v42 = vrot.slane %v2219_v18, 1  ;;  %v2242_v7 = vrot.slane %v2219_v18, 7  ;;  %v2244_v40 = vrot.slane %v2219_v18, 5  ;;  %v2221_v53 = vpop.f32.mrb[3].mxu1  ;;  %2224 = vst.msk [vmem:[%s343_s13] sm:$0xff] %vm2223_vm12, %v2219_v18 }
 0x528   : > { %v2246_v43 = vsel %vm395_vm0, %v2240_v42, %v2242_v7  ;;  %v2247_v5 = vsel %vm395_vm0, %v2242_v7, %v2244_v40 }
 0x529   : > { %v2250_v8 = vrot.slane %v2246_v43, 2  ;;  %v2251_v26 = vrot.slane %v2247_v5, 2  ;;  %v2256_v11 = vmul.f32 0.45186275, %v2246_v43  ;;  %v2257_v39 = vmul.f32 0.45186275, %v2247_v5 }
 0x52b   : > { %v2252_v38 = vsel %vm420_vm1, %v2250_v8, %v2251_v26  ;;  %v2260_v60 = vrot.slane %v2256_v11, 1  ;;  %v2261_v46 = vrot.slane %v2257_v39, 1 }
 0x52c   : > { %v2254_v47 = vadd.f32 %v2252_v38, %v2246_v43 }
 0x52d   : > { %v2262_v37 = vsel %vm455_vm2, %v2260_v60, %v2261_v46 }
 0x52e   : > { %v2255_v45 = vmul.f32 0.27406862, %v2254_v47 }
 0x530   : > { %v2264_v28 = vadd.f32 %v2262_v37, %v2255_v45 }
 0x532   : > { %2270 = vrot.lane.b32.xlu1 %v2264_v28, %s5594_s16  ;;  %2266 = vrot.lane.b32.xlu0 %v2264_v28, %s5593_s15  ;;  %v2279_v63 = vmul.f32 0.45186275, %v2264_v28 }
 0x5a4   : > { %v2271_v54 = vpop.permute.xlu1 %2270  ;;  %v2267_v62 = vpop.permute.xlu0 %2266 }
 0x5a5   : > { %v2274_v44 = vsel %vm2273_vm13, %v2271_v54, %v2264_v28  ;;  %v2269_v48 = vsel %vm486_vm6, %v2264_v28, %v2267_v62 }
 0x5a6   : > { %v2275_v2 = vsel %vm6474_vm14, %v2274_v44, %v2269_v48  ;;  %v2276_v25 = vsel %vm6478_vm15, %v2269_v48, %v2274_v44 }
 0x5a7   : > { %v2277_v13 = vadd.f32 %v2276_v25, %v2275_v2 }
 0x5a9   : > { %v2278_v55 = vmul.f32 0.27406862, %v2277_v13 }
 0x5ab   : > { %v2280_v4 = vadd.f32 %v2279_v63, %v2278_v55 }
 0x5ad   : > { %v2282_v56 = vrot.slane %v2280_v4, 1  ;;  %v2284_v58 = vrot.slane %v2280_v4, 7  ;;  %v2286_v14 = vrot.slane %v2280_v4, 5 }
 0x5af   : > { %v2288_v57 = vsel %vm395_vm0, %v2282_v56, %v2284_v58  ;;  %v2289_v12 = vsel %vm395_vm0, %v2284_v58, %v2286_v14 }
 0x5b0   : > { %v2292_v30 = vrot.slane %v2288_v57, 2  ;;  %v2293_v59 = vrot.slane %v2289_v12, 2  ;;  %v2299_v0 = vmul.f32 0.45186275, %v2289_v12  ;;  %v2298_v29 = vmul.f32 0.45186275, %v2288_v57 }
 0x5b2   : > { %v2294_v3 = vsel %vm420_vm1, %v2292_v30, %v2293_v59  ;;  %v2302_v6 = vrot.slane %v2298_v29, 1  ;;  %v2303_v32 = vrot.slane %v2299_v0, 1  ;;  %v7019_v29 = vmov 0.0  }
 0x5b3   : > { %v2296_v15 = vadd.f32 %v2294_v3, %v2288_v57  ;;  %4848 = vmatprep.mubr.msk.f32.mxu0 %vm5597_vm3, %v7019_v29  ;;  %v6523_v3 = vld [vmem:[%s6915_s4] sm:$0xff] }
 0x5b4   : > { %v2304_v52 = vsel %vm455_vm2, %v2302_v6, %v2303_v32  ;;  %v6528_v6 = vld [vmem:[%s6915_s4 + $0x8] sm:$0xff]  ;;  %v2870_v32 = vand.u32 4294901760, %v6523_v3 }
 0x5b5   : > { %v2297_v16 = vmul.f32 0.27406862, %v2296_v15  ;;  %v2873_v15 = vand.u32 4294901760, %v6528_v6 }
 0x5b7   : > { %v2306_v17 = vadd.f32 %v2304_v52, %v2297_v16  ;;  %v6535_v16 = vld [vmem:[%s6915_s4 + $0x10] sm:$0xff]  ;;  %v2858_v52 = vld [vmem:[%s6915_s4 + $0x18] sm:$0xff]  ;;  %v6587_v49 = vpack.c.bf16 %v2873_v15, %v2870_v32 }
 0x5b9   : > { %2312 = vrot.lane.b32.xlu1 %v2306_v17, %s5594_s16  ;;  %2308 = vrot.lane.b32.xlu0 %v2306_v17, %s5593_s15  ;;  %v2320_v24 = vmul.f32 0.45186275, %v2306_v17 }
 0x62b   : > { %v2313_v19 = vpop.permute.xlu1 %2312  ;;  %v2309_v33 = vpop.permute.xlu0 %2308 }
 0x62c   : > { %v2315_v36 = vsel %vm2273_vm13, %v2313_v19, %v2306_v17  ;;  %v2311_v20 = vsel %vm486_vm6, %v2306_v17, %v2309_v33  ;;  %v6541_v17 = vsub.f32 %v6523_v3, %v2870_v32  ;;  %v6544_v19 = vsub.f32 %v6528_v6, %v2873_v15 }
 0x62d   : > { %v2316_v21 = vsel %vm6474_vm14, %v2315_v36, %v2311_v20  ;;  %v2317_v9 = vsel %vm6478_vm15, %v2311_v20, %v2315_v36  ;;  %v2876_v33 = vand.u32 4294901760, %v6535_v16  ;;  %v2879_v36 = vand.u32 4294901760, %v2858_v52 }
 0x62e   : > { %v2318_v51 = vadd.f32 %v2317_v9, %v2316_v21  ;;  %v2859_v9 = vld [vmem:[%s6915_s4 + $0x20] sm:$0xff] }
 0x62f   : > { %v6548_v20 = vsub.f32 %v6535_v16, %v2876_v33  ;;  %v6550_v21 = vsub.f32 %v2858_v52, %v2879_v36 }
 0x630   : > { %v2319_v23 = vmul.f32 0.27406862, %v2318_v51  ;;  %v2860_v51 = vld [vmem:[%s6915_s4 + $0x28] sm:$0xff] }
 0x631   : > { %v2972_v16 = vand.u32 4294901760, %v6548_v20  ;;  %v2979_v52 = vand.u32 4294901760, %v6550_v21 }
 0x632   : > { %v2321_v41 = vadd.f32 %v2320_v24, %v2319_v23  ;;  %v2882_v23 = vand.u32 4294901760, %v2859_v9  ;;  %v2885_v24 = vand.u32 4294901760, %v2860_v51 }
 0x634   : > { %v2323_v34 = vrot.slane %v2321_v41, 1  ;;  %v2325_v61 = vrot.slane %v2321_v41, 7  ;;  %v2327_v35 = vrot.slane %v2321_v41, 5  ;;  %v6558_v41 = vsub.f32 %v2859_v9, %v2882_v23 }
 0x635   : > { %v2980_v9 = vsub.f32 %v6550_v21, %v2979_v52 }
 0x636   : > { %v2329_v31 = vsel %vm395_vm0, %v2323_v34, %v2325_v61  ;;  %v2330_v10 = vsel %vm395_vm0, %v2325_v61, %v2327_v35  ;;  %v6560_v34 = vsub.f32 %v2860_v51, %v2885_v24  ;;  %v2404_v61 = vld [vmem:[%s6914_s3] sm:$0xf]  ;;  %v2986_v51 = vand.u32 4294901760, %v6558_v41 }
 0x637   : > { %v2333_v18 = vrot.slane %v2329_v31, 2  ;;  %v2334_v42 = vrot.slane %v2330_v10, 2  ;;  %v2340_v7 = vmul.f32 0.45186275, %v2330_v10  ;;  %v2339_v40 = vmul.f32 0.45186275, %v2329_v31 }
 0x639   : > { %v2335_v53 = vsel %vm420_vm1, %v2333_v18, %v2334_v42  ;;  %v2343_v43 = vrot.slane %v2339_v40, 1  ;;  %v2344_v5 = vrot.slane %v2340_v7, 1 }
 0x63a   : > { %v2337_v8 = vadd.f32 %v2335_v53, %v2329_v31 }
 0x63b   : > { %v2345_v11 = vsel %vm455_vm2, %v2343_v43, %v2344_v5 }
 0x63c   : > { %v2338_v26 = vmul.f32 0.27406862, %v2337_v8 }
 0x63e   : > { %v2347_v39 = vadd.f32 %v2345_v11, %v2338_v26 }
 0x640   : > { %2353 = vrot.lane.b32.xlu1 %v2347_v39, %s5594_s16  ;;  %2349 = vrot.lane.b32.xlu0 %v2347_v39, %s5593_s15  ;;  %v2361_v54 = vmul.f32 0.45186275, %v2347_v39 }
 0x6b2   : > { %v2354_v38 = vpop.permute.xlu1 %2353  ;;  %v2350_v60 = vpop.permute.xlu0 %2349 }
 0x6b3   : > { %v2356_v46 = vsel %vm2273_vm13, %v2354_v38, %v2347_v39  ;;  %v2352_v47 = vsel %vm486_vm6, %v2347_v39, %v2350_v60 }
 0x6b4   : > { %v2357_v45 = vsel %vm6474_vm14, %v2356_v46, %v2352_v47  ;;  %v2358_v37 = vsel %vm6478_vm15, %v2352_v47, %v2356_v46 }
 0x6b5   : > { %v2359_v28 = vadd.f32 %v2358_v37, %v2357_v45 }
 0x6b7   : > { %v2360_v50 = vmul.f32 0.27406862, %v2359_v28  ;;  %v6590_v28 = vpack.c.bf16 %v2879_v36, %v2876_v33  ;;  %v2973_v36 = vsub.f32 %v6548_v20, %v2972_v16 }
 0x6b9   : > { %v2362_v62 = vadd.f32 %v2361_v54, %v2360_v50  ;;  %v6596_v50 = vpack.c.bf16 %v2885_v24, %v2882_v23  ;;  %v2861_v54 = vld [vmem:[%s6915_s4 + $0x30] sm:$0xff]  ;;  %v2993_v23 = vand.u32 4294901760, %v6560_v34  ;;  %v2974_v24 = vand.u32 4294901760, %v2973_v36 }
 0x6bb   : > { %v2364_v44 = vrot.slane %v2362_v62, 1  ;;  %v2366_v48 = vrot.slane %v2362_v62, 7  ;;  %v2368_v2 = vrot.slane %v2362_v62, 5  ;;  %v2862_v62 = vld [vmem:[%s6915_s4 + $0x38] sm:$0xff] }
 0x6bd   : > { %v2370_v25 = vsel %vm395_vm0, %v2364_v44, %v2366_v48  ;;  %v2371_v13 = vsel %vm395_vm0, %v2366_v48, %v2368_v2  ;;  %v2888_v44 = vand.u32 4294901760, %v2861_v54  ;;  %v2891_v48 = vand.u32 4294901760, %v2862_v62 }
 0x6be   : > { %v2374_v55 = vrot.slane %v2370_v25, 2  ;;  %v2375_v63 = vrot.slane %v2371_v13, 2  ;;  %v2381_v4 = vmul.f32 0.45186275, %v2371_v13  ;;  %v2380_v56 = vmul.f32 0.45186275, %v2370_v25 }
 0x6bf   : > { %v6607_v2 = vpack.c.bf16 %v2891_v48, %v2888_v44  ;;  %v2864_v13 = vld [vmem:[%s6915_s4 + $0x48] sm:$0xff] }
 0x6c0   : > { %v2376_v58 = vsel %vm420_vm1, %v2374_v55, %v2375_v63  ;;  %v2384_v14 = vrot.slane %v2380_v56, 1  ;;  %v2385_v57 = vrot.slane %v2381_v4, 1  ;;  %vm2405_vm1 = vcmask 64512  }
 0x6c1   : > { %v2378_v12 = vadd.f32 %v2376_v58, %v2370_v25  ;;  %v2407_v35 = vsel %vm2405_vm1, %v2404_v61, 0  ;;  %v2863_v25 = vld [vmem:[%s6915_s4 + $0x40] sm:$0xff]  ;;  %v2897_v63 = vand.u32 4294901760, %v2864_v13  ;;  %v2958_v56 = vand.u32 4294901760, %v6541_v17 }
 0x6c2   : > { %v2386_v59 = vsel %vm455_vm2, %v2384_v14, %v2385_v57  ;;  %v2475_v31 = vand.u32 4294901760, %v2407_v35  ;;  %v2894_v55 = vand.u32 4294901760, %v2863_v25  ;;  %v2965_v58 = vand.u32 4294901760, %v6544_v19 }
 0x6c3   : > { %v2379_v30 = vmul.f32 0.27406862, %v2378_v12  ;;  %v2959_v14 = vsub.f32 %v6541_v17, %v2958_v56  ;;  %v2865_v12 = vld [vmem:[%s6915_s4 + $0x50] sm:$0xff]  ;;  %v6638_v3 = vsub.f32 %v2864_v13, %v2897_v63  ;;  %v2981_v61 = vand.u32 4294901760, %v2980_v9 }
 0x6c4   : > { %v2476_v10 = vsub.f32 %v2407_v35, %v2475_v31  ;;  %v6617_v4 = vpack.c.bf16 %v2897_v63, %v2894_v55  ;;  %v2966_v57 = vsub.f32 %v6544_v19, %v2965_v58  ;;  %v6640_v6 = vand.u32 4294901760, %v2865_v12 }
 0x6c5   : > { %v2388_v0 = vadd.f32 %v2386_v59, %v2379_v30  ;;  %v6632_v30 = vsub.f32 %v2861_v54, %v2888_v44  ;;  %v6634_v59 = vsub.f32 %v2862_v62, %v2891_v48  ;;  %v2960_v32 = vand.u32 4294901760, %v2959_v14 }
 0x6c6   : > { %v2477_v7 = vand.u32 4294901760, %v2476_v10  ;;  %v2967_v15 = vand.u32 4294901760, %v2966_v57  ;;  %v2987_v35 = vsub.f32 %v6558_v41, %v2986_v51  ;;  %v5402_v54 = vpack.c.bf16 %v6550_v21, %v6548_v20 }
 0x6c7   : > { %2394 = vrot.lane.b32.xlu1 %v2388_v0, %s5594_s16  ;;  %2390 = vrot.lane.b32.xlu0 %v2388_v0, %s5593_s15  ;;  %v2402_v39 = vmul.f32 0.45186275, %v2388_v0  ;;  %v5405_v62 = vpack.c.bf16 %v6560_v34, %v6558_v41  ;;  %v5408_v44 = vpack.c.bf16 %v6634_v59, %v6632_v30  ;;  %v3027_v36 = vsub.f32 %v2865_v12, %v6640_v6 }
 0x6c8   : > { %v2478_v26 = vsub.f32 %v2476_v10, %v2477_v7  ;;  %v5384_v33 = vpack.c.bf16 %v2967_v15, %v2960_v32  ;;  %v5429_v12 = vpack.c.bf16 %v2965_v58, %v2958_v56  ;;  %vm3445_vm2 = vcmask 355328  }
 0x6c9   : > { %v3028_v9 = vand.u32 4294901760, %v3027_v36 }
 0x6ca   : > { %v2479_v60 = vand.u32 4294901760, %v2478_v26 }
 0x739   : > { %v2395_v18 = vpop.permute.xlu1 %2394  ;;  %v2391_v42 = vpop.permute.xlu0 %2390 }
 0x73a   : > { %v2397_v40 = vsel %vm2273_vm13, %v2395_v18, %v2388_v0  ;;  %v2393_v53 = vsel %vm486_vm6, %v2388_v0, %v2391_v42  ;;  %v6636_v0 = vsub.f32 %v2863_v25, %v2894_v55  ;;  %v2988_v18 = vand.u32 4294901760, %v2987_v35 }
 0x73b   : > { %v2398_v43 = vsel %vm6474_vm14, %v2397_v40, %v2393_v53  ;;  %v2399_v5 = vsel %vm6478_vm15, %v2393_v53, %v2397_v40  ;;  %v3007_v40 = vand.u32 4294901760, %v6634_v59 }
 0x73c   : > { %v2400_v8 = vadd.f32 %v2399_v5, %v2398_v43  ;;  %v3014_v26 = vand.u32 4294901760, %v6636_v0  ;;  %v5411_v48 = vpack.c.bf16 %v6638_v3, %v6636_v0 }
 0x73d   : > { %v3008_v5 = vsub.f32 %v6634_v59, %v3007_v40 }
 0x73e   : > { %v2401_v11 = vmul.f32 0.27406862, %v2400_v8 }
 0x740   : > { %v2403_v38 = vadd.f32 %v2402_v39, %v2401_v11  ;;  %v3021_v11 = vand.u32 4294901760, %v6638_v3  ;;  %v3009_v39 = vand.u32 4294901760, %v3008_v5 }
 0x742   : > { %v2410_v46 = vand.u32 4294901760, %v2403_v38  ;;  %v5441_v20 = vpack.c.bf16 %v3021_v11, %v3014_v26 }
 0x744   : > { %4847 = vmatpush3.msra.mxu0 %v2410_v46  ;;  %v2487_v47 = vsub.f32 %v2403_v38, %v2410_v46  ;;  %v3015_v38 = vsub.f32 %v6636_v0, %v3014_v26 }
 0x745   : > { %4849 = vmatmul.mubr.f32.vlgmr.msra.gmra.mrb[2].mxu0 %v2479_v60  ;;  %4851 = vmatprep.subr.mxu0 %v7019_v29  ;;  %v3022_v60 = vsub.f32 %v6638_v3, %v3021_v11  ;;  %v3451_v3 = vand.u32 3, %v7014_v1 }
 0x746   : > { %v2488_v45 = vand.u32 4294901760, %v2487_v47  ;;  %4853 = vmatprep.mubr.msk.f32.mxu0 %vm5597_vm3, %v7019_v29 }
 0x747   : > { %vm6777_vm7 = vcmp.eq.s32.totalorder %v3451_v3, 0  ;;  %vm6781_vm8 = vcmp.eq.s32.totalorder %v3451_v3, 3 }
 0x748   : > { %v2489_v22 = vsub.f32 %v2487_v47, %v2488_v45 }
 0x74a   : > { %v2490_v37 = vand.u32 4294901760, %v2489_v22 }
 0x74c   : > { %4852 = vmatpush3.msra.mxu0 %v2490_v37  ;;  %v5399_v37 = vpack.c.bf16 %v6544_v19, %v6541_v17  ;;  %v5435_v17 = vpack.c.bf16 %v2993_v23, %v2986_v51 }
 0x74d   : > { %4854 = vmatmul.mubr.f32.vlgmr.msra.gmra.mrb[2].mxu0 %v2475_v31  ;;  %4856 = vmatprep.subr.mxu0 %v7019_v29 }
 0x74e   : > { %4857 = vmatpush3.msra.mxu0 %v2487_v47  ;;  %4858 = vmatprep.mubr.msk.f32.mxu0 %vm5597_vm3, %v7019_v29  ;;  %v3016_v47 = vand.u32 4294901760, %v3015_v38 }
 0x74f   : > { %4861 = vmatprep.subr.mxu0 %v7019_v29 }
 0x755   : > { %4859 = vmatmul.mubr.f32.vlgmr.msra.gmra.mrb[2].mxu0 %v2476_v10  ;;  %v5387_v10 = vpack.c.bf16 %v2981_v61, %v2974_v24  ;;  %v3029_v24 = vsub.f32 %v3027_v36, %v3028_v9  ;;  %v5432_v61 = vpack.c.bf16 %v2979_v52, %v2972_v16 }
 0x756   : > { %4862 = vmatpush3.msra.mxu0 %v2410_v46  ;;  %4863 = vmatprep.mubr.msk.f32.mxu0 %vm5597_vm3, %v7019_v29 }
 0x757   : > { %4866 = vmatprep.subr.mxu0 %v7019_v29 }
 0x75d   : > { %4864 = vmatmul.mubr.f32.vlgmr.msra.gmra.mrb[2].mxu0 %v2477_v7  ;;  %v3000_v7 = vand.u32 4294901760, %v6632_v30 }
 0x75e   : > { %4867 = vmatpush3.msra.mxu0 %v2488_v45  ;;  %4868 = vmatprep.mubr.msk.f32.mxu0 %vm5597_vm3, %v7019_v29  ;;  %v3023_v45 = vand.u32 4294901760, %v3022_v60 }
 0x75f   : > { %4871 = vmatprep.subr.mxu0 %v7019_v29  ;;  %v3001_v43 = vsub.f32 %v6632_v30, %v3000_v7  ;;  %v5438_v19 = vpack.c.bf16 %v3007_v40, %v3000_v7 }
 0x760   : > { %v5396_v22 = vpack.c.bf16 %v3023_v45, %v3016_v47 }
 0x761   : > { %v3002_v8 = vand.u32 4294901760, %v3001_v43 }
 0x765   : > { %4869 = vmatmul.mubr.f32.vlgmr.msra.gmra.mrb[2].mxu0 %v2475_v31 }
 0x766   : > { %4872 = vmatpush3.msra.mxu0 %v2410_v46  ;;  %4873 = vmatprep.mubr.msk.f32.mxu0 %vm5597_vm3, %v7019_v29  ;;  %v5393_v46 = vpack.c.bf16 %v3009_v39, %v3002_v8 }
 0x767   : > { %5368 = vmatprep.subr.bf16.mxu0 %v6986_v27 }
 0x76d   : > { %4874 = vmatmul.mubr.f32.vlgmr.msra.gmra.mrb[2].mxu0 %v2475_v31  ;;  %v2994_v31 = vsub.f32 %v6560_v34, %v2993_v23 }
 0x76e   : > { %5370 = vmatpush3.bf16.msra.mxu0 %v6587_v49  ;;  %4898 = vmatprep.mubr.msk.f32.mxu0 %vm5597_vm3, %v7019_v29 }
 0x76f   : > { %5371 = vmatprep.subr.bf16.mxu0 %v6986_v27  ;;  %v2995_v42 = vand.u32 4294901760, %v2994_v31 }
 0x771   : > { %v5390_v53 = vpack.c.bf16 %v2995_v42, %v2988_v18 }
 0x772   : > { %5373 = vmatpush3.bf16.msra.mxu0 %v6590_v28 }
 0x773   : > { %5374 = vmatprep.subr.bf16.mxu0 %v6986_v27 }
 0x776   : > { %5376 = vmatpush3.bf16.msra.mxu0 %v6596_v50 }
 0x777   : > { %5377 = vmatprep.subr.bf16.mxu0 %v6986_v27 }
 0x77a   : > { %5379 = vmatpush3.bf16.msra.mxu0 %v6607_v2 }
 0x77b   : > { %5380 = vmatprep.subr.bf16.mxu0 %v6986_v27 }
 0x77e   : > { %5382 = vmatpush3.bf16.msra.mxu0 %v6617_v4 }
 0x77f   : > { %4896 = vmatprep.subr.mxu0 %v7019_v29 }
 0x782   : > { %4897 = vmatpush3.msra.mxu0 %v6640_v6 }
 0x783   : > { %5383 = vmatprep.subr.bf16.mxu0 %v6986_v27 }
 0x840   : > { %v2851_v25 = vpop.f32.mrb[2].mxu0 }
 0x841   : > { %v2867_v13 = vsel %vm2223_vm12, %v2851_v25, 0  ;;  %v4875_v55 = vpop.f32.mrb[3].mxu0 }
 0x842   : > { %v6687_v63 = vand.u32 4294901760, %v2867_v13 }
 0x844   : > { %v2946_v14 = vsub.f32 %v2867_v13, %v6687_v63 }
 0x846   : > { %v2947_v57 = vand.u32 4294901760, %v2946_v14 }
 0x848   : > { %v2948_v32 = vsub.f32 %v2946_v14, %v2947_v57 }
 0x84a   : > { %v2949_v15 = vand.u32 4294901760, %v2948_v32 }
 0x84c   : > { %4899 = vmatmul.mubr.f32.vlgmr.msra.gmra.mrb[4].mxu0 %v2949_v15 }
 0x84d   : > { %5385 = vmatpush3.bf16.msra.mxu0 %v5384_v33  ;;  %4923 = vmatprep.mubr.msk.f32.mxu0 %vm5597_vm3, %v7019_v29  ;;  %v3030_v33 = vand.u32 4294901760, %v3029_v24 }
 0x84e   : > { %5386 = vmatprep.subr.bf16.mxu0 %v6986_v27 }
 0x851   : > { %5388 = vmatpush3.bf16.msra.mxu0 %v5387_v10 }
 0x852   : > { %5389 = vmatprep.subr.bf16.mxu0 %v6986_v27 }
 0x855   : > { %5391 = vmatpush3.bf16.msra.mxu0 %v5390_v53 }
 0x856   : > { %5392 = vmatprep.subr.bf16.mxu0 %v6986_v27 }
 0x859   : > { %5394 = vmatpush3.bf16.msra.mxu0 %v5393_v46 }
 0x85a   : > { %5395 = vmatprep.subr.bf16.mxu0 %v6986_v27 }
 0x85d   : > { %5397 = vmatpush3.bf16.msra.mxu0 %v5396_v22 }
 0x85e   : > { %4921 = vmatprep.subr.mxu0 %v7019_v29 }
 0x861   : > { %4922 = vmatpush3.msra.mxu0 %v3030_v33 }
 0x862   : > { %4924 = vmatmul.mubr.f32.vlgmr.msra.gmra.mrb[4].mxu0 %v6687_v63  ;;  %5398 = vmatprep.subr.bf16.mxu0 %v6986_v27 }
 0x863   : > { %5400 = vmatpush3.bf16.msra.mxu0 %v5399_v37  ;;  %4948 = vmatprep.mubr.msk.f32.mxu0 %vm5597_vm3, %v7019_v29 }
 0x864   : > { %5401 = vmatprep.subr.bf16.mxu0 %v6986_v27 }
 0x867   : > { %5403 = vmatpush3.bf16.msra.mxu0 %v5402_v54 }
 0x868   : > { %5404 = vmatprep.subr.bf16.mxu0 %v6986_v27 }
 0x86b   : > { %5406 = vmatpush3.bf16.msra.mxu0 %v5405_v62 }
 0x86c   : > { %5407 = vmatprep.subr.bf16.mxu0 %v6986_v27 }
 0x86f   : > { %5409 = vmatpush3.bf16.msra.mxu0 %v5408_v44 }
 0x870   : > { %5410 = vmatprep.subr.bf16.mxu0 %v6986_v27 }
 0x873   : > { %5412 = vmatpush3.bf16.msra.mxu0 %v5411_v48 }
 0x874   : > { %4946 = vmatprep.subr.mxu0 %v7019_v29 }
 0x877   : > { %4947 = vmatpush3.msra.mxu0 %v3027_v36 }
 0x878   : > { %4949 = vmatmul.mubr.f32.vlgmr.msra.gmra.mrb[4].mxu0 %v2946_v14  ;;  %5413 = vmatprep.subr.bf16.mxu0 %v6986_v27 }
 0x879   : > { %5415 = vmatpush3.bf16.msra.mxu0 %v6587_v49  ;;  %4973 = vmatprep.mubr.msk.f32.mxu0 %vm5597_vm3, %v7019_v29 }
 0x87a   : > { %5416 = vmatprep.subr.bf16.mxu0 %v6986_v27 }
 0x87d   : > { %5418 = vmatpush3.bf16.msra.mxu0 %v6590_v28 }
 0x87e   : > { %5419 = vmatprep.subr.bf16.mxu0 %v6986_v27 }
 0x881   : > { %5421 = vmatpush3.bf16.msra.mxu0 %v6596_v50 }
 0x882   : > { %5422 = vmatprep.subr.bf16.mxu0 %v6986_v27 }
 0x885   : > { %5424 = vmatpush3.bf16.msra.mxu0 %v6607_v2 }
 0x886   : > { %5425 = vmatprep.subr.bf16.mxu0 %v6986_v27 }
 0x889   : > { %5427 = vmatpush3.bf16.msra.mxu0 %v6617_v4 }
 0x88a   : > { %4971 = vmatprep.subr.mxu0 %v7019_v29 }
 0x88d   : > { %4972 = vmatpush3.msra.mxu0 %v6640_v6 }
 0x88e   : > { %4974 = vmatmul.mubr.f32.vlgmr.msra.gmra.mrb[4].mxu0 %v2947_v57  ;;  %5428 = vmatprep.subr.bf16.mxu0 %v6986_v27 }
 0x88f   : > { %5430 = vmatpush3.bf16.msra.mxu0 %v5429_v12  ;;  %4998 = vmatprep.mubr.msk.f32.mxu0 %vm5597_vm3, %v7019_v29 }
 0x890   : > { %5431 = vmatprep.subr.bf16.mxu0 %v6986_v27 }
 0x893   : > { %5433 = vmatpush3.bf16.msra.mxu0 %v5432_v61 }
 0x894   : > { %5434 = vmatprep.subr.bf16.mxu0 %v6986_v27 }
 0x897   : > { %5436 = vmatpush3.bf16.msra.mxu0 %v5435_v17 }
 0x898   : > { %5437 = vmatprep.subr.bf16.mxu0 %v6986_v27 }
 0x89b   : > { %5439 = vmatpush3.bf16.msra.mxu0 %v5438_v19 }
 0x89c   : > { %5440 = vmatprep.subr.bf16.mxu0 %v6986_v27 }
 0x89f   : > { %5442 = vmatpush3.bf16.msra.mxu0 %v5441_v20 }
 0x8a0   : > { %4996 = vmatprep.subr.mxu0 %v7019_v29 }
 0x8a3   : > { %4997 = vmatpush3.msra.mxu0 %v3028_v9 }
 0x8a4   : > { %4999 = vmatmul.mubr.f32.vlgmr.msra.gmra.mrb[4].mxu0 %v6687_v63  ;;  %5443 = vmatprep.subr.bf16.mxu0 %v6986_v27 }
 0x8a5   : > { %5445 = vmatpush3.bf16.msra.mxu0 %v6587_v49  ;;  %5023 = vmatprep.mubr.msk.f32.mxu0 %vm5597_vm3, %v7019_v29 }
 0x8a6   : > { %5446 = vmatprep.subr.bf16.mxu0 %v6986_v27 }
 0x8a9   : > { %5448 = vmatpush3.bf16.msra.mxu0 %v6590_v28 }
 0x8aa   : > { %5449 = vmatprep.subr.bf16.mxu0 %v6986_v27 }
 0x8ad   : > { %5451 = vmatpush3.bf16.msra.mxu0 %v6596_v50 }
 0x8ae   : > { %5452 = vmatprep.subr.bf16.mxu0 %v6986_v27 }
 0x8b1   : > { %5454 = vmatpush3.bf16.msra.mxu0 %v6607_v2 }
 0x8b2   : > { %5455 = vmatprep.subr.bf16.mxu0 %v6986_v27 }
 0x8b5   : > { %5457 = vmatpush3.bf16.msra.mxu0 %v6617_v4 }
 0x8b6   : > { %5021 = vmatprep.subr.mxu0 %v7019_v29 }
 0x8b9   : > { %5022 = vmatpush3.msra.mxu0 %v6640_v6 }
 0x8ba   : > { %5024 = vmatmul.mubr.f32.vlgmr.msra.gmra.mrb[4].mxu0 %v6687_v63  ;;  %5026 = vmatprep.subr.mxu0 %v7019_v29 }
 0x8bb   : > { %5028 = vmatprep.mubr.msk.f32.mxu0 %vm5597_vm3, %v7019_v29 }
 0x98d   : > { %v3441_v21 = vpop.f32.mrb[4].mxu0 }
 0x98e   : > { %3446 = vst.msk [vmem:[%s347_s26] sm:$0xf] %vm3445_vm2, %v3441_v21  ;;  %v3462_v41 = vrot.slane %v3441_v21, 1  ;;  %v3464_v34 = vrot.slane %v3441_v21, 7  ;;  %v3466_v49 = vrot.slane %v3441_v21, 5  ;;  %v5025_v28 = vpop.f32.mrb[5].mxu0 }
 0x990   : > { %v3468_v50 = vsel %vm395_vm0, %v3462_v41, %v3464_v34 }
 0x991   : > { %v3470_v2 = vsel %vm3469_vm4, %v3468_v50, %v3466_v49 }
 0x992   : > { %v3472_v4 = vrot.slane %v3470_v2, 2  ;;  %v3476_v56 = vmul.f32 0.45186275, %v3470_v2 }
 0x994   : > { %v3474_v58 = vadd.f32 %v3472_v4, %v3470_v2  ;;  %v3478_v59 = vrot.slane %v3476_v56, 1 }
 0x996   : > { %v3475_v30 = vmul.f32 0.27406862, %v3474_v58 }
 0x998   : > { %v3480_v0 = vadd.f32 %v3478_v59, %v3475_v30 }
 0x99a   : > { %3486 = vrot.lane.b32.xlu1 %v3480_v0, %s5594_s16  ;;  %3482 = vrot.lane.b32.xlu0 %v3480_v0, %s5593_s15  ;;  %v3495_v42 = vmul.f32 0.45186275, %v3480_v0 }
 0xa0c   : > { %v3487_v52 = vpop.permute.xlu1 %3486  ;;  %v3483_v51 = vpop.permute.xlu0 %3482 }
 0xa0d   : > { %v3490_v23 = vsel %vm3489_vm5, %v3487_v52, %v3480_v0  ;;  %v3485_v35 = vsel %vm486_vm6, %v3480_v0, %v3483_v51 }
 0xa0e   : > { %v3491_v31 = vsel %vm6777_vm7, %v3490_v23, %v3485_v35  ;;  %v3492_v1 = vsel %vm6781_vm8, %v3485_v35, %v3490_v23  ;;  %v3599_v35 = vld [vmem:[%s6916_s5] sm:$0x3] }
 0xa0f   : > { %v3493_v10 = vadd.f32 %v3492_v1, %v3491_v31  ;;  %v3602_v31 = vsel %vm3600_vm9, %v3599_v35, 0 }
 0xa10   : > { %v3674_v1 = vand.u32 4294901760, %v3602_v31 }
 0xa11   : > { %v3494_v18 = vmul.f32 0.27406862, %v3493_v10 }
 0xa12   : > { %v3675_v10 = vsub.f32 %v3602_v31, %v3674_v1 }
 0xa13   : > { %v3496_v7 = vadd.f32 %v3495_v42, %v3494_v18 }
 0xa15   : > { %v3498_v40 = vrot.slane %v3496_v7, 1  ;;  %v3500_v53 = vrot.slane %v3496_v7, 7  ;;  %v3502_v43 = vrot.slane %v3496_v7, 5 }
 0xa17   : > { %v3504_v5 = vsel %vm395_vm0, %v3498_v40, %v3500_v53  ;;  %v3676_v53 = vand.u32 4294901760, %v3675_v10 }
 0xa18   : > { %v3505_v8 = vsel %vm3469_vm4, %v3504_v5, %v3502_v43 }
 0xa19   : > { %v3507_v26 = vrot.slane %v3505_v8, 2  ;;  %v3511_v11 = vmul.f32 0.45186275, %v3505_v8 }
 0xa1b   : > { %v3509_v39 = vadd.f32 %v3507_v26, %v3505_v8  ;;  %v3513_v60 = vrot.slane %v3511_v11, 1 }
 0xa1d   : > { %v3510_v38 = vmul.f32 0.27406862, %v3509_v39  ;;  %v3677_v39 = vsub.f32 %v3675_v10, %v3676_v53 }
 0xa1f   : > { %v3515_v46 = vadd.f32 %v3513_v60, %v3510_v38 }
 0xa21   : > { %3521 = vrot.lane.b32.xlu1 %v3515_v46, %s5594_s16  ;;  %3517 = vrot.lane.b32.xlu0 %v3515_v46, %s5593_s15  ;;  %v3529_v25 = vmul.f32 0.45186275, %v3515_v46 }
 0xa93   : > { %v3522_v47 = vpop.permute.xlu1 %3521  ;;  %v3518_v45 = vpop.permute.xlu0 %3517 }
 0xa94   : > { %v3524_v22 = vsel %vm3489_vm5, %v3522_v47, %v3515_v46  ;;  %v3520_v37 = vsel %vm486_vm6, %v3515_v46, %v3518_v45  ;;  %v3678_v46 = vand.u32 4294901760, %v3677_v39 }
 0xa95   : > { %v3525_v54 = vsel %vm6777_vm7, %v3524_v22, %v3520_v37  ;;  %v3526_v62 = vsel %vm6781_vm8, %v3520_v37, %v3524_v22  ;;  %v4054_v37 = vld [vmem:[%s6917_s6] sm:$0xff] }
 0xa96   : > { %v3527_v44 = vadd.f32 %v3526_v62, %v3525_v54  ;;  %v4055_v54 = vld [vmem:[%s6917_s6 + $0x8] sm:$0xff]  ;;  %v4068_v62 = vand.u32 4294901760, %v4054_v37 }
 0xa98   : > { %v3528_v48 = vmul.f32 0.27406862, %v3527_v44  ;;  %v4071_v44 = vand.u32 4294901760, %v4055_v54 }
 0xa9a   : > { %v3530_v13 = vadd.f32 %v3529_v25, %v3528_v48  ;;  %v6849_v48 = vpack.c.bf16 %v4071_v44, %v4068_v62  ;;  %v4056_v25 = vld [vmem:[%s6917_s6 + $0x10] sm:$0xff] }
 0xa9c   : > { %v3532_v55 = vrot.slane %v3530_v13, 1  ;;  %v3534_v63 = vrot.slane %v3530_v13, 7  ;;  %v3536_v14 = vrot.slane %v3530_v13, 5  ;;  %v4057_v13 = vld [vmem:[%s6917_s6 + $0x18] sm:$0xff] }
 0xa9e   : > { %v3538_v57 = vsel %vm395_vm0, %v3532_v55, %v3534_v63  ;;  %v4074_v55 = vand.u32 4294901760, %v4056_v25  ;;  %v4077_v63 = vand.u32 4294901760, %v4057_v13 }
 0xa9f   : > { %v3539_v32 = vsel %vm3469_vm4, %v3538_v57, %v3536_v14  ;;  %v4150_v14 = vsub.f32 %v4054_v37, %v4068_v62  ;;  %v4157_v57 = vsub.f32 %v4055_v54, %v4071_v44 }
 0xaa0   : > { %v3541_v15 = vrot.slane %v3539_v32, 2  ;;  %v3545_v36 = vmul.f32 0.45186275, %v3539_v32 }
 0xaa2   : > { %v3543_v9 = vadd.f32 %v3541_v15, %v3539_v32  ;;  %v3547_v33 = vrot.slane %v3545_v36, 1  ;;  %v6859_v32 = vpack.c.bf16 %v4077_v63, %v4074_v55  ;;  %v4059_v15 = vld [vmem:[%s6917_s6 + $0x28] sm:$0xf]  ;;  %v4058_v36 = vld [vmem:[%s6917_s6 + $0x20] sm:$0xff] }
 0xaa4   : > { %v3544_v24 = vmul.f32 0.27406862, %v3543_v9 }
 0xaa6   : > { %v3549_v12 = vadd.f32 %v3547_v33, %v3544_v24  ;;  %v4080_v24 = vand.u32 4294901760, %v4058_v36 }
 0xaa8   : > { %3555 = vrot.lane.b32.xlu1 %v3549_v12, %s5594_s16  ;;  %3551 = vrot.lane.b32.xlu0 %v3549_v12, %s5593_s15  ;;  %v3563_v28 = vmul.f32 0.45186275, %v3549_v12 }
 0xb1a   : > { %v3556_v61 = vpop.permute.xlu1 %3555  ;;  %v3552_v17 = vpop.permute.xlu0 %3551 }
 0xb1b   : > { %v3558_v19 = vsel %vm3489_vm5, %v3556_v61, %v3549_v12  ;;  %v3554_v20 = vsel %vm486_vm6, %v3549_v12, %v3552_v17  ;;  %v4151_v12 = vand.u32 4294901760, %v4150_v14  ;;  %v4158_v61 = vand.u32 4294901760, %v4157_v57 }
 0xb1c   : > { %v3559_v21 = vsel %vm6777_vm7, %v3558_v19, %v3554_v20  ;;  %v3560_v41 = vsel %vm6781_vm8, %v3554_v20, %v3558_v19  ;;  %v4164_v17 = vsub.f32 %v4056_v25, %v4074_v55  ;;  %v4171_v19 = vsub.f32 %v4057_v13, %v4077_v63 }
 0xb1d   : > { %v3561_v34 = vadd.f32 %v3560_v41, %v3559_v21  ;;  %v4152_v21 = vsub.f32 %v4150_v14, %v4151_v12  ;;  %v4159_v41 = vsub.f32 %v4157_v57, %v4158_v61 }
 0xb1f   : > { %v3562_v49 = vmul.f32 0.27406862, %v3561_v34  ;;  %v4153_v34 = vand.u32 4294901760, %v4152_v21 }
 0xb21   : > { %v3564_v50 = vadd.f32 %v3563_v28, %v3562_v49  ;;  %v4165_v49 = vand.u32 4294901760, %v4164_v17  ;;  %v4172_v28 = vand.u32 4294901760, %v4171_v19 }
 0xb23   : > { %v3566_v2 = vrot.slane %v3564_v50, 1  ;;  %v3568_v4 = vrot.slane %v3564_v50, 7  ;;  %v3570_v56 = vrot.slane %v3564_v50, 5  ;;  %v4178_v50 = vsub.f32 %v4058_v36, %v4080_v24 }
 0xb25   : > { %v3572_v58 = vsel %vm395_vm0, %v3566_v2, %v3568_v4  ;;  %vm3604_vm0 = vcmask 1043456   ;;  %v4160_v4 = vand.u32 4294901760, %v4159_v41 }
 0xb26   : > { %v3573_v30 = vsel %vm3469_vm4, %v3572_v58, %v3570_v56  ;;  %v4065_v9 = vsel %vm3604_vm0, %v4059_v15, 0  ;;  %v4166_v56 = vsub.f32 %v4164_v17, %v4165_v49  ;;  %v4173_v58 = vsub.f32 %v4171_v19, %v4172_v28 }
 0xb27   : > { %v3575_v59 = vrot.slane %v3573_v30, 2  ;;  %v3579_v0 = vmul.f32 0.45186275, %v3573_v30  ;;  %v4083_v33 = vand.u32 4294901760, %v4065_v9 }
 0xb29   : > { %v3577_v3 = vadd.f32 %v3575_v59, %v3573_v30  ;;  %v3581_v51 = vrot.slane %v3579_v0, 1  ;;  %v6870_v20 = vpack.c.bf16 %v4083_v33, %v4080_v24  ;;  %v4185_v2 = vsub.f32 %v4065_v9, %v4083_v33 }
 0xb2a   : > { %v5468_v30 = vpack.c.bf16 %v4160_v4, %v4153_v34  ;;  %v4167_v59 = vand.u32 4294901760, %v4166_v56  ;;  %v4174_v0 = vand.u32 4294901760, %v4173_v58 }
 0xb2b   : > { %v3578_v52 = vmul.f32 0.27406862, %v3577_v3  ;;  %v4179_v3 = vand.u32 4294901760, %v4178_v50 }
 0xb2d   : > { %v3583_v23 = vadd.f32 %v3581_v51, %v3578_v52  ;;  %v4186_v52 = vand.u32 4294901760, %v4185_v2  ;;  %v5471_v51 = vpack.c.bf16 %v4174_v0, %v4167_v59 }
 0xb2f   : > { %3589 = vrot.lane.b32.xlu1 %v3583_v23, %s5594_s16  ;;  %3585 = vrot.lane.b32.xlu0 %v3583_v23, %s5593_s15  ;;  %v3597_v11 = vmul.f32 0.45186275, %v3583_v23  ;;  %v4187_v35 = vsub.f32 %v4185_v2, %v4186_v52 }
 0xba1   : > { %v3590_v18 = vpop.permute.xlu1 %3589  ;;  %v3586_v42 = vpop.permute.xlu0 %3585 }
 0xba2   : > { %v3592_v7 = vsel %vm3489_vm5, %v3590_v18, %v3583_v23  ;;  %v3588_v40 = vsel %vm486_vm6, %v3583_v23, %v3586_v42  ;;  %v4180_v23 = vsub.f32 %v4178_v50, %v4179_v3  ;;  %v5477_v18 = vpack.c.bf16 %v4157_v57, %v4150_v14 }
 0xba3   : > { %v3593_v43 = vsel %vm6777_vm7, %v3592_v7, %v3588_v40  ;;  %v3594_v5 = vsel %vm6781_vm8, %v3588_v40, %v3592_v7  ;;  %v5480_v42 = vpack.c.bf16 %v4171_v19, %v4164_v17  ;;  %v5483_v7 = vpack.c.bf16 %v4185_v2, %v4178_v50 }
 0xba4   : > { %v3595_v8 = vadd.f32 %v3594_v5, %v3593_v43  ;;  %v4181_v31 = vand.u32 4294901760, %v4180_v23  ;;  %v5495_v40 = vpack.c.bf16 %v4158_v61, %v4151_v12  ;;  %v5501_v43 = vpack.c.bf16 %v4186_v52, %v4179_v3 }
 0xba5   : > { %vm4060_vm6 = vcmask 359424  }
 0xba6   : > { %v3596_v26 = vmul.f32 0.27406862, %v3595_v8 }
 0xba8   : > { %v3598_v38 = vadd.f32 %v3597_v11, %v3596_v26 }
 0xbaa   : > { %v3606_v60 = vsel %vm3604_vm0, %v3598_v38, 0 }
 0xbab   : > { %v3609_v47 = vand.u32 4294901760, %v3606_v60 }
 0xbad   : > { %5027 = vmatpush3.msra.mxu0 %v3609_v47  ;;  %v3686_v45 = vsub.f32 %v3606_v60, %v3609_v47 }
 0xbae   : > { %5029 = vmatmul.mubr.f32.vlgmr.msra.gmra.mrb[6].mxu0 %v3678_v46  ;;  %5031 = vmatprep.subr.mxu0 %v7019_v29 }
 0xbaf   : > { %v3687_v6 = vand.u32 4294901760, %v3686_v45  ;;  %5033 = vmatprep.mubr.msk.f32.mxu0 %vm5597_vm3, %v7019_v29 }
 0xbb1   : > { %v3688_v16 = vsub.f32 %v3686_v45, %v3687_v6 }
 0xbb3   : > { %v3689_v22 = vand.u32 4294901760, %v3688_v16 }
 0xbb5   : > { %5032 = vmatpush3.msra.mxu0 %v3689_v22 }
 0xbb6   : > { %5034 = vmatmul.mubr.f32.vlgmr.msra.gmra.mrb[6].mxu0 %v3674_v1  ;;  %5036 = vmatprep.subr.mxu0 %v7019_v29 }
 0xbb7   : > { %5037 = vmatpush3.msra.mxu0 %v3686_v45  ;;  %5038 = vmatprep.mubr.msk.f32.mxu0 %vm5597_vm3, %v7019_v29 }
 0xbb8   : > { %5041 = vmatprep.subr.mxu0 %v7019_v29 }
 0xbbe   : > { %5039 = vmatmul.mubr.f32.vlgmr.msra.gmra.mrb[6].mxu0 %v3675_v10 }
 0xbbf   : > { %5042 = vmatpush3.msra.mxu0 %v3609_v47  ;;  %5043 = vmatprep.mubr.msk.f32.mxu0 %vm5597_vm3, %v7019_v29 }
 0xbc0   : > { %5046 = vmatprep.subr.mxu0 %v7019_v29 }
 0xbc6   : > { %5044 = vmatmul.mubr.f32.vlgmr.msra.gmra.mrb[6].mxu0 %v3676_v53  ;;  %v5498_v53 = vpack.c.bf16 %v4172_v28, %v4165_v49 }
 0xbc7   : > { %5047 = vmatpush3.msra.mxu0 %v3687_v6  ;;  %5048 = vmatprep.mubr.msk.f32.mxu0 %vm5597_vm3, %v7019_v29 }
 0xbc8   : > { %5051 = vmatprep.subr.mxu0 %v7019_v29 }
 0xbce   : > { %5049 = vmatmul.mubr.f32.vlgmr.msra.gmra.mrb[6].mxu0 %v3674_v1 }
 0xbcf   : > { %5052 = vmatpush3.msra.mxu0 %v3609_v47  ;;  %5053 = vmatprep.mubr.msk.f32.mxu0 %vm5597_vm3, %v7019_v29 }
 0xbd0   : > { %5458 = vmatprep.subr.bf16.mxu0 %v6986_v27 }
 0xbd6   : > { %5054 = vmatmul.mubr.f32.vlgmr.msra.gmra.mrb[6].mxu0 %v3674_v1  ;;  %v4188_v1 = vand.u32 4294901760, %v4187_v35 }
 0xbd7   : > { %5068 = vmatprep.mubr.msk.f32.mxu0 %vm5597_vm3, %v7019_v29  ;;  %5460 = vmatpush3.bf16.msra.mxu0 %v6849_v48 }
 0xbd8   : > { %5461 = vmatprep.subr.bf16.mxu0 %v6986_v27  ;;  %v5474_v10 = vpack.c.bf16 %v4188_v1, %v4181_v31 }
 0xbdb   : > { %5463 = vmatpush3.bf16.msra.mxu0 %v6859_v32 }
 0xbdc   : > { %5464 = vmatprep.subr.bf16.mxu0 %v6986_v27 }
 0xbdf   : > { %5466 = vmatpush3.bf16.msra.mxu0 %v6870_v20 }
 0xbe0   : > { %5467 = vmatprep.subr.bf16.mxu0 %v6986_v27 }
 0xca9   : > { %v4050_v5 = vpop.f32.mrb[6].mxu0 }
 0xcaa   : > { %v4062_v8 = vsel %vm4060_vm6, %v4050_v5, 0  ;;  %v5055_v26 = vpop.f32.mrb[7].mxu0 }
 0xcab   : > { %v4138_v11 = vand.u32 4294901760, %v4062_v8 }
 0xcad   : > { %v4139_v39 = vsub.f32 %v4062_v8, %v4138_v11 }
 0xcaf   : > { %v4140_v38 = vand.u32 4294901760, %v4139_v39 }
 0xcb1   : > { %v4141_v60 = vsub.f32 %v4139_v39, %v4140_v38 }
 0xcb3   : > { %v4142_v46 = vand.u32 4294901760, %v4141_v60 }
 0xcb5   : > { %5069 = vmatmul.mubr.f32.vlgmr.msra.gmra.mrb[8].mxu0 %v4142_v46 }
 0xcb6   : > { %5469 = vmatpush3.bf16.msra.mxu0 %v5468_v30  ;;  %5083 = vmatprep.mubr.msk.f32.mxu0 %vm5597_vm3, %v7019_v29 }
 0xcb7   : > { %5470 = vmatprep.subr.bf16.mxu0 %v6986_v27 }
 0xcba   : > { %5472 = vmatpush3.bf16.msra.mxu0 %v5471_v51 }
 0xcbb   : > { %5473 = vmatprep.subr.bf16.mxu0 %v6986_v27 }
 0xcbe   : > { %5475 = vmatpush3.bf16.msra.mxu0 %v5474_v10 }
 0xcbf   : > { %5476 = vmatprep.subr.bf16.mxu0 %v6986_v27 }
 0xcc1   : > { %5084 = vmatmul.mubr.f32.vlgmr.msra.gmra.mrb[8].mxu0 %v4138_v11 }
 0xcc2   : > { %5478 = vmatpush3.bf16.msra.mxu0 %v5477_v18  ;;  %5098 = vmatprep.mubr.msk.f32.mxu0 %vm5597_vm3, %v7019_v29 }
 0xcc3   : > { %5479 = vmatprep.subr.bf16.mxu0 %v6986_v27 }
 0xcc6   : > { %5481 = vmatpush3.bf16.msra.mxu0 %v5480_v42 }
 0xcc7   : > { %5482 = vmatprep.subr.bf16.mxu0 %v6986_v27 }
 0xcca   : > { %5484 = vmatpush3.bf16.msra.mxu0 %v5483_v7 }
 0xccb   : > { %5485 = vmatprep.subr.bf16.mxu0 %v6986_v27 }
 0xccd   : > { %5099 = vmatmul.mubr.f32.vlgmr.msra.gmra.mrb[8].mxu0 %v4139_v39 }
 0xcce   : > { %5487 = vmatpush3.bf16.msra.mxu0 %v6849_v48  ;;  %5113 = vmatprep.mubr.msk.f32.mxu0 %vm5597_vm3, %v7019_v29 }
 0xccf   : > { %5488 = vmatprep.subr.bf16.mxu0 %v6986_v27 }
 0xcd2   : > { %5490 = vmatpush3.bf16.msra.mxu0 %v6859_v32 }
 0xcd3   : > { %5491 = vmatprep.subr.bf16.mxu0 %v6986_v27 }
 0xcd6   : > { %5493 = vmatpush3.bf16.msra.mxu0 %v6870_v20 }
 0xcd7   : > { %5494 = vmatprep.subr.bf16.mxu0 %v6986_v27 }
 0xcd9   : > { %5114 = vmatmul.mubr.f32.vlgmr.msra.gmra.mrb[8].mxu0 %v4140_v38 }
 0xcda   : > { %5496 = vmatpush3.bf16.msra.mxu0 %v5495_v40  ;;  %5128 = vmatprep.mubr.msk.f32.mxu0 %vm5597_vm3, %v7019_v29 }
 0xcdb   : > { %5497 = vmatprep.subr.bf16.mxu0 %v6986_v27 }
 0xcde   : > { %5499 = vmatpush3.bf16.msra.mxu0 %v5498_v53 }
 0xcdf   : > { %5500 = vmatprep.subr.bf16.mxu0 %v6986_v27 }
 0xce2   : > { %5502 = vmatpush3.bf16.msra.mxu0 %v5501_v43 }
 0xce3   : > { %5503 = vmatprep.subr.bf16.mxu0 %v6986_v27 }
 0xce5   : > { %5129 = vmatmul.mubr.f32.vlgmr.msra.gmra.mrb[8].mxu0 %v4138_v11 }
 0xce6   : > { %5505 = vmatpush3.bf16.msra.mxu0 %v6849_v48  ;;  %5143 = vmatprep.mubr.msk.f32.mxu0 %vm5597_vm3, %v7019_v29 }
 0xce7   : > { %5506 = vmatprep.subr.bf16.mxu0 %v6986_v27 }
 0xcea   : > { %5508 = vmatpush3.bf16.msra.mxu0 %v6859_v32 }
 0xceb   : > { %5509 = vmatprep.subr.bf16.mxu0 %v6986_v27 }
 0xcee   : > { %5511 = vmatpush3.bf16.msra.mxu0 %v6870_v20 }
 0xcf1   : > { %5144 = vmatmul.mubr.f32.vlgmr.msra.gmra.mrb[8].mxu0 %v4138_v11 }
 0xdc4   : > { %v4574_v47 = vpop.f32.mrb[8].mxu0 }
 0xdc5   : > { %4579 = vst.msk [vmem:[%s351_s25] sm:$0x3] %vm4578_vm10, %v4574_v47  ;;  %v5145_v45 = vpop.f32.mrb[9].mxu0 }
 0xdc6 PF: > { %s20_s30 = sadd.s32 1, %s5591_s30  }
 0xdc7   : > { %p17_p4 = scmp.ge.s32.totalorder %s20_s30, 4  }
 0xdc9   :  { %19 = sbr.rel (!%p17_p4) target bundleno = 1 (0x1), region = 102 }

</bundles_post_ra>
